<compile_context>
chip_gen: v7x
topology: tpu7x:2x2x1
jax: 0.10.0
libtpu: 0.0.40
codegen_flags: <defaults>
</compile_context>

<pallas_src>
import functools

import jax
import jax.numpy as jnp
from jax.experimental import pallas as pl
from jax.experimental.pallas import tpu as pltpu

EPS = 1e-5
# Above the 16/32 MiB scoped defaults, below v7x's 64 MiB physical VMEM.
VMEM_LIMIT = 48 * 1024 * 1024


def _compiler_params():
    return pltpu.CompilerParams(dimension_semantics=("parallel",),
                                vmem_limit_bytes=VMEM_LIMIT)


# ------------------------------ Pallas kernels ------------------------------
def _conv_stats_kernel(x_ref, w_ref, y_ref, stats_ref, acc_ref, *, taps, ho, wo):
    """Pass 1: 3x3 conv for one image via 9 in-kernel taps (+ fused 1x1
    shortcut columns).  f32 MXU accumulation in VMEM scratch, bf16 y store,
    per-image BN partial sums computed from the f32 result."""
    acc_ref[...] = jnp.zeros_like(acc_ref)
    hw = ho * wo
    for t, (r0, c0) in enumerate(taps):                    # static unroll (9 taps)
        xt = x_ref[0, r0:r0 + ho, c0:c0 + wo, :]           # (ho, wo, Cin) bf16
        xt = xt.reshape(hw, xt.shape[-1])
        acc_ref[...] += jnp.dot(xt, w_ref[t], preferred_element_type=jnp.float32)
    y = acc_ref[...]
    y_ref[0] = y.astype(y_ref.dtype)                       # bf16 hand-off
    stats_ref[0, 0:1, :] = jnp.sum(y, axis=0, keepdims=True)
    stats_ref[0, 1:2, :] = jnp.sum(y * y, axis=0, keepdims=True)


def _bn_mid_kernel(y_ref, sb_ref, o_ref, *, cout):
    """Pass 2 (conv1, identity-shortcut block): y*scale+bias, ReLU, bf16 out."""
    z = y_ref[0].astype(jnp.float32) * sb_ref[0:1, :] + sb_ref[1:2, :]
    o_ref[0] = jnp.maximum(z[:, :cout], 0.0).astype(o_ref.dtype)


def _bn_split_kernel(y_ref, sb_ref, o_ref, sc_ref, *, cout, cp):
    """Pass 2 (fused conv1 + 1x1 shortcut): ReLU only on the conv1 half."""
    z = y_ref[0].astype(jnp.float32) * sb_ref[0:1, :] + sb_ref[1:2, :]
    o_ref[0] = jnp.maximum(z[:, :cout], 0.0).astype(o_ref.dtype)
    sc_ref[0] = z[:, cp:cp + cout].astype(sc_ref.dtype)


def _bn_final_kernel(y_ref, sb_ref, r_ref, o_ref, *, cout):
    """Pass 2 (conv2): y*scale+bias + residual + ReLU, f32 block output."""
    z = y_ref[0].astype(jnp.float32) * sb_ref[0:1, :] + sb_ref[1:2, :]
    z = z[:, :cout] + r_ref[0].astype(jnp.float32)
    o_ref[0] = jnp.maximum(z, 0.0)


# ---------------------------- pallas_call wrappers ---------------------------
def _conv_stats_call(xs, w_taps, taps, ho, wo):
    n, hs, ws, cin = xs.shape
    t, _, cf = w_taps.shape
    hw = ho * wo
    kern = functools.partial(_conv_stats_kernel, taps=taps, ho=ho, wo=wo)
    flops = 2 * n * hw * t * cin * cf
    bytes_acc = xs.size * 2 + w_taps.size * 2 + n * hw * cf * 2 + n * 2 * cf * 4
    return pl.pallas_call(
        kern,
        out_shape=(jax.ShapeDtypeStruct((n, hw, cf), jnp.bfloat16),
                   jax.ShapeDtypeStruct((n, 2, cf), jnp.float32)),
        grid=(n,),
        in_specs=[pl.BlockSpec((1, hs, ws, cin), lambda i: (i, 0, 0, 0)),
                  pl.BlockSpec((t, cin, cf), lambda i: (0, 0, 0))],
        out_specs=(pl.BlockSpec((1, hw, cf), lambda i: (i, 0, 0)),
                   pl.BlockSpec((1, 2, cf), lambda i: (i, 0, 0))),
        scratch_shapes=[pltpu.VMEM((hw, cf), jnp.float32)],
        compiler_params=_compiler_params(),
        cost_estimate=pl.CostEstimate(flops=int(flops), transcendentals=0,
                                      bytes_accessed=int(bytes_acc)),
    )(xs, w_taps)


def _bn_mid_call(y, sb, cout):
    n, hw, cf = y.shape
    return pl.pallas_call(
        functools.partial(_bn_mid_kernel, cout=cout),
        out_shape=jax.ShapeDtypeStruct((n, hw, cout), jnp.bfloat16),
        grid=(n,),
        in_specs=[pl.BlockSpec((1, hw, cf), lambda i: (i, 0, 0)),
                  pl.BlockSpec((2, cf), lambda i: (0, 0))],
        out_specs=pl.BlockSpec((1, hw, cout), lambda i: (i, 0, 0)),
        compiler_params=_compiler_params(),
    )(y, sb)


def _bn_split_call(y, sb, cout, cp):
    n, hw, cf = y.shape
    return pl.pallas_call(
        functools.partial(_bn_split_kernel, cout=cout, cp=cp),
        out_shape=(jax.ShapeDtypeStruct((n, hw, cout), jnp.bfloat16),
                   jax.ShapeDtypeStruct((n, hw, cout), jnp.bfloat16)),
        grid=(n,),
        in_specs=[pl.BlockSpec((1, hw, cf), lambda i: (i, 0, 0)),
                  pl.BlockSpec((2, cf), lambda i: (0, 0))],
        out_specs=(pl.BlockSpec((1, hw, cout), lambda i: (i, 0, 0)),
                   pl.BlockSpec((1, hw, cout), lambda i: (i, 0, 0))),
        compiler_params=_compiler_params(),
    )(y, sb)


def _bn_final_call(y, sb, res, cout):
    n, hw, cf = y.shape
    return pl.pallas_call(
        functools.partial(_bn_final_kernel, cout=cout),
        out_shape=jax.ShapeDtypeStruct((n, hw, cout), jnp.float32),
        grid=(n,),
        in_specs=[pl.BlockSpec((1, hw, cf), lambda i: (i, 0, 0)),
                  pl.BlockSpec((2, cf), lambda i: (0, 0)),
                  pl.BlockSpec((1, hw, cout), lambda i: (i, 0, 0))],
        out_specs=pl.BlockSpec((1, hw, cout), lambda i: (i, 0, 0)),
        compiler_params=_compiler_params(),
    )(y, sb, res)


# -------------------------------- JAX glue -----------------------------------
def _round_up(v, m):
    return (v + m - 1) // m * m


def _pad_vec(v, target, value):
    v = v.astype(jnp.float32)
    pad = target - v.shape[0]
    return jnp.pad(v, (0, pad), constant_values=value) if pad > 0 else v


def _weights_to_taps(w_oihw, cf):
    """Torch conv weight (Cout, Cin, 3, 3) -> per-tap matmul weights (9, Cin, cf)."""
    cout, cin, kh, kw = w_oihw.shape
    w = jnp.transpose(w_oihw.astype(jnp.float32), (2, 3, 1, 0))
    w = w.reshape(kh * kw, cin, cout)
    pad = cf - cout
    if pad > 0:
        w = jnp.pad(w, ((0, 0), (0, 0), (0, pad)))
    return w


def _prepare_taps_input(x, stride):
    """Spatial pad (pad=1) + (for stride 2) space-to-depth phase decomposition.
    Returns the stacked kernel input (N, rows, cols, C), static tap offsets
    (row0, col0) -- contiguous slices only -- and the conv output H, W."""
    n, h, w, c = x.shape
    xp = jnp.pad(x, ((0, 0), (1, 1), (1, 1), (0, 0)))
    if stride == 1:
        taps = tuple((kh, kw) for kh in range(3) for kw in range(3))
        return xp, taps, h, w
    assert stride == 2 and h % 2 == 0 and w % 2 == 0
    hh = (h + 2) // 2
    # phase (a, b) holds xp[2i + a, 2j + b]; phases stacked along the row axis.
    phases = [xp[:, a::2, b::2, :] for a in (0, 1) for b in (0, 1)]
    xs = jnp.concatenate(phases, axis=1)                   # (N, 4*hh, wh, C)
    taps = tuple((((kh % 2) * 2 + (kw % 2)) * hh + kh // 2, kw // 2)
                 for kh in range(3) for kw in range(3))
    return xs, taps, h // 2, w // 2


def _finalize_bn(stats, gamma, beta, m):
    """Reduce per-image partial sums; produce per-channel (scale, bias) once."""
    s = jnp.sum(stats, axis=0)                             # (2, Cf) f32
    mean = s[0] / m
    var = jnp.maximum(s[1] / m - mean * mean, 0.0)
    scale = gamma * jax.lax.rsqrt(var + EPS)
    bias = beta - mean * scale
    return jnp.stack([scale, bias])                        # (2, Cf) f32


def basic_block_forward(x_nchw, params, stride):
    """Pallas implementation of BasicBlock.forward (input/output NCHW, f32)."""
    x = jnp.transpose(x_nchw, (0, 2, 3, 1)).astype(jnp.bfloat16)     # NHWC bf16
    n, h, w, cin = x.shape
    planes = params["w1"].shape[0]
    cp = _round_up(planes, 128)
    downsample = (stride != 1) or (cin != planes)

    # ---------- conv1 (+ fused 1x1 shortcut) + bn1 + relu ----------
    xs, taps, ho, wo = _prepare_taps_input(x, stride)
    m = float(n * ho * wo)
    if downsample:
        w1_t = _weights_to_taps(params["w1"], cp)                    # (9, Cin, Cp)
        ws_mat = jnp.transpose(params["ws"][:, :, 0, 0].astype(jnp.float32), (1, 0))
        ws_t = jnp.zeros((9, cin, cp), jnp.float32).at[4, :, :planes].set(ws_mat)
        w_taps = jnp.concatenate([w1_t, ws_t], axis=2).astype(jnp.bfloat16)
        gamma = jnp.concatenate([_pad_vec(params["g1"], cp, 1.0),
                                 _pad_vec(params["gs"], cp, 1.0)])
        beta = jnp.concatenate([_pad_vec(params["b1"], cp, 0.0),
                                _pad_vec(params["bs"], cp, 0.0)])
    else:
        w_taps = _weights_to_taps(params["w1"], cp).astype(jnp.bfloat16)
        gamma = _pad_vec(params["g1"], cp, 1.0)
        beta = _pad_vec(params["b1"], cp, 0.0)

    y1, st1 = _conv_stats_call(xs, w_taps, taps, ho, wo)
    sb1 = _finalize_bn(st1, gamma, beta, m)
    if downsample:
        out1, sc = _bn_split_call(y1, sb1, planes, cp)               # bf16, bf16
    else:
        out1 = _bn_mid_call(y1, sb1, planes)                         # bf16
        sc = x.reshape(n, h * w, cin)                                # identity residual

    # ---------- conv2 + bn2 + residual add + relu ----------
    out1p = jnp.pad(out1.reshape(n, ho, wo, planes),
                    ((0, 0), (1, 1), (1, 1), (0, 0)))                # conv2 input (bf16)
    taps2 = tuple((kh, kw) for kh in range(3) for kw in range(3))
    w2_taps = _weights_to_taps(params["w2"], cp).astype(jnp.bfloat16)
    y2, st2 = _conv_stats_call(out1p, w2_taps, taps2, ho, wo)
    sb2 = _finalize_bn(st2, _pad_vec(params["g2"], cp, 1.0),
                       _pad_vec(params["b2"], cp, 0.0), m)
    out = _bn_final_call(y2, sb2, sc, planes)                        # (N, Ho*Wo, planes) f32

    out = out.reshape(n, ho, wo, planes)
    return jnp.transpose(out, (0, 3, 1, 2))                          # NCHW


# ----------------------------- pure-JAX reference ----------------------------
def ref_forward(x_nchw, params, stride):
    def conv(x, w, s, p):
        return jax.lax.conv_general_dilated(
            x, w, (s, s), ((p, p), (p, p)),
            dimension_numbers=("NCHW", "OIHW", "NCHW"))

    def bn(x, g, b):
        mean = jnp.mean(x, axis=(0, 2, 3), keepdims=True)
        var = jnp.mean((x - mean) ** 2, axis=(0, 2, 3), keepdims=True)
        return ((x - mean) * jax.lax.rsqrt(var + EPS)
                * g.reshape(1, -1, 1, 1) + b.reshape(1, -1, 1, 1))

    out = jax.nn.relu(bn(conv(x_nchw, params["w1"], stride, 1),
                         params["g1"], params["b1"]))
    out = bn(conv(out, params["w2"], 1, 1), params["g2"], params["b2"])
    if stride != 1 or x_nchw.shape[1] != params["w1"].shape[0]:
        sc = bn(conv(x_nchw, params["ws"], stride, 0),
                params["gs"], params["bs"])
    else:
        sc = x_nchw
    return jax.nn.relu(out + sc)


# ----------------------------------- setup -----------------------------------
def make_params(in_planes, planes, stride, key):
    k1, k2, k3 = jax.random.split(key, 3)
    params = {
        "w1": 0.1 * jax.random.normal(k1, (planes, in_planes, 3, 3), jnp.float32),
        "g1": jnp.ones((planes,), jnp.float32),
        "b1": jnp.zeros((planes,), jnp.float32),
        "w2": 0.1 * jax.random.normal(k2, (planes, planes, 3, 3), jnp.float32),
        "g2": jnp.ones((planes,), jnp.float32),
        "b2": jnp.zeros((planes,), jnp.float32),
    }
    if stride != 1 or in_planes != planes:
        params["ws"] = 0.1 * jax.random.normal(
            k3, (planes, in_planes, 1, 1), jnp.float32)
        params["gs"] = jnp.ones((planes,), jnp.float32)
        params["bs"] = jnp.zeros((planes,), jnp.float32)
    return params


if __name__ == "__main__":
    root = jax.random.PRNGKey(0)
    kx1, kp1, kx2, kp2 = jax.random.split(root, 4)

    fwd = jax.jit(basic_block_forward, static_argnums=2)

    # bf16 matmul operands / intermediates (f32 accumulation & BN math).
    ATOL = RTOL = 5e-2

    # Case 1: downsampling block (stride=2, channel change) -> fused conv shortcut.
    N, Cin, H, W, planes, stride = 2, 4, 16, 16, 8, 2
    x1 = jax.random.normal(kx1, (N, Cin, H, W), jnp.float32)
    params1 = make_params(Cin, planes, stride, kp1)
    y1 = jax.block_until_ready(fwd(x1, params1, stride))
    r1 = ref_forward(x1, params1, stride)
    assert y1.shape == (N, planes, H // stride, W // stride)
    assert jnp.allclose(y1, r1, atol=ATOL, rtol=RTOL), \
        float(jnp.max(jnp.abs(y1 - r1)))

    # Case 2: identity shortcut (stride=1, in_planes == planes).
    x2 = jax.random.normal(kx2, (2, 8, 16, 16), jnp.float32)
    params2 = make_params(8, 8, 1, kp2)
    y2 = jax.block_until_ready(fwd(x2, params2, 1))
    r2 = ref_forward(x2, params2, 1)
    assert y2.shape == (2, 8, 16, 16)
    assert jnp.allclose(y2, r2, atol=ATOL, rtol=RTOL), \
        float(jnp.max(jnp.abs(y2 - r2)))

    print("KERNEL_OK")
</pallas_src>

<mosaic_0001>
module attributes {stable_mosaic.version = 11 : i64} {
  func.func @_conv_stats_kernel(%arg0: i32, %arg1: memref<1x36x9x4xbf16, #tpu.memory_space<vmem>>, %arg2: memref<9x4x256xbf16, #tpu.memory_space<vmem>>, %arg3: memref<1x64x256xbf16, #tpu.memory_space<vmem>>, %arg4: memref<1x2x256xf32, #tpu.memory_space<vmem>>, %arg5: memref<64x256xf32, #tpu.memory_space<vmem>>) attributes {dimension_semantics = [#tpu.dimension_semantics<parallel>], iteration_bounds = array<i64: 2>, scalar_prefetch = 0 : i64, scratch_operands = 1 : i64, tpu.core_type = #tpu.core_type<tc>, window_params = [{transform_indices = @transform_0, window_bounds = array<i64: 1, 36, 9, 4>}, {pipeline_mode = #tpu.pipeline_mode<synchronous>, transform_indices = @transform_1, window_bounds = array<i64: 9, 4, 256>}, {transform_indices = @transform_2, window_bounds = array<i64: 1, 64, 256>}, {transform_indices = @transform_3, window_bounds = array<i64: 1, 2, 256>}]} {
    %cst = arith.constant 0.000000e+00 : f32
    %0 = vector.broadcast %cst : f32 to vector<64x256xf32>
    %c0 = arith.constant 0 : index
    %c0_0 = arith.constant 0 : index
    %1 = vector.load %arg5[%c0, %c0_0] : memref<64x256xf32, #tpu.memory_space<vmem>>, vector<64x256xf32>
    tpu.vector_store %arg5[%c0, %c0_0], %0 {strides = array<i32>} : memref<64x256xf32, #tpu.memory_space<vmem>>, vector<64x256xf32>,
    %c0_1 = arith.constant 0 : index
    %c0_2 = arith.constant 0 : index
    %c0_3 = arith.constant 0 : index
    %c0_4 = arith.constant 0 : index
    %2 = vector.load %arg1[%c0_1, %c0_2, %c0_3, %c0_4] : memref<1x36x9x4xbf16, #tpu.memory_space<vmem>>, vector<1x8x8x4xbf16>
    %3 = vector.shape_cast %2 : vector<1x8x8x4xbf16> to vector<8x8x4xbf16>
    %4 = vector.shape_cast %3 : vector<8x8x4xbf16> to vector<64x4xbf16>
    %c0_5 = arith.constant 0 : index
    %c0_6 = arith.constant 0 : index
    %5 = vector.load %arg5[%c0_5, %c0_6] : memref<64x256xf32, #tpu.memory_space<vmem>>, vector<64x256xf32>
    %c0_7 = arith.constant 0 : index
    %c0_8 = arith.constant 0 : index
    %c0_9 = arith.constant 0 : index
    %6 = vector.load %arg2[%c0_7, %c0_8, %c0_9] : memref<9x4x256xbf16, #tpu.memory_space<vmem>>, vector<1x4x256xbf16>
    %7 = vector.shape_cast %6 : vector<1x4x256xbf16> to vector<4x256xbf16>
    %cst_10 = arith.constant dense<0.000000e+00> : vector<64x256xf32>
    %8 = tpu.matmul %4, %7, %cst_10 {dimension_numbers = #tpu.dot_dimension_numbers<[1], [0], [0], [1], [0, 0, 1, 1], [], []>} : vector<64x4xbf16>, vector<4x256xbf16>, vector<64x256xf32> -> vector<64x256xf32>
    %9 = arith.addf %5, %8 : vector<64x256xf32>
    %c0_11 = arith.constant 0 : index
    %c0_12 = arith.constant 0 : index
    %10 = vector.load %arg5[%c0_11, %c0_12] : memref<64x256xf32, #tpu.memory_space<vmem>>, vector<64x256xf32>
    tpu.vector_store %arg5[%c0_11, %c0_12], %9 {strides = array<i32>} : memref<64x256xf32, #tpu.memory_space<vmem>>, vector<64x256xf32>,
    %c0_13 = arith.constant 0 : index
    %c9 = arith.constant 9 : index
    %c0_14 = arith.constant 0 : index
    %c0_15 = arith.constant 0 : index
    %11 = vector.load %arg1[%c0_13, %c9, %c0_14, %c0_15] : memref<1x36x9x4xbf16, #tpu.memory_space<vmem>>, vector<1x8x8x4xbf16>
    %12 = vector.shape_cast %11 : vector<1x8x8x4xbf16> to vector<8x8x4xbf16>
    %13 = vector.shape_cast %12 : vector<8x8x4xbf16> to vector<64x4xbf16>
    %c0_16 = arith.constant 0 : index
    %c0_17 = arith.constant 0 : index
    %14 = vector.load %arg5[%c0_16, %c0_17] : memref<64x256xf32, #tpu.memory_space<vmem>>, vector<64x256xf32>
    %c1 = arith.constant 1 : index
    %c0_18 = arith.constant 0 : index
    %c0_19 = arith.constant 0 : index
    %15 = vector.load %arg2[%c1, %c0_18, %c0_19] : memref<9x4x256xbf16, #tpu.memory_space<vmem>>, vector<1x4x256xbf16>
    %16 = vector.shape_cast %15 : vector<1x4x256xbf16> to vector<4x256xbf16>
    %cst_20 = arith.constant dense<0.000000e+00> : vector<64x256xf32>
    %17 = tpu.matmul %13, %16, %cst_20 {dimension_numbers = #tpu.dot_dimension_numbers<[1], [0], [0], [1], [0, 0, 1, 1], [], []>} : vector<64x4xbf16>, vector<4x256xbf16>, vector<64x256xf32> -> vector<64x256xf32>
    %18 = arith.addf %14, %17 : vector<64x256xf32>
    %c0_21 = arith.constant 0 : index
    %c0_22 = arith.constant 0 : index
    %19 = vector.load %arg5[%c0_21, %c0_22] : memref<64x256xf32, #tpu.memory_space<vmem>>, vector<64x256xf32>
    tpu.vector_store %arg5[%c0_21, %c0_22], %18 {strides = array<i32>} : memref<64x256xf32, #tpu.memory_space<vmem>>, vector<64x256xf32>,
    %c0_23 = arith.constant 0 : index
    %c0_24 = arith.constant 0 : index
    %c1_25 = arith.constant 1 : index
    %c0_26 = arith.constant 0 : index
    %20 = vector.load %arg1[%c0_23, %c0_24, %c1_25, %c0_26] : memref<1x36x9x4xbf16, #tpu.memory_space<vmem>>, vector<1x8x8x4xbf16>
    %21 = vector.shape_cast %20 : vector<1x8x8x4xbf16> to vector<8x8x4xbf16>
    %22 = vector.shape_cast %21 : vector<8x8x4xbf16> to vector<64x4xbf16>
    %c0_27 = arith.constant 0 : index
    %c0_28 = arith.constant 0 : index
    %23 = vector.load %arg5[%c0_27, %c0_28] : memref<64x256xf32, #tpu.memory_space<vmem>>, vector<64x256xf32>
    %c2 = arith.constant 2 : index
    %c0_29 = arith.constant 0 : index
    %c0_30 = arith.constant 0 : index
    %24 = vector.load %arg2[%c2, %c0_29, %c0_30] : memref<9x4x256xbf16, #tpu.memory_space<vmem>>, vector<1x4x256xbf16>
    %25 = vector.shape_cast %24 : vector<1x4x256xbf16> to vector<4x256xbf16>
    %cst_31 = arith.constant dense<0.000000e+00> : vector<64x256xf32>
    %26 = tpu.matmul %22, %25, %cst_31 {dimension_numbers = #tpu.dot_dimension_numbers<[1], [0], [0], [1], [0, 0, 1, 1], [], []>} : vector<64x4xbf16>, vector<4x256xbf16>, vector<64x256xf32> -> vector<64x256xf32>
    %27 = arith.addf %23, %26 : vector<64x256xf32>
    %c0_32 = arith.constant 0 : index
    %c0_33 = arith.constant 0 : index
    %28 = vector.load %arg5[%c0_32, %c0_33] : memref<64x256xf32, #tpu.memory_space<vmem>>, vector<64x256xf32>
    tpu.vector_store %arg5[%c0_32, %c0_33], %27 {strides = array<i32>} : memref<64x256xf32, #tpu.memory_space<vmem>>, vector<64x256xf32>,
    %c0_34 = arith.constant 0 : index
    %c18 = arith.constant 18 : index
    %c0_35 = arith.constant 0 : index
    %c0_36 = arith.constant 0 : index
    %29 = vector.load %arg1[%c0_34, %c18, %c0_35, %c0_36] : memref<1x36x9x4xbf16, #tpu.memory_space<vmem>>, vector<1x8x8x4xbf16>
    %30 = vector.shape_cast %29 : vector<1x8x8x4xbf16> to vector<8x8x4xbf16>
    %31 = vector.shape_cast %30 : vector<8x8x4xbf16> to vector<64x4xbf16>
    %c0_37 = arith.constant 0 : index
    %c0_38 = arith.constant 0 : index
    %32 = vector.load %arg5[%c0_37, %c0_38] : memref<64x256xf32, #tpu.memory_space<vmem>>, vector<64x256xf32>
    %c3 = arith.constant 3 : index
    %c0_39 = arith.constant 0 : index
    %c0_40 = arith.constant 0 : index
    %33 = vector.load %arg2[%c3, %c0_39, %c0_40] : memref<9x4x256xbf16, #tpu.memory_space<vmem>>, vector<1x4x256xbf16>
    %34 = vector.shape_cast %33 : vector<1x4x256xbf16> to vector<4x256xbf16>
    %cst_41 = arith.constant dense<0.000000e+00> : vector<64x256xf32>
    %35 = tpu.matmul %31, %34, %cst_41 {dimension_numbers = #tpu.dot_dimension_numbers<[1], [0], [0], [1], [0, 0, 1, 1], [], []>} : vector<64x4xbf16>, vector<4x256xbf16>, vector<64x256xf32> -> vector<64x256xf32>
    %36 = arith.addf %32, %35 : vector<64x256xf32>
    %c0_42 = arith.constant 0 : index
    %c0_43 = arith.constant 0 : index
    %37 = vector.load %arg5[%c0_42, %c0_43] : memref<64x256xf32, #tpu.memory_space<vmem>>, vector<64x256xf32>
    tpu.vector_store %arg5[%c0_42, %c0_43], %36 {strides = array<i32>} : memref<64x256xf32, #tpu.memory_space<vmem>>, vector<64x256xf32>,
    %c0_44 = arith.constant 0 : index
    %c27 = arith.constant 27 : index
    %c0_45 = arith.constant 0 : index
    %c0_46 = arith.constant 0 : index
    %38 = vector.load %arg1[%c0_44, %c27, %c0_45, %c0_46] : memref<1x36x9x4xbf16, #tpu.memory_space<vmem>>, vector<1x8x8x4xbf16>
    %39 = vector.shape_cast %38 : vector<1x8x8x4xbf16> to vector<8x8x4xbf16>
    %40 = vector.shape_cast %39 : vector<8x8x4xbf16> to vector<64x4xbf16>
    %c0_47 = arith.constant 0 : index
    %c0_48 = arith.constant 0 : index
    %41 = vector.load %arg5[%c0_47, %c0_48] : memref<64x256xf32, #tpu.memory_space<vmem>>, vector<64x256xf32>
    %c4 = arith.constant 4 : index
    %c0_49 = arith.constant 0 : index
    %c0_50 = arith.constant 0 : index
    %42 = vector.load %arg2[%c4, %c0_49, %c0_50] : memref<9x4x256xbf16, #tpu.memory_space<vmem>>, vector<1x4x256xbf16>
    %43 = vector.shape_cast %42 : vector<1x4x256xbf16> to vector<4x256xbf16>
    %cst_51 = arith.constant dense<0.000000e+00> : vector<64x256xf32>
    %44 = tpu.matmul %40, %43, %cst_51 {dimension_numbers = #tpu.dot_dimension_numbers<[1], [0], [0], [1], [0, 0, 1, 1], [], []>} : vector<64x4xbf16>, vector<4x256xbf16>, vector<64x256xf32> -> vector<64x256xf32>
    %45 = arith.addf %41, %44 : vector<64x256xf32>
    %c0_52 = arith.constant 0 : index
    %c0_53 = arith.constant 0 : index
    %46 = vector.load %arg5[%c0_52, %c0_53] : memref<64x256xf32, #tpu.memory_space<vmem>>, vector<64x256xf32>
    tpu.vector_store %arg5[%c0_52, %c0_53], %45 {strides = array<i32>} : memref<64x256xf32, #tpu.memory_space<vmem>>, vector<64x256xf32>,
    %c0_54 = arith.constant 0 : index
    %c18_55 = arith.constant 18 : index
    %c1_56 = arith.constant 1 : index
    %c0_57 = arith.constant 0 : index
    %47 = vector.load %arg1[%c0_54, %c18_55, %c1_56, %c0_57] : memref<1x36x9x4xbf16, #tpu.memory_space<vmem>>, vector<1x8x8x4xbf16>
    %48 = vector.shape_cast %47 : vector<1x8x8x4xbf16> to vector<8x8x4xbf16>
    %49 = vector.shape_cast %48 : vector<8x8x4xbf16> to vector<64x4xbf16>
    %c0_58 = arith.constant 0 : index
    %c0_59 = arith.constant 0 : index
    %50 = vector.load %arg5[%c0_58, %c0_59] : memref<64x256xf32, #tpu.memory_space<vmem>>, vector<64x256xf32>
    %c5 = arith.constant 5 : index
    %c0_60 = arith.constant 0 : index
    %c0_61 = arith.constant 0 : index
    %51 = vector.load %arg2[%c5, %c0_60, %c0_61] : memref<9x4x256xbf16, #tpu.memory_space<vmem>>, vector<1x4x256xbf16>
    %52 = vector.shape_cast %51 : vector<1x4x256xbf16> to vector<4x256xbf16>
    %cst_62 = arith.constant dense<0.000000e+00> : vector<64x256xf32>
    %53 = tpu.matmul %49, %52, %cst_62 {dimension_numbers = #tpu.dot_dimension_numbers<[1], [0], [0], [1], [0, 0, 1, 1], [], []>} : vector<64x4xbf16>, vector<4x256xbf16>, vector<64x256xf32> -> vector<64x256xf32>
    %54 = arith.addf %50, %53 : vector<64x256xf32>
    %c0_63 = arith.constant 0 : index
    %c0_64 = arith.constant 0 : index
    %55 = vector.load %arg5[%c0_63, %c0_64] : memref<64x256xf32, #tpu.memory_space<vmem>>, vector<64x256xf32>
    tpu.vector_store %arg5[%c0_63, %c0_64], %54 {strides = array<i32>} : memref<64x256xf32, #tpu.memory_space<vmem>>, vector<64x256xf32>,
    %c0_65 = arith.constant 0 : index
    %c1_66 = arith.constant 1 : index
    %c0_67 = arith.constant 0 : index
    %c0_68 = arith.constant 0 : index
    %56 = vector.load %arg1[%c0_65, %c1_66, %c0_67, %c0_68] : memref<1x36x9x4xbf16, #tpu.memory_space<vmem>>, vector<1x8x8x4xbf16>
    %57 = vector.shape_cast %56 : vector<1x8x8x4xbf16> to vector<8x8x4xbf16>
    %58 = vector.shape_cast %57 : vector<8x8x4xbf16> to vector<64x4xbf16>
    %c0_69 = arith.constant 0 : index
    %c0_70 = arith.constant 0 : index
    %59 = vector.load %arg5[%c0_69, %c0_70] : memref<64x256xf32, #tpu.memory_space<vmem>>, vector<64x256xf32>
    %c6 = arith.constant 6 : index
    %c0_71 = arith.constant 0 : index
    %c0_72 = arith.constant 0 : index
    %60 = vector.load %arg2[%c6, %c0_71, %c0_72] : memref<9x4x256xbf16, #tpu.memory_space<vmem>>, vector<1x4x256xbf16>
    %61 = vector.shape_cast %60 : vector<1x4x256xbf16> to vector<4x256xbf16>
    %cst_73 = arith.constant dense<0.000000e+00> : vector<64x256xf32>
    %62 = tpu.matmul %58, %61, %cst_73 {dimension_numbers = #tpu.dot_dimension_numbers<[1], [0], [0], [1], [0, 0, 1, 1], [], []>} : vector<64x4xbf16>, vector<4x256xbf16>, vector<64x256xf32> -> vector<64x256xf32>
    %63 = arith.addf %59, %62 : vector<64x256xf32>
    %c0_74 = arith.constant 0 : index
    %c0_75 = arith.constant 0 : index
    %64 = vector.load %arg5[%c0_74, %c0_75] : memref<64x256xf32, #tpu.memory_space<vmem>>, vector<64x256xf32>
    tpu.vector_store %arg5[%c0_74, %c0_75], %63 {strides = array<i32>} : memref<64x256xf32, #tpu.memory_space<vmem>>, vector<64x256xf32>,
    %c0_76 = arith.constant 0 : index
    %c10 = arith.constant 10 : index
    %c0_77 = arith.constant 0 : index
    %c0_78 = arith.constant 0 : index
    %65 = vector.load %arg1[%c0_76, %c10, %c0_77, %c0_78] : memref<1x36x9x4xbf16, #tpu.memory_space<vmem>>, vector<1x8x8x4xbf16>
    %66 = vector.shape_cast %65 : vector<1x8x8x4xbf16> to vector<8x8x4xbf16>
    %67 = vector.shape_cast %66 : vector<8x8x4xbf16> to vector<64x4xbf16>
    %c0_79 = arith.constant 0 : index
    %c0_80 = arith.constant 0 : index
    %68 = vector.load %arg5[%c0_79, %c0_80] : memref<64x256xf32, #tpu.memory_space<vmem>>, vector<64x256xf32>
    %c7 = arith.constant 7 : index
    %c0_81 = arith.constant 0 : index
    %c0_82 = arith.constant 0 : index
    %69 = vector.load %arg2[%c7, %c0_81, %c0_82] : memref<9x4x256xbf16, #tpu.memory_space<vmem>>, vector<1x4x256xbf16>
    %70 = vector.shape_cast %69 : vector<1x4x256xbf16> to vector<4x256xbf16>
    %cst_83 = arith.constant dense<0.000000e+00> : vector<64x256xf32>
    %71 = tpu.matmul %67, %70, %cst_83 {dimension_numbers = #tpu.dot_dimension_numbers<[1], [0], [0], [1], [0, 0, 1, 1], [], []>} : vector<64x4xbf16>, vector<4x256xbf16>, vector<64x256xf32> -> vector<64x256xf32>
    %72 = arith.addf %68, %71 : vector<64x256xf32>
    %c0_84 = arith.constant 0 : index
    %c0_85 = arith.constant 0 : index
    %73 = vector.load %arg5[%c0_84, %c0_85] : memref<64x256xf32, #tpu.memory_space<vmem>>, vector<64x256xf32>
    tpu.vector_store %arg5[%c0_84, %c0_85], %72 {strides = array<i32>} : memref<64x256xf32, #tpu.memory_space<vmem>>, vector<64x256xf32>,
    %c0_86 = arith.constant 0 : index
    %c1_87 = arith.constant 1 : index
    %c1_88 = arith.constant 1 : index
    %c0_89 = arith.constant 0 : index
    %74 = vector.load %arg1[%c0_86, %c1_87, %c1_88, %c0_89] : memref<1x36x9x4xbf16, #tpu.memory_space<vmem>>, vector<1x8x8x4xbf16>
    %75 = vector.shape_cast %74 : vector<1x8x8x4xbf16> to vector<8x8x4xbf16>
    %76 = vector.shape_cast %75 : vector<8x8x4xbf16> to vector<64x4xbf16>
    %c0_90 = arith.constant 0 : index
    %c0_91 = arith.constant 0 : index
    %77 = vector.load %arg5[%c0_90, %c0_91] : memref<64x256xf32, #tpu.memory_space<vmem>>, vector<64x256xf32>
    %c8 = arith.constant 8 : index
    %c0_92 = arith.constant 0 : index
    %c0_93 = arith.constant 0 : index
    %78 = vector.load %arg2[%c8, %c0_92, %c0_93] : memref<9x4x256xbf16, #tpu.memory_space<vmem>>, vector<1x4x256xbf16>
    %79 = vector.shape_cast %78 : vector<1x4x256xbf16> to vector<4x256xbf16>
    %cst_94 = arith.constant dense<0.000000e+00> : vector<64x256xf32>
    %80 = tpu.matmul %76, %79, %cst_94 {dimension_numbers = #tpu.dot_dimension_numbers<[1], [0], [0], [1], [0, 0, 1, 1], [], []>} : vector<64x4xbf16>, vector<4x256xbf16>, vector<64x256xf32> -> vector<64x256xf32>
    %81 = arith.addf %77, %80 : vector<64x256xf32>
    %c0_95 = arith.constant 0 : index
    %c0_96 = arith.constant 0 : index
    %82 = vector.load %arg5[%c0_95, %c0_96] : memref<64x256xf32, #tpu.memory_space<vmem>>, vector<64x256xf32>
    tpu.vector_store %arg5[%c0_95, %c0_96], %81 {strides = array<i32>} : memref<64x256xf32, #tpu.memory_space<vmem>>, vector<64x256xf32>,
    %c0_97 = arith.constant 0 : index
    %c0_98 = arith.constant 0 : index
    %83 = vector.load %arg5[%c0_97, %c0_98] : memref<64x256xf32, #tpu.memory_space<vmem>>, vector<64x256xf32>
    %84 = arith.truncf %83 : vector<64x256xf32> to vector<64x256xbf16>
    %c0_99 = arith.constant 0 : index
    %c0_100 = arith.constant 0 : index
    %c0_101 = arith.constant 0 : index
    %85 = vector.load %arg3[%c0_99, %c0_100, %c0_101] : memref<1x64x256xbf16, #tpu.memory_space<vmem>>, vector<1x64x256xbf16>
    %86 = vector.shape_cast %85 : vector<1x64x256xbf16> to vector<64x256xbf16>
    %87 = vector.shape_cast %84 : vector<64x256xbf16> to vector<1x64x256xbf16>
    tpu.vector_store %arg3[%c0_99, %c0_100, %c0_101], %87 {strides = array<i32>} : memref<1x64x256xbf16, #tpu.memory_space<vmem>>, vector<1x64x256xbf16>,
    %cst_102 = arith.constant dense<0.000000e+00> : vector<256xf32>
    %88 = vector.multi_reduction <add>, %83, %cst_102 [0] : vector<64x256xf32> to vector<256xf32>
    %89 = vector.shape_cast %88 : vector<256xf32> to vector<1x256xf32>
    %c0_103 = arith.constant 0 : index
    %c0_104 = arith.constant 0 : index
    %c0_105 = arith.constant 0 : index
    %90 = vector.load %arg4[%c0_103, %c0_104, %c0_105] : memref<1x2x256xf32, #tpu.memory_space<vmem>>, vector<1x1x256xf32>
    %91 = vector.shape_cast %90 : vector<1x1x256xf32> to vector<1x256xf32>
    %92 = vector.shape_cast %89 : vector<1x256xf32> to vector<1x1x256xf32>
    tpu.vector_store %arg4[%c0_103, %c0_104, %c0_105], %92 {strides = array<i32>} : memref<1x2x256xf32, #tpu.memory_space<vmem>>, vector<1x1x256xf32>,
    %93 = arith.mulf %83, %83 : vector<64x256xf32>
    %cst_106 = arith.constant dense<0.000000e+00> : vector<256xf32>
    %94 = vector.multi_reduction <add>, %93, %cst_106 [0] : vector<64x256xf32> to vector<256xf32>
    %95 = vector.shape_cast %94 : vector<256xf32> to vector<1x256xf32>
    %c0_107 = arith.constant 0 : index
    %c1_108 = arith.constant 1 : index
    %c0_109 = arith.constant 0 : index
    %96 = vector.load %arg4[%c0_107, %c1_108, %c0_109] : memref<1x2x256xf32, #tpu.memory_space<vmem>>, vector<1x1x256xf32>
    %97 = vector.shape_cast %96 : vector<1x1x256xf32> to vector<1x256xf32>
    %98 = vector.shape_cast %95 : vector<1x256xf32> to vector<1x1x256xf32>
    tpu.vector_store %arg4[%c0_107, %c1_108, %c0_109], %98 {strides = array<i32>} : memref<1x2x256xf32, #tpu.memory_space<vmem>>, vector<1x1x256xf32>,
    return
  }
  func.func @transform_0(%arg0: i32) -> (i32, i32, i32, i32) {
    %c0_i32 = arith.constant 0 : i32
    %c0_i32_0 = arith.constant 0 : i32
    %c0_i32_1 = arith.constant 0 : i32
    %c0_i32_2 = arith.constant 0 : i32
    return %arg0, %c0_i32, %c0_i32_0, %c0_i32_1 : i32, i32, i32, i32
  }
  func.func @transform_1(%arg0: i32) -> (i32, i32, i32) {
    %c0_i32 = arith.constant 0 : i32
    %c0_i32_0 = arith.constant 0 : i32
    %c0_i32_1 = arith.constant 0 : i32
    %c0_i32_2 = arith.constant 0 : i32
    return %c0_i32, %c0_i32_0, %c0_i32_1 : i32, i32, i32
  }
  func.func @transform_2(%arg0: i32) -> (i32, i32, i32) {
    %c0_i32 = arith.constant 0 : i32
    %c0_i32_0 = arith.constant 0 : i32
    %c0_i32_1 = arith.constant 0 : i32
    return %arg0, %c0_i32, %c0_i32_0 : i32, i32, i32
  }
  func.func @transform_3(%arg0: i32) -> (i32, i32, i32) {
    %c0_i32 = arith.constant 0 : i32
    %c0_i32_0 = arith.constant 0 : i32
    %c0_i32_1 = arith.constant 0 : i32
    return %arg0, %c0_i32, %c0_i32_0 : i32, i32, i32
  }
}

module attributes {stable_mosaic.version = 11 : i64} {
  func.func @_bn_split_kernel(%arg0: i32, %arg1: memref<1x64x256xbf16, #tpu.memory_space<vmem>>, %arg2: memref<2x256xf32, #tpu.memory_space<vmem>>, %arg3: memref<1x64x8xbf16, #tpu.memory_space<vmem>>, %arg4: memref<1x64x8xbf16, #tpu.memory_space<vmem>>) attributes {dimension_semantics = [#tpu.dimension_semantics<parallel>], iteration_bounds = array<i64: 2>, scalar_prefetch = 0 : i64, scratch_operands = 0 : i64, tpu.core_type = #tpu.core_type<tc>, window_params = [{transform_indices = @transform_0, window_bounds = array<i64: 1, 64, 256>}, {pipeline_mode = #tpu.pipeline_mode<synchronous>, transform_indices = @transform_1, window_bounds = array<i64: 2, 256>}, {transform_indices = @transform_2, window_bounds = array<i64: 1, 64, 8>}, {transform_indices = @transform_3, window_bounds = array<i64: 1, 64, 8>}]} {
    %c0 = arith.constant 0 : index
    %c0_0 = arith.constant 0 : index
    %c0_1 = arith.constant 0 : index
    %0 = vector.load %arg1[%c0, %c0_0, %c0_1] : memref<1x64x256xbf16, #tpu.memory_space<vmem>>, vector<1x64x256xbf16>
    %1 = vector.shape_cast %0 : vector<1x64x256xbf16> to vector<64x256xbf16>
    %2 = arith.extf %1 : vector<64x256xbf16> to vector<64x256xf32>
    %c0_2 = arith.constant 0 : index
    %c0_3 = arith.constant 0 : index
    %3 = vector.load %arg2[%c0_2, %c0_3] : memref<2x256xf32, #tpu.memory_space<vmem>>, vector<1x256xf32>
    %4 = vector.broadcast %3 : vector<1x256xf32> to vector<64x256xf32>
    %5 = arith.mulf %2, %4 : vector<64x256xf32>
    %c1 = arith.constant 1 : index
    %c0_4 = arith.constant 0 : index
    %6 = vector.load %arg2[%c1, %c0_4] : memref<2x256xf32, #tpu.memory_space<vmem>>, vector<1x256xf32>
    %7 = vector.broadcast %6 : vector<1x256xf32> to vector<64x256xf32>
    %8 = arith.addf %5, %7 : vector<64x256xf32>
    %9 = vector.extract_strided_slice %8 {offsets = [0, 0], sizes = [64, 8], strides = [1, 1]} : vector<64x256xf32> to vector<64x8xf32>
    %cst = arith.constant 0.000000e+00 : f32
    %10 = vector.broadcast %cst : f32 to vector<64x8xf32>
    %11 = arith.maximumf %9, %10 : vector<64x8xf32>
    %12 = arith.truncf %11 : vector<64x8xf32> to vector<64x8xbf16>
    %c0_5 = arith.constant 0 : index
    %c0_6 = arith.constant 0 : index
    %c0_7 = arith.constant 0 : index
    %13 = vector.load %arg3[%c0_5, %c0_6, %c0_7] : memref<1x64x8xbf16, #tpu.memory_space<vmem>>, vector<1x64x8xbf16>
    %14 = vector.shape_cast %13 : vector<1x64x8xbf16> to vector<64x8xbf16>
    %15 = vector.shape_cast %12 : vector<64x8xbf16> to vector<1x64x8xbf16>
    tpu.vector_store %arg3[%c0_5, %c0_6, %c0_7], %15 {strides = array<i32>} : memref<1x64x8xbf16, #tpu.memory_space<vmem>>, vector<1x64x8xbf16>,
    %16 = vector.extract_strided_slice %8 {offsets = [0, 128], sizes = [64, 8], strides = [1, 1]} : vector<64x256xf32> to vector<64x8xf32>
    %17 = arith.truncf %16 : vector<64x8xf32> to vector<64x8xbf16>
    %c0_8 = arith.constant 0 : index
    %c0_9 = arith.constant 0 : index
    %c0_10 = arith.constant 0 : index
    %18 = vector.load %arg4[%c0_8, %c0_9, %c0_10] : memref<1x64x8xbf16, #tpu.memory_space<vmem>>, vector<1x64x8xbf16>
    %19 = vector.shape_cast %18 : vector<1x64x8xbf16> to vector<64x8xbf16>
    %20 = vector.shape_cast %17 : vector<64x8xbf16> to vector<1x64x8xbf16>
    tpu.vector_store %arg4[%c0_8, %c0_9, %c0_10], %20 {strides = array<i32>} : memref<1x64x8xbf16, #tpu.memory_space<vmem>>, vector<1x64x8xbf16>,
    return
  }
  func.func @transform_0(%arg0: i32) -> (i32, i32, i32) {
    %c0_i32 = arith.constant 0 : i32
    %c0_i32_0 = arith.constant 0 : i32
    %c0_i32_1 = arith.constant 0 : i32
    return %arg0, %c0_i32, %c0_i32_0 : i32, i32, i32
  }
  func.func @transform_1(%arg0: i32) -> (i32, i32) {
    %c0_i32 = arith.constant 0 : i32
    %c0_i32_0 = arith.constant 0 : i32
    %c0_i32_1 = arith.constant 0 : i32
    return %c0_i32, %c0_i32_0 : i32, i32
  }
  func.func @transform_2(%arg0: i32) -> (i32, i32, i32) {
    %c0_i32 = arith.constant 0 : i32
    %c0_i32_0 = arith.constant 0 : i32
    %c0_i32_1 = arith.constant 0 : i32
    return %arg0, %c0_i32, %c0_i32_0 : i32, i32, i32
  }
  func.func @transform_3(%arg0: i32) -> (i32, i32, i32) {
    %c0_i32 = arith.constant 0 : i32
    %c0_i32_0 = arith.constant 0 : i32
    %c0_i32_1 = arith.constant 0 : i32
    return %arg0, %c0_i32, %c0_i32_0 : i32, i32, i32
  }
}

module attributes {stable_mosaic.version = 11 : i64} {
  func.func @_conv_stats_kernel(%arg0: i32, %arg1: memref<1x10x10x8xbf16, #tpu.memory_space<vmem>>, %arg2: memref<9x8x128xbf16, #tpu.memory_space<vmem>>, %arg3: memref<1x64x128xbf16, #tpu.memory_space<vmem>>, %arg4: memref<1x2x128xf32, #tpu.memory_space<vmem>>, %arg5: memref<64x128xf32, #tpu.memory_space<vmem>>) attributes {dimension_semantics = [#tpu.dimension_semantics<parallel>], iteration_bounds = array<i64: 2>, scalar_prefetch = 0 : i64, scratch_operands = 1 : i64, tpu.core_type = #tpu.core_type<tc>, window_params = [{transform_indices = @transform_0, window_bounds = array<i64: 1, 10, 10, 8>}, {pipeline_mode = #tpu.pipeline_mode<synchronous>, transform_indices = @transform_1, window_bounds = array<i64: 9, 8, 128>}, {transform_indices = @transform_2, window_bounds = array<i64: 1, 64, 128>}, {transform_indices = @transform_3, window_bounds = array<i64: 1, 2, 128>}]} {
    %cst = arith.constant 0.000000e+00 : f32
    %0 = vector.broadcast %cst : f32 to vector<64x128xf32>
    %c0 = arith.constant 0 : index
    %c0_0 = arith.constant 0 : index
    %1 = vector.load %arg5[%c0, %c0_0] : memref<64x128xf32, #tpu.memory_space<vmem>>, vector<64x128xf32>
    tpu.vector_store %arg5[%c0, %c0_0], %0 {strides = array<i32>} : memref<64x128xf32, #tpu.memory_space<vmem>>, vector<64x128xf32>,
    %c0_1 = arith.constant 0 : index
    %c0_2 = arith.constant 0 : index
    %c0_3 = arith.constant 0 : index
    %c0_4 = arith.constant 0 : index
    %2 = vector.load %arg1[%c0_1, %c0_2, %c0_3, %c0_4] : memref<1x10x10x8xbf16, #tpu.memory_space<vmem>>, vector<1x8x8x8xbf16>
    %3 = vector.shape_cast %2 : vector<1x8x8x8xbf16> to vector<8x8x8xbf16>
    %4 = vector.shape_cast %3 : vector<8x8x8xbf16> to vector<64x8xbf16>
    %c0_5 = arith.constant 0 : index
    %c0_6 = arith.constant 0 : index
    %5 = vector.load %arg5[%c0_5, %c0_6] : memref<64x128xf32, #tpu.memory_space<vmem>>, vector<64x128xf32>
    %c0_7 = arith.constant 0 : index
    %c0_8 = arith.constant 0 : index
    %c0_9 = arith.constant 0 : index
    %6 = vector.load %arg2[%c0_7, %c0_8, %c0_9] : memref<9x8x128xbf16, #tpu.memory_space<vmem>>, vector<1x8x128xbf16>
    %7 = vector.shape_cast %6 : vector<1x8x128xbf16> to vector<8x128xbf16>
    %cst_10 = arith.constant dense<0.000000e+00> : vector<64x128xf32>
    %8 = tpu.matmul %4, %7, %cst_10 {dimension_numbers = #tpu.dot_dimension_numbers<[1], [0], [0], [1], [0, 0, 1, 1], [], []>} : vector<64x8xbf16>, vector<8x128xbf16>, vector<64x128xf32> -> vector<64x128xf32>
    %9 = arith.addf %5, %8 : vector<64x128xf32>
    %c0_11 = arith.constant 0 : index
    %c0_12 = arith.constant 0 : index
    %10 = vector.load %arg5[%c0_11, %c0_12] : memref<64x128xf32, #tpu.memory_space<vmem>>, vector<64x128xf32>
    tpu.vector_store %arg5[%c0_11, %c0_12], %9 {strides = array<i32>} : memref<64x128xf32, #tpu.memory_space<vmem>>, vector<64x128xf32>,
    %c0_13 = arith.constant 0 : index
    %c0_14 = arith.constant 0 : index
    %c1 = arith.constant 1 : index
    %c0_15 = arith.constant 0 : index
    %11 = vector.load %arg1[%c0_13, %c0_14, %c1, %c0_15] : memref<1x10x10x8xbf16, #tpu.memory_space<vmem>>, vector<1x8x8x8xbf16>
    %12 = vector.shape_cast %11 : vector<1x8x8x8xbf16> to vector<8x8x8xbf16>
    %13 = vector.shape_cast %12 : vector<8x8x8xbf16> to vector<64x8xbf16>
    %c0_16 = arith.constant 0 : index
    %c0_17 = arith.constant 0 : index
    %14 = vector.load %arg5[%c0_16, %c0_17] : memref<64x128xf32, #tpu.memory_space<vmem>>, vector<64x128xf32>
    %c1_18 = arith.constant 1 : index
    %c0_19 = arith.constant 0 : index
    %c0_20 = arith.constant 0 : index
    %15 = vector.load %arg2[%c1_18, %c0_19, %c0_20] : memref<9x8x128xbf16, #tpu.memory_space<vmem>>, vector<1x8x128xbf16>
    %16 = vector.shape_cast %15 : vector<1x8x128xbf16> to vector<8x128xbf16>
    %cst_21 = arith.constant dense<0.000000e+00> : vector<64x128xf32>
    %17 = tpu.matmul %13, %16, %cst_21 {dimension_numbers = #tpu.dot_dimension_numbers<[1], [0], [0], [1], [0, 0, 1, 1], [], []>} : vector<64x8xbf16>, vector<8x128xbf16>, vector<64x128xf32> -> vector<64x128xf32>
    %18 = arith.addf %14, %17 : vector<64x128xf32>
    %c0_22 = arith.constant 0 : index
    %c0_23 = arith.constant 0 : index
    %19 = vector.load %arg5[%c0_22, %c0_23] : memref<64x128xf32, #tpu.memory_space<vmem>>, vector<64x128xf32>
    tpu.vector_store %arg5[%c0_22, %c0_23], %18 {strides = array<i32>} : memref<64x128xf32, #tpu.memory_space<vmem>>, vector<64x128xf32>,
    %c0_24 = arith.constant 0 : index
    %c0_25 = arith.constant 0 : index
    %c2 = arith.constant 2 : index
    %c0_26 = arith.constant 0 : index
    %20 = vector.load %arg1[%c0_24, %c0_25, %c2, %c0_26] : memref<1x10x10x8xbf16, #tpu.memory_space<vmem>>, vector<1x8x8x8xbf16>
    %21 = vector.shape_cast %20 : vector<1x8x8x8xbf16> to vector<8x8x8xbf16>
    %22 = vector.shape_cast %21 : vector<8x8x8xbf16> to vector<64x8xbf16>
    %c0_27 = arith.constant 0 : index
    %c0_28 = arith.constant 0 : index
    %23 = vector.load %arg5[%c0_27, %c0_28] : memref<64x128xf32, #tpu.memory_space<vmem>>, vector<64x128xf32>
    %c2_29 = arith.constant 2 : index
    %c0_30 = arith.constant 0 : index
    %c0_31 = arith.constant 0 : index
    %24 = vector.load %arg2[%c2_29, %c0_30, %c0_31] : memref<9x8x128xbf16, #tpu.memory_space<vmem>>, vector<1x8x128xbf16>
    %25 = vector.shape_cast %24 : vector<1x8x128xbf16> to vector<8x128xbf16>
    %cst_32 = arith.constant dense<0.000000e+00> : vector<64x128xf32>
    %26 = tpu.matmul %22, %25, %cst_32 {dimension_numbers = #tpu.dot_dimension_numbers<[1], [0], [0], [1], [0, 0, 1, 1], [], []>} : vector<64x8xbf16>, vector<8x128xbf16>, vector<64x128xf32> -> vector<64x128xf32>
    %27 = arith.addf %23, %26 : vector<64x128xf32>
    %c0_33 = arith.constant 0 : index
    %c0_34 = arith.constant 0 : index
    %28 = vector.load %arg5[%c0_33, %c0_34] : memref<64x128xf32, #tpu.memory_space<vmem>>, vector<64x128xf32>
    tpu.vector_store %arg5[%c0_33, %c0_34], %27 {strides = array<i32>} : memref<64x128xf32, #tpu.memory_space<vmem>>, vector<64x128xf32>,
    %c0_35 = arith.constant 0 : index
    %c1_36 = arith.constant 1 : index
    %c0_37 = arith.constant 0 : index
    %c0_38 = arith.constant 0 : index
    %29 = vector.load %arg1[%c0_35, %c1_36, %c0_37, %c0_38] : memref<1x10x10x8xbf16, #tpu.memory_space<vmem>>, vector<1x8x8x8xbf16>
    %30 = vector.shape_cast %29 : vector<1x8x8x8xbf16> to vector<8x8x8xbf16>
    %31 = vector.shape_cast %30 : vector<8x8x8xbf16> to vector<64x8xbf16>
    %c0_39 = arith.constant 0 : index
    %c0_40 = arith.constant 0 : index
    %32 = vector.load %arg5[%c0_39, %c0_40] : memref<64x128xf32, #tpu.memory_space<vmem>>, vector<64x128xf32>
    %c3 = arith.constant 3 : index
    %c0_41 = arith.constant 0 : index
    %c0_42 = arith.constant 0 : index
    %33 = vector.load %arg2[%c3, %c0_41, %c0_42] : memref<9x8x128xbf16, #tpu.memory_space<vmem>>, vector<1x8x128xbf16>
    %34 = vector.shape_cast %33 : vector<1x8x128xbf16> to vector<8x128xbf16>
    %cst_43 = arith.constant dense<0.000000e+00> : vector<64x128xf32>
    %35 = tpu.matmul %31, %34, %cst_43 {dimension_numbers = #tpu.dot_dimension_numbers<[1], [0], [0], [1], [0, 0, 1, 1], [], []>} : vector<64x8xbf16>, vector<8x128xbf16>, vector<64x128xf32> -> vector<64x128xf32>
    %36 = arith.addf %32, %35 : vector<64x128xf32>
    %c0_44 = arith.constant 0 : index
    %c0_45 = arith.constant 0 : index
    %37 = vector.load %arg5[%c0_44, %c0_45] : memref<64x128xf32, #tpu.memory_space<vmem>>, vector<64x128xf32>
    tpu.vector_store %arg5[%c0_44, %c0_45], %36 {strides = array<i32>} : memref<64x128xf32, #tpu.memory_space<vmem>>, vector<64x128xf32>,
    %c0_46 = arith.constant 0 : index
    %c1_47 = arith.constant 1 : index
    %c1_48 = arith.constant 1 : index
    %c0_49 = arith.constant 0 : index
    %38 = vector.load %arg1[%c0_46, %c1_47, %c1_48, %c0_49] : memref<1x10x10x8xbf16, #tpu.memory_space<vmem>>, vector<1x8x8x8xbf16>
    %39 = vector.shape_cast %38 : vector<1x8x8x8xbf16> to vector<8x8x8xbf16>
    %40 = vector.shape_cast %39 : vector<8x8x8xbf16> to vector<64x8xbf16>
    %c0_50 = arith.constant 0 : index
    %c0_51 = arith.constant 0 : index
    %41 = vector.load %arg5[%c0_50, %c0_51] : memref<64x128xf32, #tpu.memory_space<vmem>>, vector<64x128xf32>
    %c4 = arith.constant 4 : index
    %c0_52 = arith.constant 0 : index
    %c0_53 = arith.constant 0 : index
    %42 = vector.load %arg2[%c4, %c0_52, %c0_53] : memref<9x8x128xbf16, #tpu.memory_space<vmem>>, vector<1x8x128xbf16>
    %43 = vector.shape_cast %42 : vector<1x8x128xbf16> to vector<8x128xbf16>
    %cst_54 = arith.constant dense<0.000000e+00> : vector<64x128xf32>
    %44 = tpu.matmul %40, %43, %cst_54 {dimension_numbers = #tpu.dot_dimension_numbers<[1], [0], [0], [1], [0, 0, 1, 1], [], []>} : vector<64x8xbf16>, vector<8x128xbf16>, vector<64x128xf32> -> vector<64x128xf32>
    %45 = arith.addf %41, %44 : vector<64x128xf32>
    %c0_55 = arith.constant 0 : index
    %c0_56 = arith.constant 0 : index
    %46 = vector.load %arg5[%c0_55, %c0_56] : memref<64x128xf32, #tpu.memory_space<vmem>>, vector<64x128xf32>
    tpu.vector_store %arg5[%c0_55, %c0_56], %45 {strides = array<i32>} : memref<64x128xf32, #tpu.memory_space<vmem>>, vector<64x128xf32>,
    %c0_57 = arith.constant 0 : index
    %c1_58 = arith.constant 1 : index
    %c2_59 = arith.constant 2 : index
    %c0_60 = arith.constant 0 : index
    %47 = vector.load %arg1[%c0_57, %c1_58, %c2_59, %c0_60] : memref<1x10x10x8xbf16, #tpu.memory_space<vmem>>, vector<1x8x8x8xbf16>
    %48 = vector.shape_cast %47 : vector<1x8x8x8xbf16> to vector<8x8x8xbf16>
    %49 = vector.shape_cast %48 : vector<8x8x8xbf16> to vector<64x8xbf16>
    %c0_61 = arith.constant 0 : index
    %c0_62 = arith.constant 0 : index
    %50 = vector.load %arg5[%c0_61, %c0_62] : memref<64x128xf32, #tpu.memory_space<vmem>>, vector<64x128xf32>
    %c5 = arith.constant 5 : index
    %c0_63 = arith.constant 0 : index
    %c0_64 = arith.constant 0 : index
    %51 = vector.load %arg2[%c5, %c0_63, %c0_64] : memref<9x8x128xbf16, #tpu.memory_space<vmem>>, vector<1x8x128xbf16>
    %52 = vector.shape_cast %51 : vector<1x8x128xbf16> to vector<8x128xbf16>
    %cst_65 = arith.constant dense<0.000000e+00> : vector<64x128xf32>
    %53 = tpu.matmul %49, %52, %cst_65 {dimension_numbers = #tpu.dot_dimension_numbers<[1], [0], [0], [1], [0, 0, 1, 1], [], []>} : vector<64x8xbf16>, vector<8x128xbf16>, vector<64x128xf32> -> vector<64x128xf32>
    %54 = arith.addf %50, %53 : vector<64x128xf32>
    %c0_66 = arith.constant 0 : index
    %c0_67 = arith.constant 0 : index
    %55 = vector.load %arg5[%c0_66, %c0_67] : memref<64x128xf32, #tpu.memory_space<vmem>>, vector<64x128xf32>
    tpu.vector_store %arg5[%c0_66, %c0_67], %54 {strides = array<i32>} : memref<64x128xf32, #tpu.memory_space<vmem>>, vector<64x128xf32>,
    %c0_68 = arith.constant 0 : index
    %c2_69 = arith.constant 2 : index
    %c0_70 = arith.constant 0 : index
    %c0_71 = arith.constant 0 : index
    %56 = vector.load %arg1[%c0_68, %c2_69, %c0_70, %c0_71] : memref<1x10x10x8xbf16, #tpu.memory_space<vmem>>, vector<1x8x8x8xbf16>
    %57 = vector.shape_cast %56 : vector<1x8x8x8xbf16> to vector<8x8x8xbf16>
    %58 = vector.shape_cast %57 : vector<8x8x8xbf16> to vector<64x8xbf16>
    %c0_72 = arith.constant 0 : index
    %c0_73 = arith.constant 0 : index
    %59 = vector.load %arg5[%c0_72, %c0_73] : memref<64x128xf32, #tpu.memory_space<vmem>>, vector<64x128xf32>
    %c6 = arith.constant 6 : index
    %c0_74 = arith.constant 0 : index
    %c0_75 = arith.constant 0 : index
    %60 = vector.load %arg2[%c6, %c0_74, %c0_75] : memref<9x8x128xbf16, #tpu.memory_space<vmem>>, vector<1x8x128xbf16>
    %61 = vector.shape_cast %60 : vector<1x8x128xbf16> to vector<8x128xbf16>
    %cst_76 = arith.constant dense<0.000000e+00> : vector<64x128xf32>
    %62 = tpu.matmul %58, %61, %cst_76 {dimension_numbers = #tpu.dot_dimension_numbers<[1], [0], [0], [1], [0, 0, 1, 1], [], []>} : vector<64x8xbf16>, vector<8x128xbf16>, vector<64x128xf32> -> vector<64x128xf32>
    %63 = arith.addf %59, %62 : vector<64x128xf32>
    %c0_77 = arith.constant 0 : index
    %c0_78 = arith.constant 0 : index
    %64 = vector.load %arg5[%c0_77, %c0_78] : memref<64x128xf32, #tpu.memory_space<vmem>>, vector<64x128xf32>
    tpu.vector_store %arg5[%c0_77, %c0_78], %63 {strides = array<i32>} : memref<64x128xf32, #tpu.memory_space<vmem>>, vector<64x128xf32>,
    %c0_79 = arith.constant 0 : index
    %c2_80 = arith.constant 2 : index
    %c1_81 = arith.constant 1 : index
    %c0_82 = arith.constant 0 : index
    %65 = vector.load %arg1[%c0_79, %c2_80, %c1_81, %c0_82] : memref<1x10x10x8xbf16, #tpu.memory_space<vmem>>, vector<1x8x8x8xbf16>
    %66 = vector.shape_cast %65 : vector<1x8x8x8xbf16> to vector<8x8x8xbf16>
    %67 = vector.shape_cast %66 : vector<8x8x8xbf16> to vector<64x8xbf16>
    %c0_83 = arith.constant 0 : index
    %c0_84 = arith.constant 0 : index
    %68 = vector.load %arg5[%c0_83, %c0_84] : memref<64x128xf32, #tpu.memory_space<vmem>>, vector<64x128xf32>
    %c7 = arith.constant 7 : index
    %c0_85 = arith.constant 0 : index
    %c0_86 = arith.constant 0 : index
    %69 = vector.load %arg2[%c7, %c0_85, %c0_86] : memref<9x8x128xbf16, #tpu.memory_space<vmem>>, vector<1x8x128xbf16>
    %70 = vector.shape_cast %69 : vector<1x8x128xbf16> to vector<8x128xbf16>
    %cst_87 = arith.constant dense<0.000000e+00> : vector<64x128xf32>
    %71 = tpu.matmul %67, %70, %cst_87 {dimension_numbers = #tpu.dot_dimension_numbers<[1], [0], [0], [1], [0, 0, 1, 1], [], []>} : vector<64x8xbf16>, vector<8x128xbf16>, vector<64x128xf32> -> vector<64x128xf32>
    %72 = arith.addf %68, %71 : vector<64x128xf32>
    %c0_88 = arith.constant 0 : index
    %c0_89 = arith.constant 0 : index
    %73 = vector.load %arg5[%c0_88, %c0_89] : memref<64x128xf32, #tpu.memory_space<vmem>>, vector<64x128xf32>
    tpu.vector_store %arg5[%c0_88, %c0_89], %72 {strides = array<i32>} : memref<64x128xf32, #tpu.memory_space<vmem>>, vector<64x128xf32>,
    %c0_90 = arith.constant 0 : index
    %c2_91 = arith.constant 2 : index
    %c2_92 = arith.constant 2 : index
    %c0_93 = arith.constant 0 : index
    %74 = vector.load %arg1[%c0_90, %c2_91, %c2_92, %c0_93] : memref<1x10x10x8xbf16, #tpu.memory_space<vmem>>, vector<1x8x8x8xbf16>
    %75 = vector.shape_cast %74 : vector<1x8x8x8xbf16> to vector<8x8x8xbf16>
    %76 = vector.shape_cast %75 : vector<8x8x8xbf16> to vector<64x8xbf16>
    %c0_94 = arith.constant 0 : index
    %c0_95 = arith.constant 0 : index
    %77 = vector.load %arg5[%c0_94, %c0_95] : memref<64x128xf32, #tpu.memory_space<vmem>>, vector<64x128xf32>
    %c8 = arith.constant 8 : index
    %c0_96 = arith.constant 0 : index
    %c0_97 = arith.constant 0 : index
    %78 = vector.load %arg2[%c8, %c0_96, %c0_97] : memref<9x8x128xbf16, #tpu.memory_space<vmem>>, vector<1x8x128xbf16>
    %79 = vector.shape_cast %78 : vector<1x8x128xbf16> to vector<8x128xbf16>
    %cst_98 = arith.constant dense<0.000000e+00> : vector<64x128xf32>
    %80 = tpu.matmul %76, %79, %cst_98 {dimension_numbers = #tpu.dot_dimension_numbers<[1], [0], [0], [1], [0, 0, 1, 1], [], []>} : vector<64x8xbf16>, vector<8x128xbf16>, vector<64x128xf32> -> vector<64x128xf32>
    %81 = arith.addf %77, %80 : vector<64x128xf32>
    %c0_99 = arith.constant 0 : index
    %c0_100 = arith.constant 0 : index
    %82 = vector.load %arg5[%c0_99, %c0_100] : memref<64x128xf32, #tpu.memory_space<vmem>>, vector<64x128xf32>
    tpu.vector_store %arg5[%c0_99, %c0_100], %81 {strides = array<i32>} : memref<64x128xf32, #tpu.memory_space<vmem>>, vector<64x128xf32>,
    %c0_101 = arith.constant 0 : index
    %c0_102 = arith.constant 0 : index
    %83 = vector.load %arg5[%c0_101, %c0_102] : memref<64x128xf32, #tpu.memory_space<vmem>>, vector<64x128xf32>
    %84 = arith.truncf %83 : vector<64x128xf32> to vector<64x128xbf16>
    %c0_103 = arith.constant 0 : index
    %c0_104 = arith.constant 0 : index
    %c0_105 = arith.constant 0 : index
    %85 = vector.load %arg3[%c0_103, %c0_104, %c0_105] : memref<1x64x128xbf16, #tpu.memory_space<vmem>>, vector<1x64x128xbf16>
    %86 = vector.shape_cast %85 : vector<1x64x128xbf16> to vector<64x128xbf16>
    %87 = vector.shape_cast %84 : vector<64x128xbf16> to vector<1x64x128xbf16>
    tpu.vector_store %arg3[%c0_103, %c0_104, %c0_105], %87 {strides = array<i32>} : memref<1x64x128xbf16, #tpu.memory_space<vmem>>, vector<1x64x128xbf16>,
    %cst_106 = arith.constant dense<0.000000e+00> : vector<128xf32>
    %88 = vector.multi_reduction <add>, %83, %cst_106 [0] : vector<64x128xf32> to vector<128xf32>
    %89 = vector.shape_cast %88 : vector<128xf32> to vector<1x128xf32>
    %c0_107 = arith.constant 0 : index
    %c0_108 = arith.constant 0 : index
    %c0_109 = arith.constant 0 : index
    %90 = vector.load %arg4[%c0_107, %c0_108, %c0_109] : memref<1x2x128xf32, #tpu.memory_space<vmem>>, vector<1x1x128xf32>
    %91 = vector.shape_cast %90 : vector<1x1x128xf32> to vector<1x128xf32>
    %92 = vector.shape_cast %89 : vector<1x128xf32> to vector<1x1x128xf32>
    tpu.vector_store %arg4[%c0_107, %c0_108, %c0_109], %92 {strides = array<i32>} : memref<1x2x128xf32, #tpu.memory_space<vmem>>, vector<1x1x128xf32>,
    %93 = arith.mulf %83, %83 : vector<64x128xf32>
    %cst_110 = arith.constant dense<0.000000e+00> : vector<128xf32>
    %94 = vector.multi_reduction <add>, %93, %cst_110 [0] : vector<64x128xf32> to vector<128xf32>
    %95 = vector.shape_cast %94 : vector<128xf32> to vector<1x128xf32>
    %c0_111 = arith.constant 0 : index
    %c1_112 = arith.constant 1 : index
    %c0_113 = arith.constant 0 : index
    %96 = vector.load %arg4[%c0_111, %c1_112, %c0_113] : memref<1x2x128xf32, #tpu.memory_space<vmem>>, vector<1x1x128xf32>
    %97 = vector.shape_cast %96 : vector<1x1x128xf32> to vector<1x128xf32>
    %98 = vector.shape_cast %95 : vector<1x128xf32> to vector<1x1x128xf32>
    tpu.vector_store %arg4[%c0_111, %c1_112, %c0_113], %98 {strides = array<i32>} : memref<1x2x128xf32, #tpu.memory_space<vmem>>, vector<1x1x128xf32>,
    return
  }
  func.func @transform_0(%arg0: i32) -> (i32, i32, i32, i32) {
    %c0_i32 = arith.constant 0 : i32
    %c0_i32_0 = arith.constant 0 : i32
    %c0_i32_1 = arith.constant 0 : i32
    %c0_i32_2 = arith.constant 0 : i32
    return %arg0, %c0_i32, %c0_i32_0, %c0_i32_1 : i32, i32, i32, i32
  }
  func.func @transform_1(%arg0: i32) -> (i32, i32, i32) {
    %c0_i32 = arith.constant 0 : i32
    %c0_i32_0 = arith.constant 0 : i32
    %c0_i32_1 = arith.constant 0 : i32
    %c0_i32_2 = arith.constant 0 : i32
    return %c0_i32, %c0_i32_0, %c0_i32_1 : i32, i32, i32
  }
  func.func @transform_2(%arg0: i32) -> (i32, i32, i32) {
    %c0_i32 = arith.constant 0 : i32
    %c0_i32_0 = arith.constant 0 : i32
    %c0_i32_1 = arith.constant 0 : i32
    return %arg0, %c0_i32, %c0_i32_0 : i32, i32, i32
  }
  func.func @transform_3(%arg0: i32) -> (i32, i32, i32) {
    %c0_i32 = arith.constant 0 : i32
    %c0_i32_0 = arith.constant 0 : i32
    %c0_i32_1 = arith.constant 0 : i32
    return %arg0, %c0_i32, %c0_i32_0 : i32, i32, i32
  }
}

module attributes {stable_mosaic.version = 11 : i64} {
  func.func @_bn_final_kernel(%arg0: i32, %arg1: memref<1x64x128xbf16, #tpu.memory_space<vmem>>, %arg2: memref<2x128xf32, #tpu.memory_space<vmem>>, %arg3: memref<1x64x8xbf16, #tpu.memory_space<vmem>>, %arg4: memref<1x64x8xf32, #tpu.memory_space<vmem>>) attributes {dimension_semantics = [#tpu.dimension_semantics<parallel>], iteration_bounds = array<i64: 2>, scalar_prefetch = 0 : i64, scratch_operands = 0 : i64, tpu.core_type = #tpu.core_type<tc>, window_params = [{transform_indices = @transform_0, window_bounds = array<i64: 1, 64, 128>}, {pipeline_mode = #tpu.pipeline_mode<synchronous>, transform_indices = @transform_1, window_bounds = array<i64: 2, 128>}, {transform_indices = @transform_2, window_bounds = array<i64: 1, 64, 8>}, {transform_indices = @transform_3, window_bounds = array<i64: 1, 64, 8>}]} {
    %c0 = arith.constant 0 : index
    %c0_0 = arith.constant 0 : index
    %c0_1 = arith.constant 0 : index
    %0 = vector.load %arg1[%c0, %c0_0, %c0_1] : memref<1x64x128xbf16, #tpu.memory_space<vmem>>, vector<1x64x128xbf16>
    %1 = vector.shape_cast %0 : vector<1x64x128xbf16> to vector<64x128xbf16>
    %2 = arith.extf %1 : vector<64x128xbf16> to vector<64x128xf32>
    %c0_2 = arith.constant 0 : index
    %c0_3 = arith.constant 0 : index
    %3 = vector.load %arg2[%c0_2, %c0_3] : memref<2x128xf32, #tpu.memory_space<vmem>>, vector<1x128xf32>
    %4 = vector.broadcast %3 : vector<1x128xf32> to vector<64x128xf32>
    %5 = arith.mulf %2, %4 : vector<64x128xf32>
    %c1 = arith.constant 1 : index
    %c0_4 = arith.constant 0 : index
    %6 = vector.load %arg2[%c1, %c0_4] : memref<2x128xf32, #tpu.memory_space<vmem>>, vector<1x128xf32>
    %7 = vector.broadcast %6 : vector<1x128xf32> to vector<64x128xf32>
    %8 = arith.addf %5, %7 : vector<64x128xf32>
    %9 = vector.extract_strided_slice %8 {offsets = [0, 0], sizes = [64, 8], strides = [1, 1]} : vector<64x128xf32> to vector<64x8xf32>
    %c0_5 = arith.constant 0 : index
    %c0_6 = arith.constant 0 : index
    %c0_7 = arith.constant 0 : index
    %10 = vector.load %arg3[%c0_5, %c0_6, %c0_7] : memref<1x64x8xbf16, #tpu.memory_space<vmem>>, vector<1x64x8xbf16>
    %11 = vector.shape_cast %10 : vector<1x64x8xbf16> to vector<64x8xbf16>
    %12 = arith.extf %11 : vector<64x8xbf16> to vector<64x8xf32>
    %13 = arith.addf %9, %12 : vector<64x8xf32>
    %cst = arith.constant 0.000000e+00 : f32
    %14 = vector.broadcast %cst : f32 to vector<64x8xf32>
    %15 = arith.maximumf %13, %14 : vector<64x8xf32>
    %c0_8 = arith.constant 0 : index
    %c0_9 = arith.constant 0 : index
    %c0_10 = arith.constant 0 : index
    %16 = vector.load %arg4[%c0_8, %c0_9, %c0_10] : memref<1x64x8xf32, #tpu.memory_space<vmem>>, vector<1x64x8xf32>
    %17 = vector.shape_cast %16 : vector<1x64x8xf32> to vector<64x8xf32>
    %18 = vector.shape_cast %15 : vector<64x8xf32> to vector<1x64x8xf32>
    tpu.vector_store %arg4[%c0_8, %c0_9, %c0_10], %18 {strides = array<i32>} : memref<1x64x8xf32, #tpu.memory_space<vmem>>, vector<1x64x8xf32>,
    return
  }
  func.func @transform_0(%arg0: i32) -> (i32, i32, i32) {
    %c0_i32 = arith.constant 0 : i32
    %c0_i32_0 = arith.constant 0 : i32
    %c0_i32_1 = arith.constant 0 : i32
    return %arg0, %c0_i32, %c0_i32_0 : i32, i32, i32
  }
  func.func @transform_1(%arg0: i32) -> (i32, i32) {
    %c0_i32 = arith.constant 0 : i32
    %c0_i32_0 = arith.constant 0 : i32
    %c0_i32_1 = arith.constant 0 : i32
    return %c0_i32, %c0_i32_0 : i32, i32
  }
  func.func @transform_2(%arg0: i32) -> (i32, i32, i32) {
    %c0_i32 = arith.constant 0 : i32
    %c0_i32_0 = arith.constant 0 : i32
    %c0_i32_1 = arith.constant 0 : i32
    return %arg0, %c0_i32, %c0_i32_0 : i32, i32, i32
  }
  func.func @transform_3(%arg0: i32) -> (i32, i32, i32) {
    %c0_i32 = arith.constant 0 : i32
    %c0_i32_0 = arith.constant 0 : i32
    %c0_i32_1 = arith.constant 0 : i32
    return %arg0, %c0_i32, %c0_i32_0 : i32, i32, i32
  }
}

</mosaic_0001>

<bundles_post_ra>
// kernel: basic_block_forward.5
= control target key start
LH: loop header
LB: loop body
LE: loop exit
PB: predicated region body
PF: predicated region fallthrough
CT: control target
= control target key end

     0   :  { %s527_s12 = smov 0   ;;  %s631_s0 = inlined_call_operand.vmem [shape: bf16[2,64,256], index: 0, kind: input, shape index: {}]   ;;  %s632_s1 = inlined_call_operand.vmem [shape: f32[2,256], index: 1, kind: input, shape index: {}]   ;;  %s633_s2 = inlined_call_operand.vmem [shape: bf16[2,64,8], index: 2, kind: output, shape index: {0}]   ;;  %s634_s3 = inlined_call_operand.vmem [shape: bf16[2,64,8], index: 3, kind: output, shape index: {1}]  }
   0x1 LB: > { %s442_s13 = sadd.s32 4294967295, %s505_s12   ;;  %p446_p0 = scmp.ge.s32.totalorder %s505_s12, 1  ;;  %s505_s12 = sphi %s527_s12, %s14_s12  }
   0x2   : > { %p140_p1 = scmp.lt.s32.totalorder %s505_s12, 3 }
   0x4   : > { %p141_p2 = pnand %p446_p0, %p140_p1 }
   0x5   : > { %p169_p3 = scmp.lt.s32.totalorder (!%p141_p2), %s442_s13, 1  ;;  %v210_v0 = vlaneseq (!%p141_p2)  ;;  %v208_v2 = vld [vmem:[%s632_s1] ss:$2 sm:$0x3] (!%p141_p2)  ;;  %vm305_vm0 = vcmask (!%p141_p2), 60416  }
   0x6   : > { %144 = sbr.rel (%p141_p2) target bundleno = 39 (0x27), region = 28  ;;  %v453_v3 = vld [vmem:[%s632_s1 + $0x1] ss:$2 sm:$0x3] (!%p141_p2) }
   0x7   : > { %v211_v1 = vshrl.u32 (!%p141_p2), %v210_v0, 7 }
   0x9   : > { %v212_v4 = vsub.s32 (!%p141_p2), 0, %v211_v1  ;;  %v216_v5 = vsub.s32 (!%p141_p2), 1, %v211_v1 }
   0xb   : > { %v213_v7 = vrot.slane (!%p141_p2), %v208_v2, %v212_v4  ;;  %v242_v8 = vrot.slane (!%p141_p2), %v453_v3, %v212_v4  ;;  %v549_v11 = vrot.slane (!%p141_p2), %v208_v2, %v216_v5  ;;  %v551_v12 = vrot.slane (!%p141_p2), %v453_v3, %v216_v5 }
   0xd   : > { %s636_s13 = smov (!%p169_p3, %s442_s13), 1 }
   0xe   : > { %s472_s18 = sshll.u32 %s636_s13, 6  ;;  %s473_s22 = sshll.u32 %s636_s13, 5 }
   0xf   : > { %s173_s21 = scalar_lea.vmem %s631_s0, %s472_s18  ;;  %s575_s25 = scalar_lea.vmem %s633_s2, %s473_s22 }
  0x10   : > { %v184_v6 = vld [vmem:[%s173_s21] sm:$0xff]  ;;  %v185_v9 = vld [vmem:[%s173_s21 + $0x8] sm:$0xff]  ;;  %v547_v10 = vld [vmem:[%s173_s21 + $0x10] sm:$0xff]  ;;  %s183_s28 = scalar_lea.vmem %s634_s3, %s473_s22 }
  0x11   : > { %v192_v13 = vunpack.c.l.bf16 %v184_v6  ;;  %v194_v14 = vunpack.c.l.bf16 %v185_v9  ;;  %v196_v15 = vunpack.c.l.bf16 %v547_v10  ;;  %v554_v16 = vld [vmem:[%s173_s21 + $0x18] sm:$0xff]  ;;  %v556_v17 = vld [vmem:[%s173_s21 + $0x20] sm:$0xff]  ;;  %v558_v18 = vld [vmem:[%s173_s21 + $0x28] sm:$0xff]  ;;  %v193_v19 = vunpack.c.h.bf16 %v184_v6 }
  0x12   : > { %v198_v20 = vunpack.c.l.bf16 %v554_v16  ;;  %v200_v21 = vunpack.c.l.bf16 %v556_v17  ;;  %v202_v22 = vunpack.c.l.bf16 %v558_v18  ;;  %v563_v23 = vld [vmem:[%s173_s21 + $0x30] sm:$0xff]  ;;  %v565_v24 = vld [vmem:[%s173_s21 + $0x38] sm:$0xff]  ;;  %v195_v25 = vunpack.c.h.bf16 %v185_v9 }
  0x13   : > { %v220_v26 = vmul.f32 %v213_v7, %v192_v13  ;;  %v222_v27 = vmul.f32 %v213_v7, %v194_v14  ;;  %v224_v28 = vmul.f32 %v213_v7, %v196_v15  ;;  %v204_v29 = vunpack.c.l.bf16 %v563_v23 }
  0x14   : > { %v226_v30 = vmul.f32 %v213_v7, %v198_v20  ;;  %v228_v31 = vmul.f32 %v213_v7, %v200_v21  ;;  %v230_v32 = vmul.f32 %v213_v7, %v202_v22  ;;  %v206_v33 = vunpack.c.l.bf16 %v565_v24 }
  0x15   : > { %v249_v34 = vadd.f32 %v242_v8, %v220_v26  ;;  %v251_v35 = vadd.f32 %v242_v8, %v222_v27  ;;  %v253_v36 = vadd.f32 %v242_v8, %v224_v28  ;;  %v232_v37 = vmul.f32 %v213_v7, %v204_v29 }
  0x16   : > { %v255_v38 = vadd.f32 %v242_v8, %v226_v30  ;;  %v257_v39 = vadd.f32 %v242_v8, %v228_v31  ;;  %v259_v40 = vadd.f32 %v242_v8, %v230_v32  ;;  %v234_v41 = vmul.f32 %v213_v7, %v206_v33 }
  0x17   : > { %v265_v42 = vmax.f32 %v249_v34, 0.0  ;;  %v266_v43 = vmax.f32 %v251_v35, 0.0  ;;  %v267_v44 = vmax.f32 %v253_v36, 0.0  ;;  %v261_v45 = vadd.f32 %v242_v8, %v232_v37 }
  0x18   : > { %v268_v46 = vmax.f32 %v255_v38, 0.0  ;;  %v269_v47 = vmax.f32 %v257_v39, 0.0  ;;  %v270_v48 = vmax.f32 %v259_v40, 0.0  ;;  %v263_v49 = vadd.f32 %v242_v8, %v234_v41 }
  0x19   : > { %v475_v50 = vpack.c.bf16 %v265_v42, %v265_v42  ;;  %v476_v51 = vpack.c.bf16 %v266_v43, %v266_v43  ;;  %v477_v52 = vpack.c.bf16 %v267_v44, %v267_v44  ;;  %v271_v53 = vmax.f32 %v261_v45, 0.0 }
  0x1a   : > { %v478_v54 = vpack.c.bf16 %v268_v46, %v268_v46  ;;  %v479_v55 = vpack.c.bf16 %v269_v47, %v269_v47  ;;  %v480_v56 = vpack.c.bf16 %v270_v48, %v270_v48  ;;  %v272_v57 = vmax.f32 %v263_v49, 0.0 }
  0x1b   : > { %306 = vst.msk [vmem:[%s575_s25] sm:$0xf] %vm305_vm0, %v475_v50  ;;  %307 = vst.msk [vmem:[%s575_s25 + $0x4] sm:$0xf] %vm305_vm0, %v476_v51  ;;  %v481_v58 = vpack.c.bf16 %v271_v53, %v271_v53  ;;  %v221_v59 = vmul.f32 %v549_v11, %v193_v19  ;;  %v223_v60 = vmul.f32 %v549_v11, %v195_v25  ;;  %v197_v61 = vunpack.c.h.bf16 %v547_v10 }
  0x1c   : > { %308 = vst.msk [vmem:[%s575_s25 + $0x8] sm:$0xf] %vm305_vm0, %v477_v52  ;;  %309 = vst.msk [vmem:[%s575_s25 + $0xc] sm:$0xf] %vm305_vm0, %v478_v54  ;;  %v482_v62 = vpack.c.bf16 %v272_v57, %v272_v57  ;;  %v199_v63 = vunpack.c.h.bf16 %v554_v16  ;;  %v201_v0 = vunpack.c.h.bf16 %v556_v17  ;;  %v203_v1 = vunpack.c.h.bf16 %v558_v18 }
  0x1d   : > { %310 = vst.msk [vmem:[%s575_s25 + $0x10] sm:$0xf] %vm305_vm0, %v479_v55  ;;  %311 = vst.msk [vmem:[%s575_s25 + $0x14] sm:$0xf] %vm305_vm0, %v480_v56  ;;  %v250_v2 = vadd.f32 %v551_v12, %v221_v59  ;;  %v252_v3 = vadd.f32 %v551_v12, %v223_v60  ;;  %v225_v4 = vmul.f32 %v549_v11, %v197_v61  ;;  %v205_v5 = vunpack.c.h.bf16 %v563_v23 }
  0x1e   : > { %312 = vst.msk [vmem:[%s575_s25 + $0x18] sm:$0xf] %vm305_vm0, %v481_v58  ;;  %313 = vst.msk [vmem:[%s575_s25 + $0x1c] sm:$0xf] %vm305_vm0, %v482_v62  ;;  %v227_v6 = vmul.f32 %v549_v11, %v199_v63  ;;  %v229_v7 = vmul.f32 %v549_v11, %v201_v0  ;;  %v231_v8 = vmul.f32 %v549_v11, %v203_v1  ;;  %v207_v9 = vunpack.c.h.bf16 %v565_v24 }
  0x1f   : > { %v483_v10 = vpack.c.bf16 %v250_v2, %v250_v2  ;;  %v484_v13 = vpack.c.bf16 %v252_v3, %v252_v3  ;;  %v254_v14 = vadd.f32 %v551_v12, %v225_v4  ;;  %v233_v15 = vmul.f32 %v549_v11, %v205_v5 }
  0x20   : > { %v256_v16 = vadd.f32 %v551_v12, %v227_v6  ;;  %v258_v17 = vadd.f32 %v551_v12, %v229_v7  ;;  %v260_v18 = vadd.f32 %v551_v12, %v231_v8  ;;  %v235_v19 = vmul.f32 %v549_v11, %v207_v9 }
  0x21   : > { %346 = vst.msk [vmem:[%s183_s28] sm:$0xf] %vm305_vm0, %v483_v10  ;;  %347 = vst.msk [vmem:[%s183_s28 + $0x4] sm:$0xf] %vm305_vm0, %v484_v13  ;;  %v485_v20 = vpack.c.bf16 %v254_v14, %v254_v14  ;;  %v262_v21 = vadd.f32 %v551_v12, %v233_v15 }
  0x22   : > { %v486_v22 = vpack.c.bf16 %v256_v16, %v256_v16  ;;  %v487_v23 = vpack.c.bf16 %v258_v17, %v258_v17  ;;  %v488_v24 = vpack.c.bf16 %v260_v18, %v260_v18  ;;  %v264_v25 = vadd.f32 %v551_v12, %v235_v19 }
  0x23   : > { %348 = vst.msk [vmem:[%s183_s28 + $0x8] sm:$0xf] %vm305_vm0, %v485_v20  ;;  %v489_v26 = vpack.c.bf16 %v262_v21, %v262_v21 }
  0x24   : > { %349 = vst.msk [vmem:[%s183_s28 + $0xc] sm:$0xf] %vm305_vm0, %v486_v22  ;;  %350 = vst.msk [vmem:[%s183_s28 + $0x10] sm:$0xf] %vm305_vm0, %v487_v23  ;;  %v490_v11 = vpack.c.bf16 %v264_v25, %v264_v25 }
  0x25   : > { %351 = vst.msk [vmem:[%s183_s28 + $0x14] sm:$0xf] %vm305_vm0, %v488_v24  ;;  %352 = vst.msk [vmem:[%s183_s28 + $0x18] sm:$0xf] %vm305_vm0, %v489_v26 }
  0x26   : > { %353 = vst.msk [vmem:[%s183_s28 + $0x1c] sm:$0xf] %vm305_vm0, %v490_v11 }
  0x27 PF: > { %s14_s12 = sadd.s32 1, %s505_s12  }
  0x28   : > { %p11_p4 = scmp.ge.s32.totalorder %s14_s12, 4  }
  0x2a   :  { %13 = sbr.rel (!%p11_p4) target bundleno = 1 (0x1), region = 71 }

// kernel: basic_block_forward.4
= control target key start
LH: loop header
LB: loop body
LE: loop exit
PB: predicated region body
PF: predicated region fallthrough
CT: control target
= control target key end

     0   :  { %s2815_s12 = smov 0   ;;  %s3127_s0 = inlined_call_operand.vmem [shape: bf16[2,36,9,4], index: 0, kind: input, shape index: {}]   ;;  %s3128_s1 = inlined_call_operand.vmem [shape: bf16[9,4,256], index: 1, kind: input, shape index: {}]   ;;  %s3129_s2 = inlined_call_operand.vmem [shape: bf16[2,64,256], index: 2, kind: output, shape index: {0}]   ;;  %s3130_s3 = inlined_call_operand.vmem [shape: f32[2,2,256], index: 3, kind: output, shape index: {1}]  }
   0x1 LB: > { %s2419_s13 = sadd.s32 4294967295, %s2791_s12   ;;  %p2423_p0 = scmp.ge.s32.totalorder %s2791_s12, 1  ;;  %s2791_s12 = sphi %s2815_s12, %s14_s12  }
   0x2   : > { %p140_p1 = scmp.lt.s32.totalorder %s2791_s12, 3 }
   0x4   : > { %p141_p2 = pnand %p2423_p0, %p140_p1 }
   0x5   : > { %v2433_v0 = vld.sshfl [vmem:[%s3128_s1] sm:$0x33 pattern:$0x76325410] (!%p141_p2)  ;;  %vm268_vm0 = vcmask (!%p141_p2), 1041408   ;;  %v2793_v4 = vmov (!%p141_p2), 0  }
   0x6   : > { %144 = sbr.rel (%p141_p2) target bundleno = 395 (0x18b), region = 28  ;;  %v254_v1 = vcombine.high (!%p141_p2), %v2433_v0, %v2433_v0  ;;  %v2501_v2 = vld.sshfl [vmem:[%s3128_s1 + $0x10] sm:$0x33 pattern:$0x76325410] (!%p141_p2)  ;;  %v270_v3 = vsel (!%p141_p2), %vm268_vm0, %v2433_v0, 0  ;;  %307 = vmatprep.mubr.bf16.mxu1 (!%p141_p2), %v2793_v4  ;;  %1137 = vmatprep.mubr.bf16.mxu0 (!%p141_p2), %v2793_v4 }
   0x7   : > { %p169_p3 = scmp.lt.s32.totalorder (!%p141_p2), %s2419_s13, 1  ;;  %v2832_v5 = vcombine.high (!%p141_p2), %v2501_v2, %v2501_v2  ;;  %v2835_v6 = vsel (!%p141_p2), %vm268_vm0, %v2501_v2, 0  ;;  %v2452_v7 = vld.sshfl [vmem:[%s3128_s1 + $0x4] sm:$0x33 pattern:$0x76325410] (!%p141_p2) }
   0x8   : > { %2434 = vmatprep.subr.msk.bf16.mxu1 (!%p141_p2), %vm268_vm0, %v254_v1  ;;  %v435_v8 = vcombine.high (!%p141_p2), %v2452_v7, %v2452_v7  ;;  %v2528_v9 = vld.sshfl [vmem:[%s3128_s1 + $0x14] sm:$0x33 pattern:$0x76325410] (!%p141_p2)  ;;  %vm255_vm1 = vcmask (!%p141_p2), 31744   ;;  %v449_v12 = vsel (!%p141_p2), %vm268_vm0, %v2452_v7, 0 }
   0x9   : > { %2502 = vmatprep.subr.msk.bf16.mxu0 (!%p141_p2), %vm268_vm0, %v2832_v5  ;;  %276 = vmatpush1.bf16.msra.mxu1 (!%p141_p2), %v270_v3  ;;  %v1376_v10 = vcombine.high (!%p141_p2), %v2528_v9, %v2528_v9  ;;  %v2547_v11 = vld.sshfl [vmem:[%s3128_s1 + $0x18] sm:$0x33 pattern:$0x76325410] (!%p141_p2)  ;;  %v1390_v13 = vsel (!%p141_p2), %vm268_vm0, %v2528_v9, 0 }
   0xa   : > { %1106 = vmatpush1.bf16.msra.mxu0 (!%p141_p2), %v2835_v6  ;;  %2453 = vmatprep.subr.msk.bf16.mxu1 (!%p141_p2), %vm268_vm0, %v435_v8  ;;  %v2865_v14 = vld.sshfl [vmem:[%s3128_s1 + $0x8] sm:$0x33 pattern:$0x76325410] (!%p141_p2)  ;;  %vm575_vm2 = vsmask.f32 (!%p141_p2), 3328  ;;  %v1555_v17 = vcombine.high (!%p141_p2), %v2547_v11, %v2547_v11 }
   0xb   : > { %2529 = vmatprep.subr.msk.bf16.mxu0 (!%p141_p2), %vm268_vm0, %v1376_v10  ;;  %vm576_vm3 = vsmask.f32 (!%p141_p2), 7440  ;;  %v728_v18 = vcombine.high (!%p141_p2), %v2865_v14, %v2865_v14  ;;  %v2874_v19 = vsel (!%p141_p2), %vm268_vm0, %v2547_v11, 0 }
   0xc   : > { %v2889_v36 = vld.sshfl [vmem:[%s3128_s1 + $0x1c] sm:$0x33 pattern:$0x76325410] (!%p141_p2)  ;;  %vm2900_vm4 = vmor (!%p141_p2), %vm575_vm2, %vm576_vm3 }
   0xd   : > { %s3134_s13 = smov (!%p169_p3, %s2419_s13), 1  ;;  %v1734_v59 = vcombine.high %v2889_v36, %v2889_v36 }
   0xe   : > { %s2750_s22 = smul.u32 288, %s3134_s13  ;;  %s2610_s9 = sshll.u32 %s3134_s13, 6 }
   0xf   : > { %s3110_s14 = scalar_lea.vmem %s3129_s2, %s2610_s9  ;;  %s2611_s15 = sshll.u32 %s3134_s13, 2 }
  0x10   : > { %s2858_s27 = scalar_lea.vmem %s3127_s0, %s2750_s22  ;;  %s183_s18 = scalar_lea.vmem %s3130_s3, %s2611_s15 }
  0x11   : > { %v2761_v15 = vld [vmem:[%s2858_s27] ss:$8 sps:$4 sm:$0xff]   ;;  %v2763_v20 = vld [vmem:[%s2858_s27 + $0x10] ss:$8 sps:$4 sm:$0xff]   ;;  %v2508_v23 = vld [vmem:[%s2858_s27 + $0x94] sm:$0x1] }
  0x12   : > { %v2762_v16 = vld [vmem:[%s2858_s27 + $0xd8] ss:$8 sps:$4 sm:$0xff]   ;;  %2435 = vmatmul.mubr.msk.bf16.vlgmr.msra.gmra.mrb[0].mxu1 %vm255_vm1, %v2761_v15  ;;  %v2764_v21 = vld [vmem:[%s2858_s27 + $0xe8] ss:$8 sps:$4 sm:$0xff]   ;;  %v2510_v25 = vld [vmem:[%s2858_s27 + $0x9c] sm:$0x1] }
  0x13   : > { %455 = vmatpush1.bf16.msra.mxu1 %v449_v12  ;;  %2503 = vmatmul.mubr.msk.bf16.vlgmr.msra.gmra.mrb[0].mxu0 %vm255_vm1, %v2762_v16  ;;  %v2507_v22 = vld [vmem:[%s2858_s27 + $0x90] sm:$0xf]  ;;  %v2509_v24 = vld [vmem:[%s2858_s27 + $0x98] sm:$0xf]  ;;  %v1236_v28 = vshll.u32 %v2508_v23, 16  ;;  %v1250_v31 = vshll.u32 %v2510_v25, 16 }
  0x14   : > { %1396 = vmatpush1.bf16.msra.mxu0 %v1390_v13  ;;  %317 = vmatprep.mubr.bf16.mxu1 %v2793_v4  ;;  %v1227_v26 = vshrl.u32 %v2507_v22, 16  ;;  %v1230_v27 = vshll.u32 %v2507_v22, 16  ;;  %v1241_v29 = vshrl.u32 %v2509_v24, 16  ;;  %v1244_v30 = vshll.u32 %v2509_v24, 16  ;;  %v2511_v39 = vld [vmem:[%s2858_s27 + $0xa0] sm:$0xf] }
  0x15   : > { %1147 = vmatprep.mubr.bf16.mxu0 %v2793_v4  ;;  %2548 = vmatprep.subr.msk.bf16.mxu0 %vm268_vm0, %v1555_v17  ;;  %v1238_v34 = vrot.slane %v1236_v28, 5  ;;  %v1252_v38 = vrot.slane %v1250_v31, 5  ;;  %v2512_v40 = vld [vmem:[%s2858_s27 + $0xa4] sm:$0x1]  ;;  %v2513_v42 = vld [vmem:[%s2858_s27 + $0xa8] sm:$0xf] }
  0x16   : > { %2464 = vmatprep.subr.msk.bf16.mxu1 %vm268_vm0, %v728_v18  ;;  %v1229_v32 = vrot.slane %v1227_v26, 4  ;;  %v1232_v33 = vrot.slane %v1230_v27, 5  ;;  %v1243_v35 = vrot.slane %v1241_v29, 4  ;;  %v1246_v37 = vrot.slane %v1244_v30, 5  ;;  %v2514_v43 = vld [vmem:[%s2858_s27 + $0xac] sm:$0x1] }
  0x17   : > { %v1255_v44 = vshrl.u32 %v2511_v39, 16  ;;  %v1258_v45 = vshll.u32 %v2511_v39, 16  ;;  %v1264_v48 = vshll.u32 %v2512_v40, 16  ;;  %v1269_v49 = vshrl.u32 %v2513_v42, 16  ;;  %v2765_v55 = vld [vmem:[%s2858_s27 + $0x20] ss:$8 sps:$4 sm:$0xff]  }
  0x18   : > { %v1233_v41 = vor.u32 %v1232_v33, %v1229_v32  ;;  %v1247_v47 = vor.u32 %v1246_v37, %v1243_v35  ;;  %v1272_v50 = vshll.u32 %v2513_v42, 16  ;;  %v1278_v54 = vshll.u32 %v2514_v43, 16  ;;  %v2515_v0 = vld [vmem:[%s2858_s27 + $0xb0] sm:$0xf]  ;;  %v2516_v1 = vld [vmem:[%s2858_s27 + $0xb4] sm:$0x1] }
  0x19   : > { %v1257_v52 = vrot.slane %v1255_v44, 4  ;;  %v1260_v53 = vrot.slane %v1258_v45, 5  ;;  %v1271_v57 = vrot.slane %v1269_v49, 4  ;;  %v1266_v62 = vrot.slane %v1264_v48, 5  ;;  %v2517_v7 = vld [vmem:[%s2858_s27 + $0xb8] sm:$0xf] }
  0x1a   : > { %2436 = vmatmul.mubr.msk.bf16.gmra.mrb[4].mxu1 %vm255_vm1, %v2763_v20  ;;  %v1234_v51 = vrot.slane %v1233_v41, 4  ;;  %v1248_v56 = vrot.slane %v1247_v47, 4  ;;  %v1274_v58 = vrot.slane %v1272_v50, 5  ;;  %v1280_v63 = vrot.slane %v1278_v54, 5  ;;  %v2518_v8 = vld [vmem:[%s2858_s27 + $0xbc] sm:$0x1] }
  0x1b   : > { %2504 = vmatmul.mubr.msk.bf16.gmra.mrb[4].mxu0 %vm255_vm1, %v2764_v21  ;;  %327 = vmatprep.mubr.bf16.mxu1 %v2793_v4  ;;  %v1261_v61 = vor.u32 %v1260_v53, %v1257_v52  ;;  %v1283_v9 = vshrl.u32 %v2515_v0, 16  ;;  %v1286_v10 = vshll.u32 %v2515_v0, 16  ;;  %v1292_v13 = vshll.u32 %v2516_v1, 16  ;;  %v2519_v25 = vld [vmem:[%s2858_s27 + $0xc0] sm:$0xf] }
  0x1c   : > { %1427 = vmatprep.mubr.bf16.mxu0 %v2793_v4  ;;  %v1239_v60 = vsel %vm2900_vm4, %v1234_v51, %v1238_v34  ;;  %v1253_v2 = vsel %vm2900_vm4, %v1248_v56, %v1252_v38  ;;  %v1275_v3 = vor.u32 %v1274_v58, %v1271_v57  ;;  %v1297_v15 = vshrl.u32 %v2517_v7, 16  ;;  %v2521_v28 = vld [vmem:[%s2858_s27 + $0xc8] sm:$0xf]  ;;  %v2766_v30 = vld [vmem:[%s2858_s27 + $0x30] ss:$8 sps:$4 sm:$0xff]  }
  0x1d   : > { %v2524_v11 = vcombine.low %v1239_v60, %v1253_v2  ;;  %v1262_v12 = vrot.slane %v1261_v61, 4  ;;  %v1285_v17 = vrot.slane %v1283_v9, 4  ;;  %v1288_v18 = vrot.slane %v1286_v10, 5  ;;  %v2520_v34 = vld [vmem:[%s2858_s27 + $0xc4] sm:$0x1] }
  0x1e   : > { %v1276_v16 = vrot.slane %v1275_v3, 4  ;;  %v1300_v20 = vshll.u32 %v2517_v7, 16  ;;  %v1299_v21 = vrot.slane %v1297_v15, 4  ;;  %v1306_v24 = vshll.u32 %v2518_v8, 16  ;;  %v2522_v40 = vld [vmem:[%s2858_s27 + $0xcc] sm:$0x1] }
  0x1f   : > { %v1289_v22 = vor.u32 %v1288_v18, %v1285_v17  ;;  %v1267_v26 = vsel %vm2900_vm4, %v1262_v12, %v1266_v62  ;;  %v1311_v29 = vshrl.u32 %v2519_v25, 16  ;;  %v1294_v31 = vrot.slane %v1292_v13, 5  ;;  %v2767_v53 = vld [vmem:[%s2858_s27 + $0x48] ss:$8 sps:$4 sm:$0xff]   ;;  %v2768_v1 = vld [vmem:[%s2858_s27 + $0x58] ss:$8 sps:$4 sm:$0xff]  }
  0x20   : > { %v1302_v23 = vrot.slane %v1300_v20, 5  ;;  %v1281_v27 = vsel %vm2900_vm4, %v1276_v16, %v1280_v63  ;;  %v1314_v33 = vshll.u32 %v2519_v25, 16  ;;  %v1325_v35 = vshrl.u32 %v2521_v28, 16  ;;  %v559_v63 = vld [vmem:[%s2858_s27] sm:$0xf] }
  0x21   : > { %v2525_v37 = vcombine.low %v1267_v26, %v1281_v27  ;;  %v1290_v38 = vrot.slane %v1289_v22, 4  ;;  %v1308_v39 = vrot.slane %v1306_v24, 5  ;;  %v1313_v41 = vrot.slane %v1311_v29, 4  ;;  %v561_v0 = vld [vmem:[%s2858_s27 + $0x8] sm:$0xf] }
  0x22   : > { %2437 = vmatmul.mubr.msk.bf16.gmra.mrb[8].mxu1 %vm255_vm1, %v2765_v55  ;;  %v1303_v32 = vor.u32 %v1302_v23, %v1299_v21  ;;  %v1316_v43 = vrot.slane %v1314_v33, 5  ;;  %v1327_v44 = vrot.slane %v1325_v35, 4  ;;  %v1320_v47 = vshll.u32 %v2520_v34, 16  ;;  %v560_v3 = vld [vmem:[%s2858_s27 + $0x4] sm:$0x1] }
  0x23   : > { %2530 = vmatmul.mubr.msk.bf16.vlgmr.msra.gmra.mrb[0].mxu0 %vm255_vm1, %v2524_v11  ;;  %337 = vmatprep.mubr.bf16.mxu1 %v2793_v4  ;;  %v1334_v48 = vshll.u32 %v2522_v40, 16  ;;  %v1295_v49 = vsel %vm2900_vm4, %v1290_v38, %v1294_v31  ;;  %v2943_v54 = vld.sshfl [vmem:[%s3128_s1 + $0xc] sm:$0x33 pattern:$0x76325410]  ;;  %v742_v55 = vsel %vm268_vm0, %v2865_v14, 0 }
  0x24   : > { %1575 = vmatpush1.bf16.msra.mxu0 %v2874_v19  ;;  %1437 = vmatprep.mubr.bf16.mxu0 %v2793_v4  ;;  %v1328_v19 = vshll.u32 %v2521_v28, 16  ;;  %v1304_v42 = vrot.slane %v1303_v32, 4  ;;  %v1317_v51 = vor.u32 %v1316_v43, %v1313_v41  ;;  %v1322_v58 = vrot.slane %v1320_v47, 5  ;;  %v562_v11 = vld [vmem:[%s2858_s27 + $0xc] sm:$0x1] }
  0x25   : > { %2567 = vmatprep.subr.msk.bf16.mxu0 %vm268_vm0, %v1734_v59  ;;  %v1336_v60 = vrot.slane %v1334_v48, 5  ;;  %v907_v61 = vcombine.high %v2943_v54, %v2943_v54  ;;  %v579_v7 = vshrl.u32 %v559_v63, 16  ;;  %v582_v8 = vshll.u32 %v559_v63, 16  ;;  %v2769_v18 = vld [vmem:[%s2858_s27 + $0x68] ss:$8 sps:$4 sm:$0xff]  }
  0x26   : > { %v1330_v45 = vrot.slane %v1328_v19, 5  ;;  %v1309_v50 = vsel %vm2900_vm4, %v1304_v42, %v1308_v39  ;;  %v1318_v57 = vrot.slane %v1317_v51, 4  ;;  %v593_v9 = vshrl.u32 %v561_v0, 16  ;;  %v563_v21 = vld [vmem:[%s2858_s27 + $0x10] sm:$0xf] }
  0x27   : > { %v2526_v56 = vcombine.low %v1295_v49, %v1309_v50  ;;  %v596_v10 = vshll.u32 %v561_v0, 16  ;;  %v588_v12 = vshll.u32 %v560_v3, 16  ;;  %v581_v13 = vrot.slane %v579_v7, 4  ;;  %v2770_v23 = vld [vmem:[%s2858_s27 + $0x8] ss:$8 sps:$4 sm:$0xff]  }
  0x28   : > { %v1331_v52 = vor.u32 %v1330_v45, %v1327_v44  ;;  %v1323_v14 = vsel %vm2900_vm4, %v1318_v57, %v1322_v58  ;;  %v584_v15 = vrot.slane %v582_v8, 5  ;;  %v595_v16 = vrot.slane %v593_v9, 4  ;;  %v2972_v22 = vld.sshfl [vmem:[%s3128_s1 + $0x20] sm:$0x33 pattern:$0x76325410] }
  0x29   : > { %v598_v17 = vrot.slane %v596_v10, 5  ;;  %v602_v20 = vshll.u32 %v562_v11, 16  ;;  %v565_v24 = vld [vmem:[%s2858_s27 + $0x18] sm:$0xf]  ;;  %v1748_v25 = vsel %vm268_vm0, %v2889_v36, 0  ;;  %v590_v27 = vrot.slane %v588_v12, 5 }
  0x2a   : > { %2438 = vmatmul.mubr.msk.bf16.gmra.mrb[12].mxu1 %vm255_vm1, %v2766_v30  ;;  %v1332_v59 = vrot.slane %v1331_v52, 4  ;;  %v585_v26 = vor.u32 %v584_v15, %v581_v13  ;;  %v607_v30 = vshrl.u32 %v563_v21, 16  ;;  %v610_v31 = vshll.u32 %v563_v21, 16  ;;  %v564_v36 = vld [vmem:[%s2858_s27 + $0x14] sm:$0x1] }
  0x2b   : > { %2531 = vmatmul.mubr.msk.bf16.gmra.mrb[4].mxu0 %vm255_vm1, %v2525_v37  ;;  %486 = vmatprep.mubr.bf16.mxu1 %v2793_v4  ;;  %v599_v28 = vor.u32 %v598_v17, %v595_v16  ;;  %v604_v29 = vrot.slane %v602_v20, 5  ;;  %v2024_v32 = vcombine.high %v2972_v22, %v2972_v22  ;;  %v621_v33 = vshrl.u32 %v565_v24, 16  ;;  %v2771_v35 = vld [vmem:[%s2858_s27 + $0x78] ss:$8 sps:$4 sm:$0xff]   ;;  %v566_v38 = vld [vmem:[%s2858_s27 + $0x1c] sm:$0x1] }
  0x2c   : > { %1447 = vmatprep.mubr.bf16.mxu0 %v2793_v4  ;;  %v1337_v62 = vsel %vm2900_vm4, %v1332_v59, %v1336_v60  ;;  %v624_v34 = vshll.u32 %v565_v24, 16  ;;  %v586_v19 = vrot.slane %v585_v26, 4  ;;  %v609_v39 = vrot.slane %v607_v30, 4  ;;  %v2772_v43 = vld [vmem:[%s2858_s27 + $0x18] ss:$8 sps:$4 sm:$0xff]  }
  0x2d   : > { %v2527_v2 = vcombine.low %v1323_v14, %v1337_v62  ;;  %v600_v37 = vrot.slane %v599_v28, 4  ;;  %v612_v40 = vrot.slane %v610_v31, 5  ;;  %v623_v41 = vrot.slane %v621_v33, 4  ;;  %v567_v44 = vld [vmem:[%s2858_s27 + $0x20] sm:$0xf] }
  0x2e   : > { %v626_v42 = vrot.slane %v624_v34, 5  ;;  %v616_v45 = vshll.u32 %v564_v36, 16  ;;  %v630_v47 = vshll.u32 %v566_v38, 16  ;;  %v569_v48 = vld [vmem:[%s2858_s27 + $0x28] sm:$0xf]  ;;  %v591_v49 = vsel %vm2900_vm4, %v586_v19, %v590_v27 }
  0x2f   : > { %v605_v50 = vsel %vm2900_vm4, %v600_v37, %v604_v29  ;;  %v613_v51 = vor.u32 %v612_v40, %v609_v39  ;;  %v652_v57 = vshll.u32 %v569_v48, 16  ;;  %v570_v14 = vld [vmem:[%s2858_s27 + $0x2c] sm:$0x1]  ;;  %v571_v8 = vld [vmem:[%s2858_s27 + $0x30] sm:$0xf]  ;;  %v921_v9 = vsel %vm268_vm0, %v2943_v54, 0 }
  0x30   : > { %v627_v52 = vor.u32 %v626_v42, %v623_v41  ;;  %v618_v58 = vrot.slane %v616_v45, 5  ;;  %v632_v59 = vrot.slane %v630_v47, 5  ;;  %v2459_v60 = vcombine.low %v591_v49, %v605_v50  ;;  %v573_v10 = vld [vmem:[%s2858_s27 + $0x38] sm:$0xf]  ;;  %v572_v30 = vld [vmem:[%s2858_s27 + $0x34] sm:$0x1] }
  0x31   : > { %v614_v62 = vrot.slane %v613_v51, 4  ;;  %v654_v7 = vrot.slane %v652_v57, 5  ;;  %v658_v12 = vshll.u32 %v570_v14, 16  ;;  %v663_v17 = vshrl.u32 %v571_v8, 16  ;;  %v574_v34 = vld [vmem:[%s2858_s27 + $0x3c] sm:$0x1] }
  0x32   : > { %2454 = vmatmul.mubr.msk.bf16.vlgmr.msra.gmra.mrb[0].mxu1 %vm255_vm1, %v2767_v53  ;;  %v635_v53 = vshrl.u32 %v567_v44, 16  ;;  %v628_v63 = vrot.slane %v627_v52, 4  ;;  %v666_v54 = vshll.u32 %v571_v8, 16  ;;  %v677_v20 = vshrl.u32 %v573_v10, 16  ;;  %v2775_v40 = vld [vmem:[%s2858_s27 + $0x50] ss:$8 sps:$4 sm:$0xff]  }
  0x33   : > { %748 = vmatpush1.bf16.msra.mxu1 %v742_v55  ;;  %2532 = vmatmul.mubr.msk.bf16.gmra.mrb[8].mxu0 %vm255_vm1, %v2526_v56  ;;  %v638_v55 = vshll.u32 %v567_v44, 16  ;;  %v649_v56 = vshrl.u32 %v569_v48, 16  ;;  %v619_v13 = vsel %vm2900_vm4, %v614_v62, %v618_v58  ;;  %v680_v21 = vshll.u32 %v573_v10, 16  ;;  %v2776_v50 = vld [vmem:[%s2858_s27 + $0x60] ss:$8 sps:$4 sm:$0xff]  }
  0x34   : > { %496 = vmatprep.mubr.bf16.mxu1 %v2793_v4  ;;  %1457 = vmatprep.mubr.bf16.mxu0 %v2793_v4  ;;  %v637_v0 = vrot.slane %v635_v53, 4  ;;  %v633_v15 = vsel %vm2900_vm4, %v628_v63, %v632_v59  ;;  %v660_v27 = vrot.slane %v658_v12, 5  ;;  %v665_v28 = vrot.slane %v663_v17, 4  ;;  %v2574_v51 = vld [vmem:[%s2858_s27 + $0x10] sm:$0xf] }
  0x35   : > { %2483 = vmatprep.subr.msk.bf16.mxu1 %vm268_vm0, %v907_v61  ;;  %v568_v61 = vld [vmem:[%s2858_s27 + $0x24] sm:$0x1]  ;;  %v651_v3 = vrot.slane %v649_v56, 4  ;;  %v2460_v24 = vcombine.low %v619_v13, %v633_v15  ;;  %v668_v31 = vrot.slane %v666_v54, 5  ;;  %v682_v33 = vrot.slane %v680_v21, 5 }
  0x36   : > { %v644_v11 = vshll.u32 %v568_v61, 16  ;;  %v686_v38 = vshll.u32 %v574_v34, 16  ;;  %v2038_v45 = vsel %vm268_vm0, %v2972_v22, 0  ;;  %v2572_v22 = vld [vmem:[%s2858_s27 + $0x8] sm:$0xf]  ;;  %v1892_v56 = vshll.u32 %v2574_v51, 16 }
  0x37   : > { %v669_v19 = vor.u32 %v668_v31, %v665_v28  ;;  %v1875_v52 = vshrl.u32 %v2572_v22, 16  ;;  %v1878_v53 = vshll.u32 %v2572_v22, 16  ;;  %v2777_v57 = vld [vmem:[%s2858_s27 + $0x90] ss:$8 sps:$4 sm:$0xff]   ;;  %v2573_v62 = vld [vmem:[%s2858_s27 + $0xc] sm:$0x1] }
  0x38   : > { %v688_v44 = vrot.slane %v686_v38, 5  ;;  %v1894_v61 = vrot.slane %v1892_v56, 5  ;;  %v2778_v14 = vld [vmem:[%s2858_s27 + $0x70] ss:$8 sps:$4 sm:$0xff]   ;;  %v2575_v63 = vld [vmem:[%s2858_s27 + $0x14] sm:$0x1] }
  0x39   : > { %v670_v41 = vrot.slane %v669_v19, 4  ;;  %v1877_v58 = vrot.slane %v1875_v52, 4  ;;  %v1880_v59 = vrot.slane %v1878_v53, 5  ;;  %v1898_v8 = vshll.u32 %v2575_v63, 16  ;;  %v2779_v13 = vld [vmem:[%s2858_s27 + $0xa0] ss:$8 sps:$4 sm:$0xff]  }
  0x3a   : > { %2455 = vmatmul.mubr.msk.bf16.gmra.mrb[4].mxu1 %vm255_vm1, %v2768_v1  ;;  %v640_v1 = vrot.slane %v638_v55, 5  ;;  %v1889_v55 = vshrl.u32 %v2574_v51, 16  ;;  %v2780_v15 = vld [vmem:[%s2858_s27 + $0x80] ss:$8 sps:$4 sm:$0xff]   ;;  %v2781_v19 = vld [vmem:[%s2858_s27 + $0xb0] ss:$8 sps:$4 sm:$0xff]  }
  0x3b   : > { %2533 = vmatmul.mubr.msk.bf16.gmra.mrb[12].mxu0 %vm255_vm1, %v2527_v2  ;;  %506 = vmatprep.mubr.bf16.mxu1 %v2793_v4  ;;  %v2773_v2 = vld [vmem:[%s2858_s27 + $0x28] ss:$8 sps:$4 sm:$0xff]   ;;  %v1900_v54 = vrot.slane %v1898_v8, 5 }
  0x3c   : > { %1606 = vmatprep.mubr.bf16.mxu0 %v2793_v4  ;;  %v641_v16 = vor.u32 %v640_v1, %v637_v0  ;;  %v2576_v0 = vld [vmem:[%s2858_s27 + $0x18] sm:$0xf]  ;;  %v2578_v1 = vld [vmem:[%s2858_s27 + $0x20] sm:$0xf] }
  0x3d   : > { %v1906_v10 = vshll.u32 %v2576_v0, 16  ;;  %v1920_v12 = vshll.u32 %v2578_v1, 16 }
  0x3e   : > { %v642_v26 = vrot.slane %v641_v16, 4 }
  0x42   : > { %2456 = vmatmul.mubr.msk.bf16.gmra.mrb[8].mxu1 %vm255_vm1, %v2769_v18  ;;  %v655_v18 = vor.u32 %v654_v7, %v651_v3  ;;  %v1884_v3 = vshll.u32 %v2573_v62, 16 }
  0x43   : > { %2549 = vmatmul.mubr.msk.bf16.vlgmr.msra.gmra.mrb[0].mxu0 %vm255_vm1, %v2770_v23  ;;  %516 = vmatprep.mubr.bf16.mxu1 %v2793_v4  ;;  %v646_v23 = vrot.slane %v644_v11, 5  ;;  %v1917_v11 = vshrl.u32 %v2578_v1, 16  ;;  %v2585_v1 = vld [vmem:[%s2858_s27 + $0x3c] sm:$0x1] }
  0x44   : > { %1754 = vmatpush1.bf16.msra.mxu0 %v1748_v25  ;;  %1616 = vmatprep.mubr.bf16.mxu0 %v2793_v4  ;;  %v2774_v25 = vld [vmem:[%s2858_s27 + $0x38] ss:$8 sps:$4 sm:$0xff]   ;;  %v656_v29 = vrot.slane %v655_v18, 4  ;;  %v1886_v17 = vrot.slane %v1884_v3, 5 }
  0x45   : > { %2594 = vmatprep.subr.msk.bf16.mxu0 %vm268_vm0, %v2024_v32  ;;  %v679_v32 = vrot.slane %v677_v20, 4  ;;  %v647_v36 = vsel %vm2900_vm4, %v642_v26, %v646_v23  ;;  %v2577_v20 = vld [vmem:[%s2858_s27 + $0x1c] sm:$0x1]  ;;  %v1908_v23 = vrot.slane %v1906_v10, 5  ;;  %v2580_v26 = vld [vmem:[%s2858_s27 + $0x28] sm:$0xf] }
  0x46   : > { %v1931_v34 = vshrl.u32 %v2580_v26, 16 }
  0x47   : > { %v683_v37 = vor.u32 %v682_v33, %v679_v32 }
  0x4a   : > { %2457 = vmatmul.mubr.msk.bf16.gmra.mrb[12].mxu1 %vm255_vm1, %v2771_v35  ;;  %v672_v35 = vshll.u32 %v572_v30, 16  ;;  %v1912_v30 = vshll.u32 %v2577_v20, 16 }
  0x4b   : > { %2550 = vmatmul.mubr.msk.bf16.gmra.mrb[4].mxu0 %vm255_vm1, %v2772_v43  ;;  %779 = vmatprep.mubr.bf16.mxu1 %v2793_v4  ;;  %v684_v43 = vrot.slane %v683_v37, 4 }
  0x4c   : > { %1626 = vmatprep.mubr.bf16.mxu0 %v2793_v4  ;;  %v674_v42 = vrot.slane %v672_v35, 5  ;;  %v1914_v38 = vrot.slane %v1912_v30, 5 }
  0x4d   : > { %v689_v48 = vsel %vm2900_vm4, %v684_v43, %v688_v44  ;;  %v2583_v43 = vld [vmem:[%s2858_s27 + $0x34] sm:$0x1]  ;;  %v1933_v44 = vrot.slane %v1931_v34, 4 }
  0x4e   : > { %v675_v47 = vsel %vm2900_vm4, %v670_v41, %v674_v42  ;;  %v1954_v51 = vshll.u32 %v2583_v43, 16 }
  0x4f   : > { %v2462_v49 = vcombine.low %v675_v47, %v689_v48 }
  0x52   : > { %2465 = vmatmul.mubr.msk.bf16.vlgmr.msra.gmra.mrb[0].mxu1 %vm255_vm1, %v2459_v60  ;;  %v1891_v60 = vrot.slane %v1889_v55, 4 }
  0x53   : > { %927 = vmatpush1.bf16.msra.mxu1 %v921_v9  ;;  %2551 = vmatmul.mubr.msk.bf16.gmra.mrb[8].mxu0 %vm255_vm1, %v2773_v2  ;;  %v1881_v2 = vor.u32 %v1880_v59, %v1877_v58  ;;  %v1903_v9 = vshrl.u32 %v2576_v0, 16  ;;  %v1956_v0 = vrot.slane %v1954_v51, 5 }
  0x54   : > { %789 = vmatprep.mubr.bf16.mxu1 %v2793_v4  ;;  %1636 = vmatprep.mubr.bf16.mxu0 %v2793_v4  ;;  %v1895_v7 = vor.u32 %v1894_v61, %v1891_v60  ;;  %v2782_v61 = vld [vmem:[%s2858_s27 + $0xc0] ss:$8 sps:$4 sm:$0xff]  }
  0x55   : > { %2620 = vmatprep.subr.msk.bf16.mxu1 %vm268_vm0, %v2832_v5  ;;  %v661_v5 = vsel %vm2900_vm4, %v656_v29, %v660_v27  ;;  %v1882_v16 = vrot.slane %v1881_v2, 4  ;;  %v1905_v21 = vrot.slane %v1903_v9, 4  ;;  %v2582_v27 = vld [vmem:[%s2858_s27 + $0x30] sm:$0xf] }
  0x56   : > { %v2461_v39 = vcombine.low %v647_v36, %v661_v5  ;;  %v1896_v18 = vrot.slane %v1895_v7, 4  ;;  %v1934_v36 = vshll.u32 %v2580_v26, 16  ;;  %v1945_v35 = vshrl.u32 %v2582_v27, 16  ;;  %v2587_v7 = vld [vmem:[%s2858_s27 + $0x44] sm:$0x1] }
  0x57   : > { %v1887_v28 = vsel %vm2900_vm4, %v1882_v16, %v1886_v17  ;;  %v1909_v32 = vor.u32 %v1908_v23, %v1905_v21  ;;  %v1948_v5 = vshll.u32 %v2582_v27, 16  ;;  %v2784_v26 = vld [vmem:[%s2858_s27 + $0x108] ss:$8 sps:$4 sm:$0xff]  }
  0x58   : > { %v1901_v29 = vsel %vm2900_vm4, %v1896_v18, %v1900_v54  ;;  %v1947_v47 = vrot.slane %v1945_v35, 4  ;;  %v2783_v18 = vld [vmem:[%s2858_s27 + $0xf8] ss:$8 sps:$4 sm:$0xff]  }
  0x59   : > { %v2589_v37 = vcombine.low %v1887_v28, %v1901_v29  ;;  %v1910_v41 = vrot.slane %v1909_v32, 4  ;;  %v1950_v48 = vrot.slane %v1948_v5, 5 }
  0x5a   : > { %2466 = vmatmul.mubr.msk.bf16.gmra.mrb[4].mxu1 %vm255_vm1, %v2460_v24  ;;  %v1919_v24 = vrot.slane %v1917_v11, 4  ;;  %v1968_v11 = vshll.u32 %v2585_v1, 16 }
  0x5b   : > { %2552 = vmatmul.mubr.msk.bf16.gmra.mrb[12].mxu0 %vm255_vm1, %v2774_v25  ;;  %799 = vmatprep.mubr.bf16.mxu1 %v2793_v4  ;;  %v1922_v25 = vrot.slane %v1920_v12, 5  ;;  %v1915_v52 = vsel %vm2900_vm4, %v1910_v41, %v1914_v38  ;;  %v1982_v12 = vshll.u32 %v2587_v7, 16 }
  0x5c   : > { %1785 = vmatprep.mubr.bf16.mxu0 %v2793_v4 }
  0x5d   : > { %v1923_v33 = vor.u32 %v1922_v25, %v1919_v24  ;;  %v1984_v23 = vrot.slane %v1982_v12, 5 }
  0x5f   : > { %v1924_v42 = vrot.slane %v1923_v33, 4 }
  0x62   : > { %2467 = vmatmul.mubr.msk.bf16.gmra.mrb[8].mxu1 %vm255_vm1, %v2461_v39 }
  0x63   : > { %2568 = vmatmul.mubr.msk.bf16.vlgmr.msra.gmra.mrb[0].mxu0 %vm255_vm1, %v2775_v40  ;;  %809 = vmatprep.mubr.bf16.mxu1 %v2793_v4  ;;  %v2581_v40 = vld [vmem:[%s2858_s27 + $0x2c] sm:$0x1] }
  0x64   : > { %2044 = vmatpush1.bf16.msra.mxu0 %v2038_v45  ;;  %1795 = vmatprep.mubr.bf16.mxu0 %v2793_v4  ;;  %v1936_v45 = vrot.slane %v1934_v36, 5  ;;  %v1940_v22 = vshll.u32 %v2581_v40, 16 }
  0x66   : > { %v1937_v55 = vor.u32 %v1936_v45, %v1933_v44 }
  0x68   : > { %v1938_v63 = vrot.slane %v1937_v55, 4 }
  0x6a   : > { %2468 = vmatmul.mubr.msk.bf16.gmra.mrb[12].mxu1 %vm255_vm1, %v2462_v49  ;;  %v2584_v49 = vld [vmem:[%s2858_s27 + $0x38] sm:$0xf] }
  0x6b   : > { %2569 = vmatmul.mubr.msk.bf16.gmra.mrb[4].mxu0 %vm255_vm1, %v2776_v50  ;;  %958 = vmatprep.mubr.bf16.mxu1 %v2793_v4  ;;  %v2586_v50 = vld [vmem:[%s2858_s27 + $0x40] sm:$0xf]  ;;  %v1959_v56 = vshrl.u32 %v2584_v49, 16  ;;  %v1962_v58 = vshll.u32 %v2584_v49, 16 }
  0x6c   : > { %1805 = vmatprep.mubr.bf16.mxu0 %v2793_v4  ;;  %v1973_v59 = vshrl.u32 %v2586_v50, 16  ;;  %v1976_v60 = vshll.u32 %v2586_v50, 16 }
  0x6d   : > { %v1961_v2 = vrot.slane %v1959_v56, 4  ;;  %v1964_v8 = vrot.slane %v1962_v58, 5 }
  0x6e   : > { %v1975_v9 = vrot.slane %v1973_v59, 4  ;;  %v1978_v10 = vrot.slane %v1976_v60, 5 }
  0x6f   : > { %v1965_v16 = vor.u32 %v1964_v8, %v1961_v2 }
  0x70   : > { %v1979_v17 = vor.u32 %v1978_v10, %v1975_v9 }
  0x71   : > { %v1966_v20 = vrot.slane %v1965_v16, 4 }
  0x72   : > { %2484 = vmatmul.mubr.msk.bf16.vlgmr.msra.gmra.mrb[0].mxu1 %vm255_vm1, %v2777_v57  ;;  %v1951_v57 = vor.u32 %v1950_v48, %v1947_v47  ;;  %v1980_v21 = vrot.slane %v1979_v17, 4 }
  0x73   : > { %2621 = vmatpush1.bf16.msra.mxu1 %v2835_v6  ;;  %2570 = vmatmul.mubr.msk.bf16.gmra.mrb[8].mxu0 %vm255_vm1, %v2778_v14  ;;  %v2579_v6 = vld [vmem:[%s2858_s27 + $0x24] sm:$0x1]  ;;  %v1942_v14 = vrot.slane %v1940_v22, 5 }
  0x74   : > { %968 = vmatprep.mubr.bf16.mxu1 %v2793_v4  ;;  %1815 = vmatprep.mubr.bf16.mxu0 %v2793_v4  ;;  %v1926_v31 = vshll.u32 %v2579_v6, 16  ;;  %v1952_v3 = vrot.slane %v1951_v57, 4  ;;  %v1970_v6 = vrot.slane %v1968_v11, 5  ;;  %v1985_v25 = vsel %vm2900_vm4, %v1980_v21, %v1984_v23 }
  0x76   : > { %v1928_v39 = vrot.slane %v1926_v31, 5  ;;  %v1971_v24 = vsel %vm2900_vm4, %v1966_v20, %v1970_v6 }
  0x77   : > { %v2592_v27 = vcombine.low %v1971_v24, %v1985_v25 }
  0x78   : > { %v1929_v53 = vsel %vm2900_vm4, %v1924_v42, %v1928_v39 }
  0x79   : > { %v2590_v62 = vcombine.low %v1915_v52, %v1929_v53 }
  0x7a   : > { %2485 = vmatmul.mubr.msk.bf16.gmra.mrb[4].mxu1 %vm255_vm1, %v2779_v13  ;;  %v1943_v13 = vsel %vm2900_vm4, %v1938_v63, %v1942_v14 }
  0x7b   : > { %2571 = vmatmul.mubr.msk.bf16.gmra.mrb[12].mxu0 %vm255_vm1, %v2780_v15  ;;  %978 = vmatprep.mubr.bf16.mxu1 %v2793_v4  ;;  %v1957_v15 = vsel %vm2900_vm4, %v1952_v3, %v1956_v0 }
  0x7c   : > { %2075 = vmatprep.mubr.bf16.mxu0 %v2793_v4  ;;  %v2591_v54 = vcombine.low %v1943_v13, %v1957_v15 }
  0x82   : > { %2486 = vmatmul.mubr.msk.bf16.gmra.mrb[8].mxu1 %vm255_vm1, %v2781_v19 }
  0x83   : > { %2595 = vmatmul.mubr.msk.bf16.vlgmr.msra.gmra.mrb[0].mxu0 %vm255_vm1, %v2589_v37  ;;  %988 = vmatprep.mubr.bf16.mxu1 %v2793_v4 }
  0x84   : > { %2085 = vmatprep.mubr.bf16.mxu0 %v2793_v4 }
  0x8a   : > { %2487 = vmatmul.mubr.msk.bf16.gmra.mrb[12].mxu1 %vm255_vm1, %v2782_v61 }
  0x8b   : > { %2596 = vmatmul.mubr.msk.bf16.gmra.mrb[4].mxu0 %vm255_vm1, %v2590_v62  ;;  %1157 = vmatprep.mubr.bf16.mxu1 %v2793_v4 }
  0x8c   : > { %2095 = vmatprep.mubr.bf16.mxu0 %v2793_v4 }
  0x92   : > { %2505 = vmatmul.mubr.msk.bf16.vlgmr.msra.gmra.mrb[8].mxu1 %vm255_vm1, %v2783_v18 }
  0x93   : > { %2597 = vmatmul.mubr.msk.bf16.gmra.mrb[8].mxu0 %vm255_vm1, %v2591_v54  ;;  %1167 = vmatprep.mubr.bf16.mxu1 %v2793_v4 }
  0x94   : > { %2105 = vmatprep.mubr.bf16.mxu0 %v2793_v4 }
  0x9a   : > { %2506 = vmatmul.mubr.msk.bf16.gmra.mrb[12].mxu1 %vm255_vm1, %v2784_v26 }
  0x9b   : > { %2598 = vmatmul.mubr.msk.bf16.gmra.mrb[12].mxu0 %vm255_vm1, %v2592_v27 }
 0x145   : > { %v960_v28 = vpop.f32.mrb[0].mxu1 }
 0x146   : > { %v962_v29 = vpop.f32.mrb[1].mxu1 }
 0x147   : > { %v964_v30 = vpop.f32.mrb[2].mxu1 }
 0x148   : > { %v966_v31 = vpop.f32.mrb[3].mxu1 }
 0x14d   : > { %v970_v32 = vpop.f32.mrb[4].mxu1 }
 0x14e   : > { %v972_v33 = vpop.f32.mrb[5].mxu1 }
 0x14f   : > { %v974_v4 = vpop.f32.mrb[6].mxu1 }
 0x150   : > { %v976_v34 = vpop.f32.mrb[7].mxu1 }
 0x156   : > { %v2077_v36 = vpop.f32.mrb[0].mxu0 }
 0x157   : > { %v2622_v35 = vadd.f32 %v2077_v36, %v960_v28  ;;  %v2079_v5 = vpop.f32.mrb[1].mxu0 }
 0x158   : > { %v2623_v46 = vadd.f32 %v2079_v5, %v962_v29  ;;  %v2081_v19 = vpop.f32.mrb[2].mxu0 }
 0x159   : > { %v2624_v37 = vadd.f32 %v2081_v19, %v964_v30  ;;  %v2083_v38 = vpop.f32.mrb[3].mxu0  ;;  %v2269_v41 = vmul.f32 %v2622_v35, %v2622_v35 }
 0x15a   : > { %v2612_v39 = vpack.c.bf16 %v2623_v46, %v2622_v35  ;;  %v2625_v40 = vadd.f32 %v2083_v38, %v966_v31  ;;  %v2270_v44 = vmul.f32 %v2623_v46, %v2623_v46 }
 0x15b   : > { %v2220_v42 = vadd.f32 %v2624_v37, %v2622_v35  ;;  %v2271_v43 = vmul.f32 %v2624_v37, %v2624_v37 }
 0x15c   : > { %2212 = vst [vmem:[%s3110_s14] sm:$0xff] %v2612_v39  ;;  %v2613_v45 = vpack.c.bf16 %v2625_v40, %v2624_v37  ;;  %v2233_v47 = vadd.f32 %v2625_v40, %v2623_v46  ;;  %v2272_v48 = vmul.f32 %v2625_v40, %v2625_v40 }
 0x15d   : > { %v2285_v49 = vadd.f32 %v2271_v43, %v2269_v41 }
 0x15e   : > { %2213 = vst [vmem:[%s3110_s14 + $0x8] sm:$0xff] %v2613_v45  ;;  %v2298_v50 = vadd.f32 %v2272_v48, %v2270_v44  ;;  %v2087_v22 = vpop.f32.mrb[4].mxu0 }
 0x15f   : > { %v2626_v51 = vadd.f32 %v2087_v22, %v970_v32  ;;  %v2089_v52 = vpop.f32.mrb[5].mxu0 }
 0x160   : > { %v2627_v53 = vadd.f32 %v2089_v52, %v972_v33  ;;  %v2091_v55 = vpop.f32.mrb[6].mxu0 }
 0x161   : > { %v2221_v56 = vadd.f32 %v2626_v51, %v2220_v42  ;;  %v2273_v57 = vmul.f32 %v2626_v51, %v2626_v51  ;;  %v2628_v58 = vadd.f32 %v2091_v55, %v974_v4  ;;  %v2093_v59 = vpop.f32.mrb[7].mxu0 }
 0x162   : > { %v2614_v60 = vpack.c.bf16 %v2627_v53, %v2626_v51  ;;  %v2234_v61 = vadd.f32 %v2627_v53, %v2233_v47  ;;  %v2274_v14 = vmul.f32 %v2627_v53, %v2627_v53  ;;  %v2629_v62 = vadd.f32 %v2093_v59, %v976_v34 }
 0x163   : > { %v2286_v63 = vadd.f32 %v2285_v49, %v2273_v57  ;;  %v2222_v0 = vadd.f32 %v2628_v58, %v2221_v56  ;;  %v2275_v1 = vmul.f32 %v2628_v58, %v2628_v58 }
 0x164   : > { %2214 = vst [vmem:[%s3110_s14 + $0x10] sm:$0xff] %v2614_v60  ;;  %v2299_v2 = vadd.f32 %v2298_v50, %v2274_v14  ;;  %v2615_v3 = vpack.c.bf16 %v2629_v62, %v2628_v58  ;;  %v2235_v7 = vadd.f32 %v2629_v62, %v2234_v61  ;;  %v2276_v8 = vmul.f32 %v2629_v62, %v2629_v62 }
 0x165   : > { %v2287_v9 = vadd.f32 %v2286_v63, %v2275_v1  ;;  %v1159_v10 = vpop.f32.mrb[8].mxu1  ;;  %v2794_v1 = vmov 1966171168  }
 0x166   : > { %2215 = vst [vmem:[%s3110_s14 + $0x18] sm:$0xff] %v2615_v3  ;;  %v2300_v11 = vadd.f32 %v2299_v2, %v2276_v8  ;;  %v2097_v12 = vpop.f32.mrb[8].mxu0  ;;  %v1161_v13 = vpop.f32.mrb[9].mxu1  ;;  %v2250_v2 = vunpack.c.l.s4 %v2794_v1  ;;  %v2252_v3 = vlaneseq }
 0x167   : > { %v2630_v15 = vadd.f32 %v2097_v12, %v1159_v10  ;;  %v2099_v16 = vpop.f32.mrb[9].mxu0  ;;  %v1163_v17 = vpop.f32.mrb[10].mxu1 }
 0x168   : > { %v2631_v18 = vadd.f32 %v2099_v16, %v1161_v13  ;;  %v2101_v54 = vpop.f32.mrb[10].mxu0  ;;  %v1165_v20 = vpop.f32.mrb[11].mxu1  ;;  %v2251_v16 = vunpack.c.0.s8 %v2250_v2  ;;  %vm2266_vm5 = vcmp.lt.s32.totalorder %v2252_v3, 256 }
 0x169   : > { %v2223_v6 = vadd.f32 %v2630_v15, %v2222_v0  ;;  %v2277_v21 = vmul.f32 %v2630_v15, %v2630_v15  ;;  %v2632_v23 = vadd.f32 %v2101_v54, %v1163_v17  ;;  %v2103_v24 = vpop.f32.mrb[11].mxu0  ;;  %v2253_v17 = vshrl.u32 %v2252_v3, 7 }
 0x16a   : > { %v2616_v25 = vpack.c.bf16 %v2631_v18, %v2630_v15  ;;  %v2236_v26 = vadd.f32 %v2631_v18, %v2235_v7  ;;  %v2278_v27 = vmul.f32 %v2631_v18, %v2631_v18  ;;  %v2633_v28 = vadd.f32 %v2103_v24, %v1165_v20 }
 0x16b   : > { %v2288_v29 = vadd.f32 %v2287_v9, %v2277_v21  ;;  %v2224_v30 = vadd.f32 %v2632_v23, %v2223_v6  ;;  %v2279_v31 = vmul.f32 %v2632_v23, %v2632_v23 }
 0x16c   : > { %2216 = vst [vmem:[%s3110_s14 + $0x20] sm:$0xff] %v2616_v25  ;;  %v2301_v32 = vadd.f32 %v2300_v11, %v2278_v27  ;;  %v2617_v33 = vpack.c.bf16 %v2633_v28, %v2632_v23  ;;  %v2237_v4 = vadd.f32 %v2633_v28, %v2236_v26  ;;  %v2280_v34 = vmul.f32 %v2633_v28, %v2633_v28 }
 0x16d   : > { %v2289_v36 = vadd.f32 %v2288_v29, %v2279_v31  ;;  %v1169_v35 = vpop.f32.mrb[12].mxu1  ;;  %v2254_v26 = vsub.s32 %v2251_v16, %v2253_v17 }
 0x16e   : > { %2217 = vst [vmem:[%s3110_s14 + $0x28] sm:$0xff] %v2617_v33  ;;  %v2302_v5 = vadd.f32 %v2301_v32, %v2280_v34  ;;  %v2107_v46 = vpop.f32.mrb[12].mxu0  ;;  %v1171_v19 = vpop.f32.mrb[13].mxu1 }
 0x16f   : > { %v2634_v37 = vadd.f32 %v2107_v46, %v1169_v35  ;;  %v2109_v38 = vpop.f32.mrb[13].mxu0  ;;  %v1173_v39 = vpop.f32.mrb[14].mxu1 }
 0x170   : > { %v2635_v40 = vadd.f32 %v2109_v38, %v1171_v19  ;;  %v2111_v41 = vpop.f32.mrb[14].mxu0  ;;  %v1175_v42 = vpop.f32.mrb[15].mxu1 }
 0x171   : > { %v2225_v43 = vadd.f32 %v2634_v37, %v2224_v30  ;;  %v2281_v44 = vmul.f32 %v2634_v37, %v2634_v37  ;;  %v2636_v45 = vadd.f32 %v2111_v41, %v1173_v39  ;;  %v2113_v47 = vpop.f32.mrb[15].mxu0 }
 0x172   : > { %v2618_v48 = vpack.c.bf16 %v2635_v40, %v2634_v37  ;;  %v2238_v49 = vadd.f32 %v2635_v40, %v2237_v4  ;;  %v2282_v50 = vmul.f32 %v2635_v40, %v2635_v40  ;;  %v2637_v22 = vadd.f32 %v2113_v47, %v1175_v42 }
 0x173   : > { %v2290_v51 = vadd.f32 %v2289_v36, %v2281_v44  ;;  %v2226_v52 = vadd.f32 %v2636_v45, %v2225_v43  ;;  %v2283_v53 = vmul.f32 %v2636_v45, %v2636_v45 }
 0x174   : > { %2218 = vst [vmem:[%s3110_s14 + $0x30] sm:$0xff] %v2618_v48  ;;  %v2303_v55 = vadd.f32 %v2302_v5, %v2282_v50  ;;  %v2619_v56 = vpack.c.bf16 %v2637_v22, %v2636_v45  ;;  %v2239_v57 = vadd.f32 %v2637_v22, %v2238_v49  ;;  %v2284_v58 = vmul.f32 %v2637_v22, %v2637_v22 }
 0x175   : > { %v2227_v59 = vrot.slane %v2226_v52, 4  ;;  %v2291_v60 = vadd.f32 %v2290_v51, %v2283_v53 }
 0x176   : > { %2219 = vst [vmem:[%s3110_s14 + $0x38] sm:$0xff] %v2619_v56  ;;  %v2240_v61 = vrot.slane %v2239_v57, 4  ;;  %v2304_v14 = vadd.f32 %v2303_v55, %v2284_v58 }
 0x177   : > { %v2228_v62 = vadd.f32 %v2227_v59, %v2226_v52  ;;  %v2292_v63 = vrot.slane %v2291_v60, 4 }
 0x178   : > { %v2241_v0 = vadd.f32 %v2240_v61, %v2239_v57  ;;  %v2305_v7 = vrot.slane %v2304_v14, 4 }
 0x179   : > { %v2229_v8 = vrot.slane %v2228_v62, 2  ;;  %v2293_v9 = vadd.f32 %v2292_v63, %v2291_v60 }
 0x17a   : > { %v2242_v10 = vrot.slane %v2241_v0, 2  ;;  %v2306_v11 = vadd.f32 %v2305_v7, %v2304_v14 }
 0x17b   : > { %v2230_v12 = vadd.f32 %v2229_v8, %v2228_v62  ;;  %v2294_v13 = vrot.slane %v2293_v9, 2 }
 0x17c   : > { %v2243_v15 = vadd.f32 %v2242_v10, %v2241_v0  ;;  %v2307_v18 = vrot.slane %v2306_v11, 2 }
 0x17d   : > { %v2231_v54 = vrot.slane %v2230_v12, 1  ;;  %v2295_v20 = vadd.f32 %v2294_v13, %v2293_v9 }
 0x17e   : > { %v2244_v6 = vrot.slane %v2243_v15, 1  ;;  %v2308_v21 = vadd.f32 %v2307_v18, %v2306_v11 }
 0x17f   : > { %v2232_v23 = vadd.f32 %v2231_v54, %v2230_v12  ;;  %v2296_v24 = vrot.slane %v2295_v20, 1 }
 0x180   : > { %v2245_v25 = vadd.f32 %v2244_v6, %v2243_v15  ;;  %v2309_v27 = vrot.slane %v2308_v21, 1 }
 0x181   : > { %v2297_v28 = vadd.f32 %v2296_v24, %v2295_v20 }
 0x182   : > { %v2248_v29 = vcombine.low %v2232_v23, %v2245_v25  ;;  %v2310_v30 = vadd.f32 %v2309_v27, %v2308_v21 }
 0x184   : > { %v2255_v31 = vrot.slane %v2248_v29, %v2254_v26  ;;  %v2313_v32 = vcombine.low %v2297_v28, %v2310_v30 }
 0x186   : > { %v2262_v33 = vrot.slane %v2255_v31, %v2254_v26  ;;  %v2320_v4 = vrot.slane %v2313_v32, %v2254_v26 }
 0x188   : > { %2268 = vst.msk [vmem:[%s183_s18] ss:$2 sm:$0x3] %vm2266_vm5, %v2262_v33  ;;  %v2327_v34 = vrot.slane %v2320_v4, %v2254_v26 }
 0x18a   : > { %2607 = vst.msk [vmem:[%s183_s18 + $0x1] ss:$2 sm:$0x3] %vm2266_vm5, %v2327_v34 }
 0x18b PF: > { %s14_s12 = sadd.s32 1, %s2791_s12  }
 0x18c   : > { %p11_p4 = scmp.ge.s32.totalorder %s14_s12, 4  }
 0x18e   :  { %13 = sbr.rel (!%p11_p4) target bundleno = 1 (0x1), region = 84 }

// kernel: basic_block_forward.7
= control target key start
LH: loop header
LB: loop body
LE: loop exit
PB: predicated region body
PF: predicated region fallthrough
CT: control target
= control target key end

     0   :  { %s433_s12 = smov 0   ;;  %s471_s0 = inlined_call_operand.vmem [shape: bf16[2,64,128], index: 0, kind: input, shape index: {}]   ;;  %s472_s1 = inlined_call_operand.vmem [shape: f32[2,128], index: 1, kind: input, shape index: {}]   ;;  %s473_s2 = inlined_call_operand.vmem [shape: bf16[2,64,8], index: 2, kind: input, shape index: {}]   ;;  %s474_s3 = inlined_call_operand.vmem [shape: f32[2,64,8], index: 3, kind: output, shape index: {}]  }
   0x1 LB: > { %s341_s13 = sadd.s32 4294967295, %s411_s12   ;;  %p345_p0 = scmp.ge.s32.totalorder %s411_s12, 1  ;;  %s411_s12 = sphi %s433_s12, %s13_s12  }
   0x2   : > { %p147_p1 = scmp.lt.s32.totalorder %s411_s12, 3 }
   0x4   : > { %p148_p2 = pnand %p345_p0, %p147_p1 }
   0x5   : > { %p176_p3 = scmp.lt.s32.totalorder (!%p148_p2), %s341_s13, 1  ;;  %v352_v0 = vld [vmem:[%s472_s1] ss:$0 sm:$0xff] (!%p148_p2)  ;;  %vm265_vm0 = vcmask (!%p148_p2), 64512   ;;  %v353_v11 = vld [vmem:[%s472_s1 + $0x1] ss:$0 sm:$0xff] (!%p148_p2) }
   0x6   : > { %151 = sbr.rel (%p148_p2) target bundleno = 35 (0x23), region = 32 }
   0xd   : > { %s476_s13 = smov (!%p176_p3, %s341_s13), 1 }
   0xe   : > { %s356_s14 = sshll.u32 %s476_s13, 5  ;;  %s358_s25 = sshll.u32 %s476_s13, 6 }
   0xf   : > { %s180_s17 = scalar_lea.vmem %s471_s0, %s356_s14  ;;  %s185_s20 = scalar_lea.vmem %s473_s2, %s356_s14 }
  0x10   : > { %v360_v1 = vld [vmem:[%s180_s17] sm:$0xff]   ;;  %v391_v3 = vld [vmem:[%s180_s17 + $0x8] sm:$0xff]   ;;  %v392_v9 = vld [vmem:[%s180_s17 + $0x10] sm:$0xff]   ;;  %s190_s28 = scalar_lea.vmem %s474_s3, %s358_s25 }
  0x11   : > { %v376_v2 = vld [vmem:[%s185_s20] sm:$0xff]   ;;  %v361_v4 = vunpack.c.l.bf16 %v360_v1  ;;  %v362_v6 = vunpack.c.h.bf16 %v360_v1  ;;  %v394_v8 = vld [vmem:[%s185_s20 + $0x8] sm:$0xff]   ;;  %v395_v10 = vld [vmem:[%s185_s20 + $0x10] sm:$0xff]   ;;  %v365_v12 = vunpack.c.l.bf16 %v391_v3  ;;  %v366_v14 = vunpack.c.h.bf16 %v391_v3 }
  0x12   : > { %v377_v5 = vunpack.c.l.bf16 %v376_v2  ;;  %v378_v7 = vunpack.c.h.bf16 %v376_v2  ;;  %v381_v13 = vunpack.c.l.bf16 %v394_v8  ;;  %v382_v15 = vunpack.c.h.bf16 %v394_v8  ;;  %v393_v16 = vld [vmem:[%s180_s17 + $0x18] sm:$0xff]  }
  0x13   : > { %v212_v17 = vmul.f32 %v361_v4, %v352_v0  ;;  %v213_v18 = vmul.f32 %v362_v6, %v352_v0  ;;  %v369_v19 = vunpack.c.l.bf16 %v392_v9  ;;  %v385_v20 = vunpack.c.l.bf16 %v395_v10  ;;  %v396_v21 = vld [vmem:[%s185_s20 + $0x18] sm:$0xff]  }
  0x14   : > { %v214_v22 = vmul.f32 %v365_v12, %v352_v0  ;;  %v215_v23 = vmul.f32 %v366_v14, %v352_v0  ;;  %v370_v24 = vunpack.c.h.bf16 %v392_v9  ;;  %v386_v25 = vunpack.c.h.bf16 %v395_v10 }
  0x15   : > { %v225_v26 = vadd.f32 %v353_v11, %v212_v17  ;;  %v226_v27 = vadd.f32 %v353_v11, %v213_v18  ;;  %v216_v28 = vmul.f32 %v369_v19, %v352_v0  ;;  %v373_v29 = vunpack.c.l.bf16 %v393_v16 }
  0x16   : > { %v227_v30 = vadd.f32 %v353_v11, %v214_v22  ;;  %v228_v31 = vadd.f32 %v353_v11, %v215_v23  ;;  %v217_v32 = vmul.f32 %v370_v24, %v352_v0  ;;  %v389_v33 = vunpack.c.l.bf16 %v396_v21 }
  0x17   : > { %v249_v34 = vadd.f32 %v377_v5, %v225_v26  ;;  %v250_v35 = vadd.f32 %v378_v7, %v226_v27  ;;  %v229_v36 = vadd.f32 %v353_v11, %v216_v28  ;;  %v218_v37 = vmul.f32 %v373_v29, %v352_v0 }
  0x18   : > { %v251_v38 = vadd.f32 %v381_v13, %v227_v30  ;;  %v252_v39 = vadd.f32 %v382_v15, %v228_v31  ;;  %v230_v40 = vadd.f32 %v353_v11, %v217_v32  ;;  %v374_v41 = vunpack.c.h.bf16 %v393_v16 }
  0x19   : > { %v257_v42 = vmax.f32 %v249_v34, 0.0  ;;  %v258_v43 = vmax.f32 %v250_v35, 0.0  ;;  %v253_v44 = vadd.f32 %v385_v20, %v229_v36  ;;  %v231_v45 = vadd.f32 %v353_v11, %v218_v37 }
  0x1a   : > { %v259_v46 = vmax.f32 %v251_v38, 0.0  ;;  %v260_v47 = vmax.f32 %v252_v39, 0.0  ;;  %v254_v48 = vadd.f32 %v386_v25, %v230_v40  ;;  %v219_v49 = vmul.f32 %v374_v41, %v352_v0 }
  0x1b   : > { %266 = vst.msk [vmem:[%s190_s28] sm:$0xff] %vm265_vm0, %v257_v42  ;;  %267 = vst.msk [vmem:[%s190_s28 + $0x8] sm:$0xff] %vm265_vm0, %v258_v43  ;;  %v261_v50 = vmax.f32 %v253_v44, 0.0  ;;  %v255_v51 = vadd.f32 %v389_v33, %v231_v45  ;;  %v390_v52 = vunpack.c.h.bf16 %v396_v21 }
  0x1c   : > { %268 = vst.msk [vmem:[%s190_s28 + $0x10] sm:$0xff] %vm265_vm0, %v259_v46  ;;  %269 = vst.msk [vmem:[%s190_s28 + $0x18] sm:$0xff] %vm265_vm0, %v260_v47  ;;  %v262_v53 = vmax.f32 %v254_v48, 0.0  ;;  %v232_v54 = vadd.f32 %v353_v11, %v219_v49 }
  0x1d   : > { %270 = vst.msk [vmem:[%s190_s28 + $0x20] sm:$0xff] %vm265_vm0, %v261_v50  ;;  %v263_v55 = vmax.f32 %v255_v51, 0.0 }
  0x1e   : > { %271 = vst.msk [vmem:[%s190_s28 + $0x28] sm:$0xff] %vm265_vm0, %v262_v53  ;;  %v256_v56 = vadd.f32 %v390_v52, %v232_v54 }
  0x1f   : > { %272 = vst.msk [vmem:[%s190_s28 + $0x30] sm:$0xff] %vm265_vm0, %v263_v55 }
  0x20   : > { %v264_v57 = vmax.f32 %v256_v56, 0.0 }
  0x22   : > { %273 = vst.msk [vmem:[%s190_s28 + $0x38] sm:$0xff] %vm265_vm0, %v264_v57 }
  0x23 PF: > { %s13_s12 = sadd.s32 1, %s411_s12  }
  0x24   : > { %p10_p4 = scmp.ge.s32.totalorder %s13_s12, 4  }
  0x26   :  { %12 = sbr.rel (!%p10_p4) target bundleno = 1 (0x1), region = 65 }

// kernel: basic_block_forward.6
= control target key start
LH: loop header
LB: loop body
LE: loop exit
PB: predicated region body
PF: predicated region fallthrough
CT: control target
= control target key end

     0   :  { %s2551_s12 = smov 0   ;;  %s2912_s0 = inlined_call_operand.vmem [shape: bf16[2,10,10,8], index: 0, kind: input, shape index: {}]   ;;  %s2913_s1 = inlined_call_operand.vmem [shape: bf16[9,8,128], index: 1, kind: input, shape index: {}]   ;;  %s2914_s2 = inlined_call_operand.vmem [shape: bf16[2,64,128], index: 2, kind: output, shape index: {0}]   ;;  %s2915_s3 = inlined_call_operand.vmem [shape: f32[2,2,128], index: 3, kind: output, shape index: {1}]  }
   0x1 LB: > { %s2056_s13 = sadd.s32 4294967295, %s2529_s12   ;;  %p2060_p0 = scmp.ge.s32.totalorder %s2529_s12, 1  ;;  %s2529_s12 = sphi %s2551_s12, %s14_s12  }
   0x2   : > { %p140_p1 = scmp.lt.s32.totalorder %s2529_s12, 3 }
   0x4   : > { %p141_p2 = pnand %p2060_p0, %p140_p1 }
   0x5   : > { %v207_v0 = vld [vmem:[%s2913_s1] sm:$0xf] (!%p141_p2)  ;;  %vm241_vm0 = vcmask (!%p141_p2), 1043456   ;;  %p168_p3 = scmp.lt.s32.totalorder (!%p141_p2), %s2056_s13, 1  ;;  %v2567_v2 = vld [vmem:[%s2913_s1 + $0x10] sm:$0xf] (!%p141_p2) }
   0x6   : > { %144 = sbr.rel (%p141_p2) target bundleno = 345 (0x159), region = 28  ;;  %2492 = vmatprep.subr.msk.bf16.mxu1 (!%p141_p2), %vm241_vm0, %v207_v0  ;;  %v243_v1 = vsel (!%p141_p2), %vm241_vm0, %v207_v0, 0  ;;  %v2073_v3 = vld [vmem:[%s2913_s1 + $0x4] sm:$0xf] (!%p141_p2)  ;;  %2496 = vmatprep.subr.msk.bf16.mxu0 (!%p141_p2), %vm241_vm0, %v2567_v2  ;;  %v2578_v4 = vsel (!%p141_p2), %vm241_vm0, %v2567_v2, 0  ;;  %vm228_vm1 = vcmask (!%p141_p2), 64512  }
   0x7   : > { %2337 = vmatpush3.bf16.msra.mxu1 (!%p141_p2), %v243_v1  ;;  %2377 = vmatpush3.bf16.msra.mxu0 (!%p141_p2), %v2578_v4  ;;  %v2165_v5 = vld [vmem:[%s2913_s1 + $0x14] sm:$0xf] (!%p141_p2)  ;;  %vm342_vm2 = vsmask.f32 (!%p141_p2), 3328  ;;  %vm343_vm3 = vsmask.f32 (!%p141_p2), 7440 }
   0x8   : > { %2493 = vmatprep.subr.msk.bf16.mxu1 (!%p141_p2), %vm241_vm0, %v2073_v3  ;;  %2498 = vmatprep.subr.msk.bf16.mxu0 (!%p141_p2), %vm241_vm0, %v2165_v5  ;;  %v492_v6 = vsel (!%p141_p2), %vm241_vm0, %v2073_v3, 0  ;;  %v2594_v7 = vsel (!%p141_p2), %vm241_vm0, %v2165_v5, 0  ;;  %v2599_v8 = vld [vmem:[%s2913_s1 + $0x18] sm:$0xf] (!%p141_p2)  ;;  %v2090_v9 = vld [vmem:[%s2913_s1 + $0x8] sm:$0xf] (!%p141_p2)  ;;  %vm2630_vm4 = vmor (!%p141_p2), %vm342_vm2, %vm343_vm3 }
   0x9   : > { %v2611_v13 = vsel (!%p141_p2), %vm241_vm0, %v2599_v8, 0  ;;  %v2614_v14 = vsel (!%p141_p2), %vm241_vm0, %v2090_v9, 0  ;;  %vm607_vm5 = vcmask (!%p141_p2), 1042432   ;;  %vm608_vm6 = vcmask (!%p141_p2), 1046532  }
   0xa   : > { %vm2662_vm7 = vmor (!%p141_p2), %vm607_vm5, %vm608_vm6 }
   0xd   : > { %s2921_s13 = smov (!%p168_p3, %s2056_s13), 1 }
   0xe   : > { %s2502_s22 = smul.u32 80, %s2921_s13  ;;  %s2259_s9 = sshll.u32 %s2921_s13, 5 }
   0xf   : > { %s2899_s14 = scalar_lea.vmem %s2914_s2, %s2259_s9  ;;  %s2064_s15 = sshll.u32 %s2921_s13, 1 }
  0x10   : > { %s2590_s25 = scalar_lea.vmem %s2912_s0, %s2502_s22  ;;  %s181_s18 = scalar_lea.vmem %s2915_s3, %s2064_s15 }
  0x11   : > { %v2511_v10 = vld [vmem:[%s2590_s25] ss:$8 sps:$4 sm:$0xff]   ;;  %v2512_v11 = vld [vmem:[%s2590_s25 + $0x10] ss:$8 sps:$4 sm:$0xff]   ;;  %v2117_v16 = vld [vmem:[%s2590_s25 + $0xc] sm:$0x1] }
  0x12   : > { %2338 = vmatprep.mubr.msk.bf16.mxu1 %vm228_vm1, %v2511_v10  ;;  %v2513_v12 = vld [vmem:[%s2590_s25 + $0x20] ss:$8 sps:$4 sm:$0xff]   ;;  %v2118_v17 = vld [vmem:[%s2590_s25 + $0x10] sm:$0xf]  ;;  %v2119_v19 = vld [vmem:[%s2590_s25 + $0x14] sm:$0x1] }
  0x13   : > { %2339 = vmatmul.mubr.msk.bf16.vlgmr.msra.gmra.mrb[0].mxu1 %vm228_vm1, %v2512_v11  ;;  %v2116_v15 = vld [vmem:[%s2590_s25 + $0x8] sm:$0xf]  ;;  %v2514_v18 = vld [vmem:[%s2590_s25 + $0x30] ss:$8 sps:$4 sm:$0xff]   ;;  %v921_v22 = vshll.u32 %v2117_v16, 16  ;;  %v926_v23 = vshrl.u32 %v2118_v17, 16 }
  0x14   : > { %2342 = vmatprep.mubr.msk.bf16.mxu1 %vm228_vm1, %v2513_v12  ;;  %2347 = vmatpush3.bf16.msra.mxu1 %v492_v6  ;;  %v912_v20 = vshrl.u32 %v2116_v15, 16  ;;  %v915_v21 = vshll.u32 %v2116_v15, 16  ;;  %v929_v24 = vshll.u32 %v2118_v17, 16  ;;  %v935_v25 = vshll.u32 %v2119_v19, 16  ;;  %v2120_v26 = vld [vmem:[%s2590_s25 + $0x18] sm:$0xf] }
  0x15   : > { %2494 = vmatprep.subr.msk.bf16.mxu1 %vm241_vm0, %v2090_v9  ;;  %v2121_v27 = vld [vmem:[%s2590_s25 + $0x1c] sm:$0x1]  ;;  %v923_v30 = vrot.slane %v921_v22, 5  ;;  %v928_v31 = vrot.slane %v926_v23, 4  ;;  %v2122_v32 = vld [vmem:[%s2590_s25 + $0x20] sm:$0xf] }
  0x16   : > { %v914_v28 = vrot.slane %v912_v20, 4  ;;  %v917_v29 = vrot.slane %v915_v21, 5  ;;  %v931_v33 = vrot.slane %v929_v24, 5  ;;  %v937_v34 = vrot.slane %v935_v25, 5  ;;  %v2123_v35 = vld [vmem:[%s2590_s25 + $0x24] sm:$0x1] }
  0x17   : > { %v940_v36 = vshrl.u32 %v2120_v26, 16  ;;  %v943_v37 = vshll.u32 %v2120_v26, 16  ;;  %v949_v39 = vshll.u32 %v2121_v27, 16  ;;  %v954_v40 = vshrl.u32 %v2122_v32, 16  ;;  %v326_v42 = vld [vmem:[%s2590_s25] sm:$0xf] }
  0x18   : > { %v918_v38 = vor.u32 %v917_v29, %v914_v28  ;;  %v957_v41 = vshll.u32 %v2122_v32, 16  ;;  %v932_v44 = vor.u32 %v931_v33, %v928_v31  ;;  %v963_v47 = vshll.u32 %v2123_v35, 16  ;;  %v327_v48 = vld [vmem:[%s2590_s25 + $0x4] sm:$0x1]  ;;  %v328_v53 = vld [vmem:[%s2590_s25 + $0x8] sm:$0xf] }
  0x19   : > { %v942_v45 = vrot.slane %v940_v36, 4  ;;  %v945_v46 = vrot.slane %v943_v37, 5  ;;  %v951_v50 = vrot.slane %v949_v39, 5  ;;  %v956_v51 = vrot.slane %v954_v40, 4  ;;  %v329_v60 = vld [vmem:[%s2590_s25 + $0xc] sm:$0x1] }
  0x1a   : > { %v919_v49 = vrot.slane %v918_v38, 4  ;;  %v959_v52 = vrot.slane %v957_v41, 5  ;;  %v933_v54 = vrot.slane %v932_v44, 4  ;;  %v965_v56 = vrot.slane %v963_v47, 5  ;;  %v330_v63 = vld [vmem:[%s2590_s25 + $0x10] sm:$0xf] }
  0x1b   : > { %2343 = vmatmul.mubr.msk.bf16.gmra.mrb[4].mxu1 %vm228_vm1, %v2514_v18  ;;  %v946_v55 = vor.u32 %v945_v46, %v942_v45  ;;  %v346_v57 = vshrl.u32 %v326_v42, 16  ;;  %v349_v61 = vshll.u32 %v326_v42, 16  ;;  %v355_v62 = vshll.u32 %v327_v48, 16  ;;  %v331_v6 = vld [vmem:[%s2590_s25 + $0x14] sm:$0x1] }
  0x1c   : > { %v924_v58 = vsel %vm2630_vm4, %v919_v49, %v923_v30  ;;  %v960_v59 = vor.u32 %v959_v52, %v956_v51  ;;  %v938_v0 = vsel %vm2630_vm4, %v933_v54, %v937_v34  ;;  %v360_v5 = vshrl.u32 %v328_v53, 16  ;;  %v332_v15 = vld [vmem:[%s2590_s25 + $0x18] sm:$0xf]  ;;  %v333_v20 = vld [vmem:[%s2590_s25 + $0x1c] sm:$0x1] }
  0x1d   : > { %v947_v1 = vrot.slane %v946_v55, 4  ;;  %v348_v3 = vrot.slane %v346_v57, 4  ;;  %v2133_v9 = vcombine.low %v924_v58, %v938_v0  ;;  %v351_v11 = vrot.slane %v349_v61, 5  ;;  %v2141_v25 = vld [vmem:[%s2590_s25 + $0x8] sm:$0xe] }
  0x1e   : > { %v961_v10 = vrot.slane %v960_v59, 4  ;;  %v357_v12 = vrot.slane %v355_v62, 5  ;;  %v362_v17 = vrot.slane %v360_v5, 4  ;;  %v363_v18 = vshll.u32 %v328_v53, 16  ;;  %v2142_v26 = vld [vmem:[%s2590_s25 + $0xc] sm:$0x1] }
  0x1f   : > { %v952_v16 = vsel %vm2630_vm4, %v947_v1, %v951_v50  ;;  %v369_v19 = vshll.u32 %v329_v60, 16  ;;  %2378 = vmatprep.mubr.msk.bf16.mxu0 %vm228_vm1, %v2133_v9  ;;  %v352_v22 = vor.u32 %v351_v11, %v348_v3  ;;  %v374_v23 = vshrl.u32 %v330_v63, 16  ;;  %v2143_v31 = vld [vmem:[%s2590_s25 + $0x10] sm:$0xe]  ;;  %v2144_v36 = vld [vmem:[%s2590_s25 + $0x14] sm:$0x1] }
  0x20   : > { %v966_v21 = vsel %vm2630_vm4, %v961_v10, %v965_v56  ;;  %v377_v24 = vshll.u32 %v330_v63, 16  ;;  %v365_v28 = vrot.slane %v363_v18, 5  ;;  %v383_v30 = vshll.u32 %v331_v6, 16  ;;  %v2145_v41 = vld [vmem:[%s2590_s25 + $0x18] sm:$0xe] }
  0x21   : > { %v2134_v27 = vcombine.low %v952_v16, %v966_v21  ;;  %v371_v29 = vrot.slane %v369_v19, 5  ;;  %v353_v32 = vrot.slane %v352_v22, 4  ;;  %v376_v33 = vrot.slane %v374_v23, 4  ;;  %v2146_v48 = vld [vmem:[%s2590_s25 + $0x1c] sm:$0x1] }
  0x22   : > { %v379_v34 = vrot.slane %v377_v24, 5  ;;  %v388_v35 = vshrl.u32 %v332_v15, 16  ;;  %v366_v37 = vor.u32 %v365_v28, %v362_v17  ;;  %v385_v38 = vrot.slane %v383_v30, 5  ;;  %v2147_v49 = vld [vmem:[%s2590_s25 + $0x20] sm:$0xe] }
  0x23   : > { %2379 = vmatmul.mubr.msk.bf16.vlgmr.msra.gmra.mrb[0].mxu0 %vm228_vm1, %v2134_v27  ;;  %v391_v39 = vshll.u32 %v332_v15, 16  ;;  %v397_v40 = vshll.u32 %v333_v20, 16  ;;  %v358_v42 = vsel %vm2630_vm4, %v353_v32, %v357_v12  ;;  %v2157_v47 = vrot.slane %v2141_v25, 9  ;;  %v2148_v53 = vld [vmem:[%s2590_s25 + $0x24] sm:$0x1] }
  0x24   : > { %2387 = vmatpush3.bf16.msra.mxu0 %v2594_v7  ;;  %v380_v44 = vor.u32 %v379_v34, %v376_v33  ;;  %v390_v45 = vrot.slane %v388_v35, 4  ;;  %v367_v50 = vrot.slane %v366_v37, 4  ;;  %v1175_v52 = vrot.slane %v2142_v26, 5  ;;  %v334_v58 = vld [vmem:[%s2590_s25 + $0x20] sm:$0xf] }
  0x25   : > { %v393_v51 = vrot.slane %v391_v39, 5  ;;  %v399_v7 = vrot.slane %v397_v40, 5  ;;  %2499 = vmatprep.subr.msk.bf16.mxu0 %vm241_vm0, %v2599_v8  ;;  %v2158_v55 = vrot.slane %v2143_v31, 9  ;;  %v1179_v56 = vrot.slane %v2144_v36, 5  ;;  %v335_v63 = vld [vmem:[%s2590_s25 + $0x24] sm:$0x1] }
  0x26   : > { %v381_v54 = vrot.slane %v380_v44, 4  ;;  %v2159_v57 = vrot.slane %v2145_v41, 9  ;;  %v372_v59 = vsel %vm2630_vm4, %v367_v50, %v371_v29  ;;  %v1176_v61 = vsel %vm2662_vm7, %v2157_v47, %v1175_v52  ;;  %v336_v0 = vld [vmem:[%s2590_s25 + $0x28] sm:$0xf]  ;;  %v337_v6 = vld [vmem:[%s2590_s25 + $0x2c] sm:$0x1] }
  0x27   : > { %v394_v60 = vor.u32 %v393_v51, %v390_v45  ;;  %v1183_v62 = vrot.slane %v2146_v48, 5  ;;  %v2074_v1 = vcombine.low %v358_v42, %v372_v59  ;;  %v1180_v3 = vsel %vm2662_vm7, %v2158_v55, %v1179_v56  ;;  %v338_v23 = vld [vmem:[%s2590_s25 + $0x30] sm:$0xf]  ;;  %v339_v24 = vld [vmem:[%s2590_s25 + $0x34] sm:$0x1] }
  0x28   : > { %v386_v8 = vsel %vm2630_vm4, %v381_v54, %v385_v38  ;;  %v2160_v5 = vrot.slane %v2147_v49, 9  ;;  %v2166_v10 = vcombine.low %v1176_v61, %v1180_v3  ;;  %v1187_v12 = vrot.slane %v2148_v53, 5  ;;  %v2696_v25 = vld [vmem:[%s2913_s1 + $0xc] sm:$0xf]  ;;  %v340_v30 = vld [vmem:[%s2590_s25 + $0x38] sm:$0xf] }
  0x29   : > { %v395_v9 = vrot.slane %v394_v60, 4  ;;  %v1184_v11 = vsel %vm2662_vm7, %v2159_v57, %v1183_v62  ;;  %2348 = vmatprep.mubr.msk.bf16.mxu1 %vm228_vm1, %v2074_v1  ;;  %v402_v15 = vshrl.u32 %v334_v58, 16  ;;  %v405_v16 = vshll.u32 %v334_v58, 16  ;;  %v341_v31 = vld [vmem:[%s2590_s25 + $0x3c] sm:$0x1] }
  0x2a   : > { %v411_v17 = vshll.u32 %v335_v63, 16  ;;  %v416_v18 = vshrl.u32 %v336_v0, 16  ;;  %2388 = vmatprep.mubr.msk.bf16.mxu0 %vm228_vm1, %v2166_v10  ;;  %v1188_v20 = vsel %vm2662_vm7, %v2160_v5, %v1187_v12  ;;  %v419_v21 = vshll.u32 %v336_v0, 16  ;;  %v2703_v32 = vld [vmem:[%s2913_s1 + $0x1c] sm:$0xf] }
  0x2b   : > { %v400_v19 = vsel %vm2630_vm4, %v395_v9, %v399_v7  ;;  %v425_v22 = vshll.u32 %v337_v6, 16  ;;  %v2167_v27 = vcombine.low %v1184_v11, %v1188_v20  ;;  %v404_v28 = vrot.slane %v402_v15, 4  ;;  %v2149_v37 = vld [vmem:[%s2590_s25 + $0x28] sm:$0xe]  ;;  %v2150_v38 = vld [vmem:[%s2590_s25 + $0x2c] sm:$0x1] }
  0x2c   : > { %v2075_v26 = vcombine.low %v386_v8, %v400_v19  ;;  %v407_v29 = vrot.slane %v405_v16, 5  ;;  %v413_v33 = vrot.slane %v411_v17, 5  ;;  %v418_v34 = vrot.slane %v416_v18, 4  ;;  %v2151_v44 = vld [vmem:[%s2590_s25 + $0x30] sm:$0xe] }
  0x2d   : > { %v421_v35 = vrot.slane %v419_v21, 5  ;;  %v427_v36 = vrot.slane %v425_v22, 5  ;;  %v430_v40 = vshrl.u32 %v338_v23, 16  ;;  %v433_v41 = vshll.u32 %v338_v23, 16  ;;  %v2152_v45 = vld [vmem:[%s2590_s25 + $0x34] sm:$0x1] }
  0x2e   : > { %2349 = vmatmul.mubr.msk.bf16.vlgmr.msra.gmra.mrb[0].mxu1 %vm228_vm1, %v2075_v26  ;;  %v408_v39 = vor.u32 %v407_v29, %v404_v28  ;;  %v439_v42 = vshll.u32 %v339_v24, 16  ;;  %v444_v48 = vshrl.u32 %v340_v30, 16  ;;  %v447_v49 = vshll.u32 %v340_v30, 16  ;;  %v2153_v51 = vld [vmem:[%s2590_s25 + $0x38] sm:$0xe] }
  0x2f   : > { %2389 = vmatmul.mubr.msk.bf16.vlgmr.msra.gmra.mrb[0].mxu0 %vm228_vm1, %v2167_v27  ;;  %v422_v47 = vor.u32 %v421_v35, %v418_v34  ;;  %v453_v50 = vshll.u32 %v341_v31, 16  ;;  %2357 = vmatpush3.bf16.msra.mxu1 %v2614_v14  ;;  %v432_v52 = vrot.slane %v430_v40, 4  ;;  %v435_v53 = vrot.slane %v433_v41, 5  ;;  %v2154_v55 = vld [vmem:[%s2590_s25 + $0x3c] sm:$0x1] }
  0x30   : > { %2397 = vmatpush3.bf16.msra.mxu0 %v2611_v13  ;;  %v409_v7 = vrot.slane %v408_v39, 4  ;;  %v441_v54 = vrot.slane %v439_v42, 5  ;;  %v2155_v56 = vld [vmem:[%s2590_s25 + $0x40] sm:$0xe]  ;;  %2495 = vmatprep.subr.msk.bf16.mxu1 %vm241_vm0, %v2696_v25  ;;  %v446_v58 = vrot.slane %v444_v48, 4  ;;  %v449_v59 = vrot.slane %v447_v49, 5 }
  0x31   : > { %v423_v57 = vrot.slane %v422_v47, 4  ;;  %v455_v14 = vrot.slane %v453_v50, 5  ;;  %v2156_v60 = vld [vmem:[%s2590_s25 + $0x44] sm:$0x1]  ;;  %v575_v61 = vld [vmem:[%s2590_s25] sm:$0xe]  ;;  %2500 = vmatprep.subr.msk.bf16.mxu0 %vm241_vm0, %v2703_v32  ;;  %v436_v62 = vor.u32 %v435_v53, %v432_v52 }
  0x32   : > { %v414_v13 = vsel %vm2630_vm4, %v409_v7, %v413_v33  ;;  %v2161_v63 = vrot.slane %v2149_v37, 9  ;;  %v1191_v0 = vrot.slane %v2150_v38, 5  ;;  %v576_v1 = vld [vmem:[%s2590_s25 + $0x4] sm:$0x1]  ;;  %v577_v8 = vld [vmem:[%s2590_s25 + $0x8] sm:$0xe]  ;;  %v450_v5 = vor.u32 %v449_v59, %v446_v58 }
  0x33   : > { %v428_v3 = vsel %vm2630_vm4, %v423_v57, %v427_v36  ;;  %v2162_v6 = vrot.slane %v2151_v44, 9  ;;  %v1195_v9 = vrot.slane %v2152_v45, 5  ;;  %v578_v10 = vld [vmem:[%s2590_s25 + $0xc] sm:$0x1]  ;;  %v579_v11 = vld [vmem:[%s2590_s25 + $0x10] sm:$0xe] }
  0x34   : > { %v2076_v12 = vcombine.low %v414_v13, %v428_v3  ;;  %v437_v15 = vrot.slane %v436_v62, 4  ;;  %v1192_v16 = vsel %vm2662_vm7, %v2161_v63, %v1191_v0  ;;  %v2163_v17 = vrot.slane %v2153_v51, 9  ;;  %v580_v18 = vld [vmem:[%s2590_s25 + $0x14] sm:$0x1]  ;;  %v581_v19 = vld [vmem:[%s2590_s25 + $0x18] sm:$0xe] }
  0x35   : > { %v451_v20 = vrot.slane %v450_v5, 4  ;;  %v1196_v21 = vsel %vm2662_vm7, %v2162_v6, %v1195_v9  ;;  %v1199_v22 = vrot.slane %v2154_v55, 5  ;;  %v2164_v23 = vrot.slane %v2155_v56, 9  ;;  %v582_v29 = vld [vmem:[%s2590_s25 + $0x1c] sm:$0x1] }
  0x36   : > { %2352 = vmatprep.mubr.msk.bf16.mxu1 %vm228_vm1, %v2076_v12  ;;  %v442_v24 = vsel %vm2630_vm4, %v437_v15, %v441_v54  ;;  %v2168_v26 = vcombine.low %v1192_v16, %v1196_v21  ;;  %v1203_v27 = vrot.slane %v2156_v60, 5  ;;  %v2082_v28 = vrot.slane %v575_v61, 9  ;;  %v2515_v39 = vld [vmem:[%s2590_s25 + $0x10] ss:$8 sps:$4 sm:$0xff]   ;;  %v583_v40 = vld [vmem:[%s2590_s25 + $0x20] sm:$0xe] }
  0x37   : > { %v456_v30 = vsel %vm2630_vm4, %v451_v20, %v455_v14  ;;  %v1200_v31 = vsel %vm2662_vm7, %v2163_v17, %v1199_v22  ;;  %v612_v33 = vrot.slane %v576_v1, 5  ;;  %v2083_v34 = vrot.slane %v577_v8, 9  ;;  %v584_v47 = vld [vmem:[%s2590_s25 + $0x24] sm:$0x1]  ;;  %v585_v48 = vld [vmem:[%s2590_s25 + $0x28] sm:$0xe] }
  0x38   : > { %v2077_v35 = vcombine.low %v442_v24, %v456_v30  ;;  %2392 = vmatprep.mubr.msk.bf16.mxu0 %vm228_vm1, %v2168_v26  ;;  %v1204_v36 = vsel %vm2662_vm7, %v2164_v23, %v1203_v27  ;;  %v616_v37 = vrot.slane %v578_v10, 5  ;;  %v2084_v38 = vrot.slane %v579_v11, 9  ;;  %v586_v51 = vld [vmem:[%s2590_s25 + $0x2c] sm:$0x1]  ;;  %v587_v57 = vld [vmem:[%s2590_s25 + $0x30] sm:$0xe] }
  0x39   : > { %v2169_v41 = vcombine.low %v1200_v31, %v1204_v36  ;;  %v613_v42 = vsel %vm2662_vm7, %v2082_v28, %v612_v33  ;;  %v620_v44 = vrot.slane %v580_v18, 5  ;;  %v2085_v45 = vrot.slane %v581_v19, 9  ;;  %v588_v58 = vld [vmem:[%s2590_s25 + $0x34] sm:$0x1]  ;;  %v589_v60 = vld [vmem:[%s2590_s25 + $0x38] sm:$0xe] }
  0x3a   : > { %2353 = vmatmul.mubr.msk.bf16.gmra.mrb[4].mxu1 %vm228_vm1, %v2077_v35  ;;  %v617_v49 = vsel %vm2662_vm7, %v2083_v34, %v616_v37  ;;  %v624_v50 = vrot.slane %v582_v29, 5  ;;  %v2086_v7 = vrot.slane %v583_v40, 9  ;;  %v628_v52 = vrot.slane %v584_v47, 5  ;;  %v590_v61 = vld [vmem:[%s2590_s25 + $0x3c] sm:$0x1] }
  0x3b   : > { %2393 = vmatmul.mubr.msk.bf16.gmra.mrb[4].mxu0 %vm228_vm1, %v2169_v41  ;;  %v2091_v53 = vcombine.low %v613_v42, %v617_v49  ;;  %v621_v54 = vsel %vm2662_vm7, %v2084_v38, %v620_v44  ;;  %v2087_v55 = vrot.slane %v585_v48, 9  ;;  %v632_v56 = vrot.slane %v586_v51, 5  ;;  %v2516_v6 = vld [vmem:[%s2590_s25 + $0x20] ss:$8 sps:$4 sm:$0xff]   ;;  %v2517_v15 = vld [vmem:[%s2590_s25 + $0x30] ss:$8 sps:$4 sm:$0xff]  }
  0x3c   : > { %v625_v59 = vsel %vm2662_vm7, %v2085_v45, %v624_v50  ;;  %2398 = vmatprep.mubr.msk.bf16.mxu0 %vm228_vm1, %v2515_v39  ;;  %v629_v14 = vsel %vm2662_vm7, %v2086_v7, %v628_v52  ;;  %v2088_v13 = vrot.slane %v587_v57, 9  ;;  %v636_v62 = vrot.slane %v588_v58, 5  ;;  %v2240_v10 = vld [vmem:[%s2913_s1 + $0x20] sm:$0xf]  ;;  %v2191_v16 = vld [vmem:[%s2590_s25 + $0x10] sm:$0xf] }
  0x3d   : > { %2358 = vmatprep.mubr.msk.bf16.mxu1 %vm228_vm1, %v2091_v53  ;;  %v633_v63 = vsel %vm2662_vm7, %v2087_v55, %v632_v56  ;;  %v2089_v0 = vrot.slane %v589_v60, 9  ;;  %v640_v1 = vrot.slane %v590_v61, 5  ;;  %v2092_v8 = vcombine.low %v621_v54, %v625_v59  ;;  %v2192_v17 = vld [vmem:[%s2590_s25 + $0x14] sm:$0x1]  ;;  %v2195_v24 = vld [vmem:[%s2590_s25 + $0x20] sm:$0xf] }
  0x3e   : > { %v1621_v3 = vsel %vm241_vm0, %v2703_v32, 0  ;;  %v812_v5 = vsel %vm241_vm0, %v2696_v25, 0  ;;  %v2093_v9 = vcombine.low %v629_v14, %v633_v63  ;;  %v637_v11 = vsel %vm2662_vm7, %v2088_v13, %v636_v62  ;;  %v2193_v32 = vld [vmem:[%s2590_s25 + $0x18] sm:$0xf]  ;;  %v2194_v25 = vld [vmem:[%s2590_s25 + $0x1c] sm:$0x1] }
  0x3f   : > { %v641_v12 = vsel %vm2662_vm7, %v2089_v0, %v640_v1  ;;  %v1475_v18 = vshrl.u32 %v2191_v16, 16  ;;  %v1478_v19 = vshll.u32 %v2191_v16, 16  ;;  %v1484_v20 = vshll.u32 %v2192_v17, 16  ;;  %v2196_v29 = vld [vmem:[%s2590_s25 + $0x24] sm:$0x1] }
  0x40   : > { %v1489_v21 = vshrl.u32 %v2193_v32, 16  ;;  %v1492_v22 = vshll.u32 %v2193_v32, 16  ;;  %v1498_v23 = vshll.u32 %v2194_v25, 16  ;;  %v2094_v26 = vcombine.low %v637_v11, %v641_v12  ;;  %v2197_v30 = vld [vmem:[%s2590_s25 + $0x28] sm:$0xf] }
  0x41   : > { %v1477_v27 = vrot.slane %v1475_v18, 4  ;;  %v1480_v28 = vrot.slane %v1478_v19, 5  ;;  %v2518_v31 = vld [vmem:[%s2590_s25 + $0x40] ss:$8 sps:$4 sm:$0xff]   ;;  %v1486_v34 = vrot.slane %v1484_v20, 5  ;;  %v1503_v40 = vshrl.u32 %v2195_v24, 16 }
  0x42   : > { %2359 = vmatmul.mubr.msk.bf16.vlgmr.msra.gmra.mrb[0].mxu1 %vm228_vm1, %v2092_v8  ;;  %v2519_v33 = vld [vmem:[%s2590_s25 + $0x8] ss:$8 sps:$4 sm:$0xff]   ;;  %v1491_v35 = vrot.slane %v1489_v21, 4  ;;  %v1494_v36 = vrot.slane %v1492_v22, 5  ;;  %v1500_v37 = vrot.slane %v1498_v23, 5  ;;  %v1506_v41 = vshll.u32 %v2195_v24, 16 }
  0x43   : > { %2399 = vmatmul.mubr.msk.bf16.vlgmr.msra.gmra.mrb[0].mxu0 %vm228_vm1, %v2516_v6  ;;  %2362 = vmatprep.mubr.msk.bf16.mxu1 %vm228_vm1, %v2093_v9  ;;  %v2198_v38 = vld [vmem:[%s2590_s25 + $0x2c] sm:$0x1]  ;;  %v1481_v39 = vor.u32 %v1480_v28, %v1477_v27  ;;  %v1512_v42 = vshll.u32 %v2196_v29, 16  ;;  %v1517_v45 = vshrl.u32 %v2197_v30, 16  ;;  %v1520_v47 = vshll.u32 %v2197_v30, 16 }
  0x44   : > { %2407 = vmatpush3.bf16.msra.mxu0 %v1621_v3  ;;  %2367 = vmatpush3.bf16.msra.mxu1 %v812_v5  ;;  %v1495_v44 = vor.u32 %v1494_v36, %v1491_v35  ;;  %v1526_v48 = vshll.u32 %v2198_v38, 16  ;;  %v1505_v50 = vrot.slane %v1503_v40, 4  ;;  %v1508_v51 = vrot.slane %v1506_v41, 5  ;;  %v2199_v14 = vld [vmem:[%s2590_s25 + $0x30] sm:$0xf] }
  0x45   : > { %2402 = vmatprep.mubr.msk.bf16.mxu0 %vm228_vm1, %v2517_v15  ;;  %2501 = vmatprep.subr.msk.bf16.mxu0 %vm241_vm0, %v2240_v10  ;;  %v1482_v49 = vrot.slane %v1481_v39, 4  ;;  %v1514_v52 = vrot.slane %v1512_v42, 5  ;;  %v1519_v53 = vrot.slane %v1517_v45, 4  ;;  %v1522_v54 = vrot.slane %v1520_v47, 5  ;;  %v2200_v60 = vld [vmem:[%s2590_s25 + $0x34] sm:$0x1] }
  0x46   : > { %2497 = vmatprep.subr.msk.bf16.mxu1 %vm241_vm0, %v2567_v2  ;;  %v1496_v7 = vrot.slane %v1495_v44, 4  ;;  %v1509_v55 = vor.u32 %v1508_v51, %v1505_v50  ;;  %v1528_v56 = vrot.slane %v1526_v48, 5  ;;  %v1803_v57 = vsel %vm241_vm0, %v2240_v10, 0  ;;  %v2201_v61 = vld [vmem:[%s2590_s25 + $0x38] sm:$0xf] }
  0x47   : > { %v1487_v2 = vsel %vm2630_vm4, %v1482_v49, %v1486_v34  ;;  %v1523_v59 = vor.u32 %v1522_v54, %v1519_v53  ;;  %v2520_v13 = vld [vmem:[%s2590_s25 + $0x18] ss:$8 sps:$4 sm:$0xff]   ;;  %v2202_v0 = vld [vmem:[%s2590_s25 + $0x3c] sm:$0x1]  ;;  %v1531_v1 = vshrl.u32 %v2199_v14, 16  ;;  %v1534_v8 = vshll.u32 %v2199_v14, 16 }
  0x48   : > { %v1501_v58 = vsel %vm2630_vm4, %v1496_v7, %v1500_v37  ;;  %v1510_v63 = vrot.slane %v1509_v55, 4  ;;  %v2521_v5 = vld [vmem:[%s2590_s25 + $0x28] ss:$8 sps:$4 sm:$0xff]   ;;  %v1540_v6 = vshll.u32 %v2200_v60, 16  ;;  %v1545_v9 = vshrl.u32 %v2201_v61, 16 }
  0x49   : > { %v2208_v62 = vcombine.low %v1487_v2, %v1501_v58  ;;  %v1524_v3 = vrot.slane %v1523_v59, 4  ;;  %v1548_v10 = vshll.u32 %v2201_v61, 16  ;;  %v2203_v11 = vld [vmem:[%s2590_s25 + $0x40] sm:$0xf]  ;;  %v1533_v15 = vrot.slane %v1531_v1, 4 }
  0x4a   : > { %2363 = vmatmul.mubr.msk.bf16.gmra.mrb[4].mxu1 %vm228_vm1, %v2094_v26  ;;  %v1515_v12 = vsel %vm2630_vm4, %v1510_v63, %v1514_v52  ;;  %v1536_v16 = vrot.slane %v1534_v8, 5  ;;  %v1554_v17 = vshll.u32 %v2202_v0, 16  ;;  %v2204_v32 = vld [vmem:[%s2590_s25 + $0x44] sm:$0x1]  ;;  %v1542_v18 = vrot.slane %v1540_v6, 5 }
  0x4b   : > { %2403 = vmatmul.mubr.msk.bf16.gmra.mrb[4].mxu0 %vm228_vm1, %v2518_v31  ;;  %2368 = vmatprep.mubr.msk.bf16.mxu1 %vm228_vm1, %v2519_v33  ;;  %v1529_v25 = vsel %vm2630_vm4, %v1524_v3, %v1528_v56  ;;  %v1547_v19 = vrot.slane %v1545_v9, 4  ;;  %v1550_v20 = vrot.slane %v1548_v10, 5  ;;  %v2205_v21 = vld [vmem:[%s2590_s25 + $0x48] sm:$0xf]  ;;  %v2206_v26 = vld [vmem:[%s2590_s25 + $0x4c] sm:$0x1] }
  0x4c   : > { %2408 = vmatprep.mubr.msk.bf16.mxu0 %vm228_vm1, %v2208_v62  ;;  %v2209_v22 = vcombine.low %v1515_v12, %v1529_v25  ;;  %v1537_v23 = vor.u32 %v1536_v16, %v1533_v15  ;;  %v1556_v24 = vrot.slane %v1554_v17, 5  ;;  %v1559_v27 = vshrl.u32 %v2203_v11, 16  ;;  %v2124_v33 = vld [vmem:[%s2590_s25 + $0x28] sm:$0xf]  ;;  %v2125_v38 = vld [vmem:[%s2590_s25 + $0x2c] sm:$0x1] }
  0x4d   : > { %v1551_v28 = vor.u32 %v1550_v20, %v1547_v19  ;;  %v1562_v29 = vshll.u32 %v2203_v11, 16  ;;  %v1568_v30 = vshll.u32 %v2204_v32, 16  ;;  %v1573_v31 = vshrl.u32 %v2205_v21, 16  ;;  %v2126_v44 = vld [vmem:[%s2590_s25 + $0x30] sm:$0xf] }
  0x4e   : > { %v1538_v34 = vrot.slane %v1537_v23, 4  ;;  %v1561_v35 = vrot.slane %v1559_v27, 4  ;;  %v1576_v36 = vshll.u32 %v2205_v21, 16  ;;  %v1582_v37 = vshll.u32 %v2206_v26, 16  ;;  %v2127_v7 = vld [vmem:[%s2590_s25 + $0x34] sm:$0x1] }
  0x4f   : > { %v1552_v39 = vrot.slane %v1551_v28, 4  ;;  %v1564_v40 = vrot.slane %v1562_v29, 5  ;;  %v1570_v41 = vrot.slane %v1568_v30, 5  ;;  %v1575_v42 = vrot.slane %v1573_v31, 4  ;;  %v2128_v54 = vld [vmem:[%s2590_s25 + $0x38] sm:$0xf] }
  0x50   : > { %v1543_v45 = vsel %vm2630_vm4, %v1538_v34, %v1542_v18  ;;  %v1578_v47 = vrot.slane %v1576_v36, 5  ;;  %v1584_v48 = vrot.slane %v1582_v37, 5  ;;  %v968_v49 = vshrl.u32 %v2124_v33, 16  ;;  %v2522_v2 = vld [vmem:[%s2590_s25 + $0x38] ss:$8 sps:$4 sm:$0xff]  }
  0x51   : > { %v1557_v50 = vsel %vm2630_vm4, %v1552_v39, %v1556_v24  ;;  %v1565_v51 = vor.u32 %v1564_v40, %v1561_v35  ;;  %v971_v52 = vshll.u32 %v2124_v33, 16  ;;  %v977_v53 = vshll.u32 %v2125_v38, 16  ;;  %v2129_v58 = vld [vmem:[%s2590_s25 + $0x3c] sm:$0x1]  ;;  %v2131_v1 = vld [vmem:[%s2590_s25 + $0x44] sm:$0x1] }
  0x52   : > { %2369 = vmatmul.mubr.msk.bf16.vlgmr.msra.gmra.mrb[0].mxu1 %vm228_vm1, %v2520_v13  ;;  %v2210_v55 = vcombine.low %v1543_v45, %v1557_v50  ;;  %v970_v56 = vrot.slane %v968_v49, 4  ;;  %v985_v61 = vshll.u32 %v2126_v44, 16  ;;  %v2130_v13 = vld [vmem:[%s2590_s25 + $0x40] sm:$0xf]  ;;  %v991_v0 = vshll.u32 %v2127_v7, 16 }
  0x53   : > { %2409 = vmatmul.mubr.msk.bf16.vlgmr.msra.gmra.mrb[0].mxu0 %vm228_vm1, %v2209_v22  ;;  %2372 = vmatprep.mubr.msk.bf16.mxu1 %vm228_vm1, %v2521_v5  ;;  %v1566_v59 = vrot.slane %v1565_v51, 4  ;;  %v973_v14 = vrot.slane %v971_v52, 5  ;;  %v979_v60 = vrot.slane %v977_v53, 5  ;;  %v996_v8 = vshrl.u32 %v2128_v54, 16  ;;  %v2216_v10 = vld [vmem:[%s2590_s25 + $0x10] sm:$0xe] }
  0x54   : > { %2417 = vmatpush3.bf16.msra.mxu0 %v1803_v57  ;;  %2427 = vmatpush3.bf16.msra.mxu1 %v2578_v4  ;;  %v1579_v4 = vor.u32 %v1578_v47, %v1575_v42  ;;  %v982_v57 = vshrl.u32 %v2126_v44, 16  ;;  %v987_v6 = vrot.slane %v985_v61, 5  ;;  %v999_v9 = vshll.u32 %v2128_v54, 16  ;;  %v2217_v11 = vld [vmem:[%s2590_s25 + $0x14] sm:$0x1] }
  0x55   : > { %2412 = vmatprep.mubr.msk.bf16.mxu0 %vm228_vm1, %v2210_v55  ;;  %v1571_v3 = vsel %vm2630_vm4, %v1566_v59, %v1570_v41  ;;  %v974_v5 = vor.u32 %v973_v14, %v970_v56  ;;  %v993_v15 = vrot.slane %v991_v0, 5  ;;  %v998_v16 = vrot.slane %v996_v8, 4  ;;  %v2218_v32 = vld [vmem:[%s2590_s25 + $0x18] sm:$0xe]  ;;  %v2219_v21 = vld [vmem:[%s2590_s25 + $0x1c] sm:$0x1] }
  0x56   : > { %v1580_v62 = vrot.slane %v1579_v4, 4  ;;  %v984_v63 = vrot.slane %v982_v57, 4  ;;  %v1005_v17 = vshll.u32 %v2129_v58, 16  ;;  %v1001_v20 = vrot.slane %v999_v9, 5  ;;  %v2220_v22 = vld [vmem:[%s2590_s25 + $0x20] sm:$0xe] }
  0x57   : > { %v975_v18 = vrot.slane %v974_v5, 4  ;;  %v1010_v24 = vshrl.u32 %v2130_v13, 16  ;;  %v1013_v26 = vshll.u32 %v2130_v13, 16  ;;  %v1019_v27 = vshll.u32 %v2131_v1, 16  ;;  %v2221_v28 = vld [vmem:[%s2590_s25 + $0x24] sm:$0x1] }
  0x58   : > { %v1585_v12 = vsel %vm2630_vm4, %v1580_v62, %v1584_v48  ;;  %v988_v19 = vor.u32 %v987_v6, %v984_v63  ;;  %v1007_v23 = vrot.slane %v1005_v17, 5  ;;  %v1002_v31 = vor.u32 %v1001_v20, %v998_v16  ;;  %v2222_v34 = vld [vmem:[%s2590_s25 + $0x28] sm:$0xe]  ;;  %v2223_v35 = vld [vmem:[%s2590_s25 + $0x2c] sm:$0x1] }
  0x59   : > { %v2211_v25 = vcombine.low %v1571_v3, %v1585_v12  ;;  %v980_v29 = vsel %vm2630_vm4, %v975_v18, %v979_v60  ;;  %v2232_v33 = vrot.slane %v2216_v10, 9  ;;  %v1012_v36 = vrot.slane %v1010_v24, 4  ;;  %v2224_v40 = vld [vmem:[%s2590_s25 + $0x30] sm:$0xe]  ;;  %v2225_v47 = vld [vmem:[%s2590_s25 + $0x34] sm:$0x1] }
  0x5a   : > { %2373 = vmatmul.mubr.msk.bf16.gmra.mrb[4].mxu1 %vm228_vm1, %v2522_v2  ;;  %v989_v30 = vrot.slane %v988_v19, 4  ;;  %v1015_v37 = vrot.slane %v1013_v26, 5  ;;  %v1021_v38 = vrot.slane %v1019_v27, 5  ;;  %v1738_v39 = vrot.slane %v2217_v11, 5  ;;  %v2226_v7 = vld [vmem:[%s2590_s25 + $0x38] sm:$0xe] }
  0x5b   : > { %2413 = vmatmul.mubr.msk.bf16.gmra.mrb[4].mxu0 %vm228_vm1, %v2211_v25  ;;  %v1003_v42 = vrot.slane %v1002_v31, 4  ;;  %v2233_v44 = vrot.slane %v2218_v32, 9  ;;  %v1742_v45 = vrot.slane %v2219_v21, 5  ;;  %v2234_v51 = vrot.slane %v2220_v22, 9  ;;  %v2227_v52 = vld [vmem:[%s2590_s25 + $0x3c] sm:$0x1] }
  0x5c   : > { %v994_v41 = vsel %vm2630_vm4, %v989_v30, %v993_v15  ;;  %v1016_v49 = vor.u32 %v1015_v37, %v1012_v36  ;;  %v1739_v50 = vsel %vm2662_vm7, %v2232_v33, %v1738_v39  ;;  %v1746_v2 = vrot.slane %v2221_v28, 5  ;;  %v2228_v4 = vld [vmem:[%s2590_s25 + $0x40] sm:$0xe]  ;;  %v2229_v56 = vld [vmem:[%s2590_s25 + $0x44] sm:$0x1] }
  0x5d   : > { %v2135_v48 = vcombine.low %v980_v29, %v994_v41  ;;  %v1008_v53 = vsel %vm2630_vm4, %v1003_v42, %v1007_v23  ;;  %v1743_v54 = vsel %vm2662_vm7, %v2233_v44, %v1742_v45  ;;  %v2235_v55 = vrot.slane %v2222_v34, 9  ;;  %v2230_v60 = vld [vmem:[%s2590_s25 + $0x48] sm:$0xe]  ;;  %v2231_v0 = vld [vmem:[%s2590_s25 + $0x4c] sm:$0x1] }
  0x5e   : > { %v1017_v57 = vrot.slane %v1016_v49, 4  ;;  %v2241_v58 = vcombine.low %v1739_v50, %v1743_v54  ;;  %v1750_v59 = vrot.slane %v2223_v35, 5  ;;  %v2236_v14 = vrot.slane %v2224_v40, 9 }
  0x5f   : > { %2382 = vmatprep.mubr.msk.bf16.mxu1 %vm228_vm1, %v2135_v48  ;;  %v1747_v61 = vsel %vm2662_vm7, %v2234_v51, %v1746_v2  ;;  %v1754_v13 = vrot.slane %v2225_v47, 5  ;;  %v2237_v62 = vrot.slane %v2226_v7, 9  ;;  %v1758_v63 = vrot.slane %v2227_v52, 5 }
  0x60   : > { %v1022_v1 = vsel %vm2630_vm4, %v1017_v57, %v1021_v38  ;;  %2418 = vmatprep.mubr.msk.bf16.mxu0 %vm228_vm1, %v2241_v58  ;;  %v1751_v8 = vsel %vm2662_vm7, %v2235_v55, %v1750_v59  ;;  %v2238_v3 = vrot.slane %v2228_v4, 9  ;;  %v1762_v5 = vrot.slane %v2229_v56, 5 }
  0x61   : > { %v2136_v6 = vcombine.low %v1008_v53, %v1022_v1  ;;  %v2242_v9 = vcombine.low %v1747_v61, %v1751_v8  ;;  %v1755_v10 = vsel %vm2662_vm7, %v2236_v14, %v1754_v13  ;;  %v1759_v11 = vsel %vm2662_vm7, %v2237_v62, %v1758_v63 }
  0x62   : > { %v2243_v12 = vcombine.low %v1755_v10, %v1759_v11  ;;  %v2239_v15 = vrot.slane %v2230_v60, 9  ;;  %v1766_v16 = vrot.slane %v2231_v0, 5  ;;  %v1763_v43 = vsel %vm2662_vm7, %v2238_v3, %v1762_v5 }
  0x63   : > { %2419 = vmatmul.mubr.msk.bf16.vlgmr.msra.gmra.mrb[0].mxu0 %vm228_vm1, %v2242_v9 }
  0x64   : > { %2422 = vmatprep.mubr.msk.bf16.mxu0 %vm228_vm1, %v2243_v12  ;;  %v1767_v17 = vsel %vm2662_vm7, %v2239_v15, %v1766_v16 }
  0x65   : > { %v2244_v32 = vcombine.low %v1763_v43, %v1767_v17 }
  0x66   : > { %2383 = vmatmul.mubr.msk.bf16.vlgmr.msra.gmra.mrb[4].mxu1 %vm228_vm1, %v2136_v6 }
  0x6b   : > { %2423 = vmatmul.mubr.msk.bf16.gmra.mrb[4].mxu0 %vm228_vm1, %v2244_v32 }
 0x125   : > { %v2370_v25 = vpop.f32.mrb[0].mxu1 }
 0x126   : > { %v848_v18 = vpop.f32.mrb[1].mxu1 }
 0x127   : > { %v2371_v19 = vpop.f32.mrb[2].mxu1 }
 0x128   : > { %v851_v20 = vpop.f32.mrb[3].mxu1 }
 0x136   : > { %v2420_v22 = vpop.f32.mrb[0].mxu0 }
 0x137   : > { %v2428_v24 = vadd.f32 %v2420_v22, %v2370_v25  ;;  %v1839_v26 = vpop.f32.mrb[1].mxu0 }
 0x138   : > { %v2429_v28 = vadd.f32 %v1839_v26, %v848_v18  ;;  %v2421_v29 = vpop.f32.mrb[2].mxu0 }
 0x139   : > { %v2384_v21 = vpop.f32.mrb[4].mxu1  ;;  %v2430_v31 = vadd.f32 %v2421_v29, %v2371_v19  ;;  %v1842_v46 = vpop.f32.mrb[3].mxu0  ;;  %v1950_v39 = vmul.f32 %v2428_v24, %v2428_v24 }
 0x13a   : > { %v1110_v23 = vpop.f32.mrb[5].mxu1  ;;  %v2431_v33 = vadd.f32 %v1842_v46, %v851_v20  ;;  %v1948_v35 = vmul.f32 %v2429_v28, %v2429_v28 }
 0x13b   : > { %v2385_v27 = vpop.f32.mrb[6].mxu1  ;;  %v2276_v34 = vpack.c.bf16 %v2430_v31, %v2428_v24  ;;  %v1951_v47 = vmul.f32 %v2430_v31, %v2430_v31 }
 0x13c   : > { %v1113_v30 = vpop.f32.mrb[7].mxu1  ;;  %v2271_v36 = vpack.c.bf16 %v2431_v33, %v2429_v28  ;;  %v1934_v37 = vadd.f32 %v2431_v33, %v2429_v28  ;;  %v1949_v38 = vmul.f32 %v2431_v33, %v2431_v33 }
 0x13d   : > { %2288 = vst [vmem:[%s2899_s14 + $0x8] sm:$0xff] %v2276_v34  }
 0x13e   : > { %2272 = vst [vmem:[%s2899_s14] sm:$0xff] %v2271_v36   ;;  %v1935_v40 = vadd.f32 %v2428_v24, %v1934_v37  ;;  %v1956_v41 = vadd.f32 %v1949_v38, %v1948_v35  ;;  %v2424_v42 = vpop.f32.mrb[4].mxu0 }
 0x13f   : > { %v2432_v44 = vadd.f32 %v2424_v42, %v2384_v21  ;;  %v1855_v45 = vpop.f32.mrb[5].mxu0 }
 0x140   : > { %v1957_v48 = vadd.f32 %v1956_v41, %v1950_v39  ;;  %v2433_v49 = vadd.f32 %v1855_v45, %v1110_v23  ;;  %v1936_v50 = vadd.f32 %v2430_v31, %v1935_v40  ;;  %v2425_v51 = vpop.f32.mrb[6].mxu0 }
 0x141   : > { %v2434_v7 = vadd.f32 %v2425_v51, %v2385_v27  ;;  %v1858_v52 = vpop.f32.mrb[7].mxu0  ;;  %v1954_v14 = vmul.f32 %v2432_v44, %v2432_v44 }
 0x142   : > { %v1937_v53 = vadd.f32 %v2433_v49, %v1936_v50  ;;  %v1952_v54 = vmul.f32 %v2433_v49, %v2433_v49  ;;  %v1958_v2 = vadd.f32 %v1957_v48, %v1951_v47  ;;  %v2435_v55 = vadd.f32 %v1858_v52, %v1113_v30 }
 0x143   : > { %v2286_v4 = vpack.c.bf16 %v2434_v7, %v2432_v44  ;;  %v1955_v13 = vmul.f32 %v2434_v7, %v2434_v7 }
 0x144   : > { %v1959_v56 = vadd.f32 %v1958_v2, %v1952_v54  ;;  %v2281_v57 = vpack.c.bf16 %v2435_v55, %v2433_v49  ;;  %v1938_v58 = vadd.f32 %v2435_v55, %v1937_v53  ;;  %v1953_v59 = vmul.f32 %v2435_v55, %v2435_v55 }
 0x145   : > { %2290 = vst [vmem:[%s2899_s14 + $0x18] sm:$0xff] %v2286_v4  }
 0x146   : > { %2289 = vst [vmem:[%s2899_s14 + $0x10] sm:$0xff] %v2281_v57   ;;  %v1939_v60 = vadd.f32 %v2432_v44, %v1938_v58  ;;  %v1960_v61 = vadd.f32 %v1959_v56, %v1953_v59 }
 0x148   : > { %v1940_v62 = vadd.f32 %v2434_v7, %v1939_v60  ;;  %v1961_v63 = vadd.f32 %v1960_v61, %v1954_v14 }
 0x14a   : > { %v1941_v0 = vrot.slane %v1940_v62, 4  ;;  %v1962_v1 = vadd.f32 %v1961_v63, %v1955_v13 }
 0x14c   : > { %v1942_v8 = vadd.f32 %v1941_v0, %v1940_v62  ;;  %v1963_v3 = vrot.slane %v1962_v1, 4 }
 0x14e   : > { %v1943_v5 = vrot.slane %v1942_v8, 2  ;;  %v1964_v6 = vadd.f32 %v1963_v3, %v1962_v1 }
 0x150   : > { %v1944_v9 = vadd.f32 %v1943_v5, %v1942_v8  ;;  %v1965_v10 = vrot.slane %v1964_v6, 2 }
 0x152   : > { %v1945_v11 = vrot.slane %v1944_v9, 1  ;;  %v1966_v12 = vadd.f32 %v1965_v10, %v1964_v6 }
 0x154   : > { %v1946_v15 = vadd.f32 %v1945_v11, %v1944_v9  ;;  %v1967_v16 = vrot.slane %v1966_v12, 1 }
 0x156   : > { %1947 = vst [vmem:[%s181_s18] sm:$0x1] %v1946_v15  ;;  %v1968_v43 = vadd.f32 %v1967_v16, %v1966_v12 }
 0x158   : > { %1969 = vst [vmem:[%s181_s18 + $0x1] sm:$0x1] %v1968_v43 }
 0x159 PF: > { %s14_s12 = sadd.s32 1, %s2529_s12  }
 0x15a   : > { %p11_p4 = scmp.ge.s32.totalorder %s14_s12, 4  }
 0x15c   :  { %13 = sbr.rel (!%p11_p4) target bundleno = 1 (0x1), region = 80 }

</bundles_post_ra>
